<compile_context>
chip_gen: v7x
topology: tpu7x:2x2x1
jax: 0.10.0
libtpu: 0.0.40
codegen_flags: <defaults>
</compile_context>

<pallas_src>
import numpy as np

import jax
import jax.numpy as jnp
from jax import lax
from jax.experimental import pallas as pl
from jax.experimental.pallas import tpu as pltpu


# ----------------------------- Pallas kernel --------------------------------
def corss_sr_kernel(xpad_ref, w1t_ref, b1t_ref,
                    caw1_ref, cab1_ref, caw2_ref, cab2_ref,
                    sa1t_ref, sa2t_ref, wexp_ref,
                    w2t_ref, b2t_ref,
                    out_ref):
    B, _, WC = xpad_ref.shape          # (B, H+2, W*C)
    _, H, _ = out_ref.shape            # (B, H,   W*C)
    W = sa1t_ref.shape[1]
    C = WC // W
    BH = B * H

    def conv3x3(xpad_h, wt_ref, bt_ref):
        # xpad_h: (B, H+2, W*C), zero rows at h=0 and h=H+1.
        # One im2col/Toeplitz matmul on the MXU; output is lane-dense (BH, WC).
        patch = jnp.concatenate([xpad_h[:, dh:dh + H, :] for dh in range(3)],
                                axis=2).reshape(BH, 3 * WC)
        return jnp.dot(patch, wt_ref[...],
                       preferred_element_type=jnp.float32) + bt_ref[...]

    # --- conv1 + ReLU -------------------------------------------------------
    x = jnp.maximum(conv3x3(xpad_ref[...], w1t_ref, b1t_ref), 0.0)   # (BH, WC)
    x_b = x.reshape(B, H, WC)

    # --- channel attention (ca1): x * sigmoid(fc2(relu(fc1(GAP(x))))) -------
    gap_bw = jnp.mean(x_b, axis=1)                           # (B, WC)
    gap = jnp.mean(gap_bw.reshape(B, W, C), axis=1)          # (B, C)
    h = jnp.maximum(
        jnp.dot(gap, caw1_ref[...], preferred_element_type=jnp.float32)
        + cab1_ref[...], 0.0)                                # (B, Cr)
    ca = jax.nn.sigmoid(
        jnp.dot(h, caw2_ref[...], preferred_element_type=jnp.float32)
        + cab2_ref[...])                                     # (B, C)
    ca_wide = jnp.broadcast_to(ca[:, None, :], (B, W, C)).reshape(B, 1, WC)
    x1 = x_b * ca_wide                                       # (B, H, WC)

    # --- spatial attention: t * sigmoid(conv7x7([mean_c(t), max_c(t)])) -----
    def spatial_att(t_b, sat_ref):
        t4 = t_b.reshape(B, H, W, C)
        avg = jnp.mean(t4, axis=3)                           # (B, H, W)
        mx = jnp.max(t4, axis=3)                             # (B, H, W)
        am = jnp.concatenate([avg, mx], axis=2)              # (B, H, 2W)
        zpad = jnp.zeros((B, 3, 2 * W), jnp.float32)
        am_pad = jnp.concatenate([zpad, am, zpad], axis=1)   # (B, H+6, 2W)
        patch = jnp.concatenate([am_pad[:, dh:dh + H, :] for dh in range(7)],
                                axis=2).reshape(BH, 14 * W)  # (BH, 14W)
        att = jax.nn.sigmoid(
            jnp.dot(patch, sat_ref[...],
                    preferred_element_type=jnp.float32))     # (BH, W)
        att_wide = jnp.dot(att, wexp_ref[...],
                           preferred_element_type=jnp.float32)  # (BH, WC)
        return t_b * att_wide.reshape(B, H, WC)

    x2 = spatial_att(x_b, sa1t_ref)          # sa1(x)
    x1 = spatial_att(x1 + x1, sa1t_ref)      # sa1(x1 + cross1)
    x2 = spatial_att(x2 + x2, sa2t_ref)      # sa2(x2 + cross2)
    # NOTE: ca2 exists in the PyTorch module but is never used in forward().

    # --- conv2 on (x1 + x2) --------------------------------------------------
    z = x1 + x2                                              # (B, H, WC)
    zrow = jnp.zeros((B, 1, WC), jnp.float32)
    zpad_h = jnp.concatenate([zrow, z, zrow], axis=1)        # (B, H+2, WC)
    y = conv3x3(zpad_h, w2t_ref, b2t_ref)                    # (BH, WC)
    out_ref[...] = y.reshape(B, H, WC)


# ------------------------- host-side weight packing --------------------------
def _conv3x3_toeplitz(w9, W):
    """(9, Cin, Cout) tap weights -> (3*W*Cin, W*Cout) block-Toeplitz matrix."""
    w9 = np.asarray(w9, np.float32)
    Ci, Co = w9.shape[1], w9.shape[2]
    k = w9.reshape(3, 3, Ci, Co)
    T = np.zeros((3 * W * Ci, W * Co), np.float32)
    for dh in range(3):
        for wo in range(W):
            for dw in range(3):
                wi = wo + dw - 1
                if 0 <= wi < W:
                    T[dh * W * Ci + wi * Ci: dh * W * Ci + (wi + 1) * Ci,
                      wo * Co:(wo + 1) * Co] = k[dh, dw]
    return jnp.asarray(T)


def _sa_toeplitz(w_flat, W):
    """(98,) = (7,7,2) [dh, dw, ch] weights -> (7*2*W, W) Toeplitz matrix."""
    k = np.asarray(w_flat, np.float32).reshape(7, 7, 2)
    T = np.zeros((7 * 2 * W, W), np.float32)
    for dh in range(7):
        for wo in range(W):
            for dw in range(7):
                wi = wo + dw - 3
                if 0 <= wi < W:
                    T[dh * 2 * W + wi, wo] = k[dh, dw, 0]        # avg channel
                    T[dh * 2 * W + W + wi, wo] = k[dh, dw, 1]    # max channel
    return jnp.asarray(T)


def _lane_expand(W, C):
    """(W, W*C) matrix that widens a per-w value to the (w, c) lane layout."""
    E = np.zeros((W, W * C), np.float32)
    for w in range(W):
        E[w, w * C:(w + 1) * C] = 1.0
    return jnp.asarray(E)


# ------------------------------- wrapper -------------------------------------
def corss_sr_forward(x_nhwc, p, *, b_blk=1):
    N, H, W, C = x_nhwc.shape
    WC = W * C
    Cr = p['ca_w1'].shape[1]
    assert N % b_blk == 0

    # Lane-dense, H-padded input: (N, H+2, W*C).
    xpad = jnp.pad(x_nhwc.reshape(N, H, WC), ((0, 0), (1, 1), (0, 0)))

    w1t = _conv3x3_toeplitz(p['w1'], W)          # (3*WC, WC)
    w2t = _conv3x3_toeplitz(p['w2'], W)          # (3*WC, WC)
    b1t = jnp.tile(p['b1'], (1, W))              # (1, WC)
    b2t = jnp.tile(p['b2'], (1, W))              # (1, WC)
    sa1t = _sa_toeplitz(p['sa1_w'], W)           # (14W, W)
    sa2t = _sa_toeplitz(p['sa2_w'], W)           # (14W, W)
    wexp = _lane_expand(W, C)                    # (W, WC)

    def full(shape):
        nd = len(shape)
        return pl.BlockSpec(shape, lambda n, nd=nd: (0,) * nd)

    kernel = pl.pallas_call(
        corss_sr_kernel,
        out_shape=jax.ShapeDtypeStruct((N, H, WC), jnp.float32),
        grid=(N // b_blk,),
        in_specs=[
            pl.BlockSpec((b_blk, H + 2, WC), lambda n: (n, 0, 0)),  # padded x
            full((3 * WC, WC)),      # conv1 Toeplitz weight
            full((1, WC)),           # conv1 bias (tiled over w)
            full((C, Cr)),           # ca fc1 weight
            full((1, Cr)),           # ca fc1 bias
            full((Cr, C)),           # ca fc2 weight
            full((1, C)),            # ca fc2 bias
            full((14 * W, W)),       # sa1 7x7 Toeplitz weight
            full((14 * W, W)),       # sa2 7x7 Toeplitz weight
            full((W, WC)),           # per-w -> per-(w,c) lane expansion
            full((3 * WC, WC)),      # conv2 Toeplitz weight
            full((1, WC)),           # conv2 bias (tiled over w)
        ],
        out_specs=pl.BlockSpec((b_blk, H, WC), lambda n: (n, 0, 0)),
        compiler_params=pltpu.CompilerParams(
            dimension_semantics=("parallel",)),   # disjoint batch blocks
    )
    y = kernel(xpad, w1t, b1t,
               p['ca_w1'], p['ca_b1'], p['ca_w2'], p['ca_b2'],
               sa1t, sa2t, wexp, w2t, b2t)
    return y.reshape(N, H, W, C)


# ---------------- pure-JAX reference (for correctness check) ----------------
def _conv2d(x, w_hwio, b=None):
    y = lax.conv_general_dilated(x, w_hwio, (1, 1), 'SAME',
                                 dimension_numbers=('NHWC', 'HWIO', 'NHWC'))
    if b is not None:
        y = y + b
    return y


def reference_forward(x, p):
    C = x.shape[-1]
    x = jnp.maximum(_conv2d(x, p['w1'].reshape(3, 3, C, C), p['b1'][0]), 0.0)

    def channel_att(t):
        gap = jnp.mean(t, axis=(1, 2))                              # (N, C)
        h = jnp.maximum(gap @ p['ca_w1'] + p['ca_b1'][0], 0.0)
        a = jax.nn.sigmoid(h @ p['ca_w2'] + p['ca_b2'][0])
        return t * a[:, None, None, :]

    def spatial_att(t, w_flat):
        w = w_flat.reshape(7, 7, 2, 1)
        avg = jnp.mean(t, axis=3, keepdims=True)
        mx = jnp.max(t, axis=3, keepdims=True)
        s = jnp.concatenate([avg, mx], axis=3)
        a = jax.nn.sigmoid(_conv2d(s, w))
        return t * a

    x1 = channel_att(x)
    x2 = spatial_att(x, p['sa1_w'])
    x1 = spatial_att(x1 + x1, p['sa1_w'])
    x2 = spatial_att(x2 + x2, p['sa2_w'])
    return _conv2d(x1 + x2, p['w2'].reshape(3, 3, C, C), p['b2'][0])


if __name__ == "__main__":
    N, H, W, C = 2, 16, 16, 8       # num_features=8, spatial 16x16, batch 2
    reduction = 4
    Cr = C // reduction

    key = jax.random.PRNGKey(0)
    ks = jax.random.split(key, 11)
    p = {
        'w1':    0.1 * jax.random.normal(ks[0], (9, C, C), jnp.float32),
        'b1':    0.1 * jax.random.normal(ks[1], (1, C), jnp.float32),
        'ca_w1': 0.1 * jax.random.normal(ks[2], (C, Cr), jnp.float32),
        'ca_b1': 0.1 * jax.random.normal(ks[3], (1, Cr), jnp.float32),
        'ca_w2': 0.1 * jax.random.normal(ks[4], (Cr, C), jnp.float32),
        'ca_b2': 0.1 * jax.random.normal(ks[5], (1, C), jnp.float32),
        'sa1_w': 0.1 * jax.random.normal(ks[6], (98,), jnp.float32),
        'sa2_w': 0.1 * jax.random.normal(ks[7], (98,), jnp.float32),
        'w2':    0.1 * jax.random.normal(ks[8], (9, C, C), jnp.float32),
        'b2':    0.1 * jax.random.normal(ks[9], (1, C), jnp.float32),
    }
    x = jax.random.normal(ks[10], (N, H, W, C), jnp.float32)

    out = jax.block_until_ready(corss_sr_forward(x, p))

    ref = reference_forward(x, p)
    err = float(jnp.max(jnp.abs(out - ref)))
    if not err < 1e-3:
        raise AssertionError(f"kernel/reference mismatch: max abs err = {err}")
    print("KERNEL_OK")
</pallas_src>

<mosaic_0001>
module attributes {stable_mosaic.version = 11 : i64} {
  func.func @corss_sr_kernel(%arg0: i32, %arg1: memref<1x18x128xf32, #tpu.memory_space<vmem>>, %arg2: memref<384x128xf32, #tpu.memory_space<vmem>>, %arg3: memref<1x128xf32, #tpu.memory_space<vmem>>, %arg4: memref<8x2xf32, #tpu.memory_space<vmem>>, %arg5: memref<1x2xf32, #tpu.memory_space<vmem>>, %arg6: memref<2x8xf32, #tpu.memory_space<vmem>>, %arg7: memref<1x8xf32, #tpu.memory_space<vmem>>, %arg8: memref<224x16xf32, #tpu.memory_space<vmem>>, %arg9: memref<224x16xf32, #tpu.memory_space<vmem>>, %arg10: memref<16x128xf32, #tpu.memory_space<vmem>>, %arg11: memref<384x128xf32, #tpu.memory_space<vmem>>, %arg12: memref<1x128xf32, #tpu.memory_space<vmem>>, %arg13: memref<1x16x128xf32, #tpu.memory_space<vmem>>) attributes {dimension_semantics = [#tpu.dimension_semantics<parallel>], iteration_bounds = array<i64: 2>, scalar_prefetch = 0 : i64, scratch_operands = 0 : i64, tpu.core_type = #tpu.core_type<tc>, window_params = [{transform_indices = @transform_0, window_bounds = array<i64: 1, 18, 128>}, {pipeline_mode = #tpu.pipeline_mode<synchronous>, transform_indices = @transform_1, window_bounds = array<i64: 384, 128>}, {pipeline_mode = #tpu.pipeline_mode<synchronous>, transform_indices = @transform_2, window_bounds = array<i64: 1, 128>}, {pipeline_mode = #tpu.pipeline_mode<synchronous>, transform_indices = @transform_3, window_bounds = array<i64: 8, 2>}, {pipeline_mode = #tpu.pipeline_mode<synchronous>, transform_indices = @transform_4, window_bounds = array<i64: 1, 2>}, {pipeline_mode = #tpu.pipeline_mode<synchronous>, transform_indices = @transform_5, window_bounds = array<i64: 2, 8>}, {pipeline_mode = #tpu.pipeline_mode<synchronous>, transform_indices = @transform_6, window_bounds = array<i64: 1, 8>}, {pipeline_mode = #tpu.pipeline_mode<synchronous>, transform_indices = @transform_7, window_bounds = array<i64: 224, 16>}, {pipeline_mode = #tpu.pipeline_mode<synchronous>, transform_indices = @transform_8, window_bounds = array<i64: 224, 16>}, {pipeline_mode = #tpu.pipeline_mode<synchronous>, transform_indices = @transform_9, window_bounds = array<i64: 16, 128>}, {pipeline_mode = #tpu.pipeline_mode<synchronous>, transform_indices = @transform_10, window_bounds = array<i64: 384, 128>}, {pipeline_mode = #tpu.pipeline_mode<synchronous>, transform_indices = @transform_11, window_bounds = array<i64: 1, 128>}, {transform_indices = @transform_12, window_bounds = array<i64: 1, 16, 128>}]} {
    %c0 = arith.constant 0 : index
    %c0_0 = arith.constant 0 : index
    %c0_1 = arith.constant 0 : index
    %0 = vector.load %arg1[%c0, %c0_0, %c0_1] : memref<1x18x128xf32, #tpu.memory_space<vmem>>, vector<1x18x128xf32>
    %1 = vector.extract_strided_slice %0 {offsets = [0, 0, 0], sizes = [1, 16, 128], strides = [1, 1, 1]} : vector<1x18x128xf32> to vector<1x16x128xf32>
    %2 = vector.extract_strided_slice %0 {offsets = [0, 1, 0], sizes = [1, 16, 128], strides = [1, 1, 1]} : vector<1x18x128xf32> to vector<1x16x128xf32>
    %3 = vector.extract_strided_slice %0 {offsets = [0, 2, 0], sizes = [1, 16, 128], strides = [1, 1, 1]} : vector<1x18x128xf32> to vector<1x16x128xf32>
    %4 = tpu.concatenate %1, %2, %3 in 2 : vector<1x16x128xf32>, vector<1x16x128xf32>, vector<1x16x128xf32> -> vector<1x16x384xf32>
    %5 = vector.shape_cast %4 : vector<1x16x384xf32> to vector<16x384xf32>
    %c0_2 = arith.constant 0 : index
    %c0_3 = arith.constant 0 : index
    %6 = vector.load %arg2[%c0_2, %c0_3] : memref<384x128xf32, #tpu.memory_space<vmem>>, vector<384x128xf32>
    %cst = arith.constant dense<0.000000e+00> : vector<16x128xf32>
    %7 = tpu.matmul %5, %6, %cst {dimension_numbers = #tpu.dot_dimension_numbers<[1], [0], [0], [1], [0, 0, 1, 1], [], []>} : vector<16x384xf32>, vector<384x128xf32>, vector<16x128xf32> -> vector<16x128xf32>
    %c0_4 = arith.constant 0 : index
    %c0_5 = arith.constant 0 : index
    %8 = vector.load %arg3[%c0_4, %c0_5] : memref<1x128xf32, #tpu.memory_space<vmem>>, vector<1x128xf32>
    %9 = vector.broadcast %8 : vector<1x128xf32> to vector<16x128xf32>
    %10 = arith.addf %7, %9 : vector<16x128xf32>
    %cst_6 = arith.constant 0.000000e+00 : f32
    %11 = vector.broadcast %cst_6 : f32 to vector<16x128xf32>
    %12 = arith.maximumf %10, %11 : vector<16x128xf32>
    %13 = vector.shape_cast %12 : vector<16x128xf32> to vector<1x16x128xf32>
    %cst_7 = arith.constant dense<0.000000e+00> : vector<1x128xf32>
    %14 = vector.multi_reduction <add>, %13, %cst_7 [1] : vector<1x16x128xf32> to vector<1x128xf32>
    %cst_8 = arith.constant 1.600000e+01 : f32
    %15 = vector.broadcast %cst_8 : f32 to vector<1x128xf32>
    %16 = arith.divf %14, %15 : vector<1x128xf32>
    %17 = vector.shape_cast %16 : vector<1x128xf32> to vector<1x16x8xf32>
    %cst_9 = arith.constant dense<0.000000e+00> : vector<1x8xf32>
    %18 = vector.multi_reduction <add>, %17, %cst_9 [1] : vector<1x16x8xf32> to vector<1x8xf32>
    %cst_10 = arith.constant 1.600000e+01 : f32
    %19 = vector.broadcast %cst_10 : f32 to vector<1x8xf32>
    %20 = arith.divf %18, %19 : vector<1x8xf32>
    %c0_11 = arith.constant 0 : index
    %c0_12 = arith.constant 0 : index
    %21 = vector.load %arg4[%c0_11, %c0_12] : memref<8x2xf32, #tpu.memory_space<vmem>>, vector<8x2xf32>
    %cst_13 = arith.constant dense<0.000000e+00> : vector<1x2xf32>
    %22 = tpu.matmul %20, %21, %cst_13 {dimension_numbers = #tpu.dot_dimension_numbers<[1], [0], [0], [1], [0, 0, 1, 1], [], []>} : vector<1x8xf32>, vector<8x2xf32>, vector<1x2xf32> -> vector<1x2xf32>
    %c0_14 = arith.constant 0 : index
    %c0_15 = arith.constant 0 : index
    %23 = vector.load %arg5[%c0_14, %c0_15] : memref<1x2xf32, #tpu.memory_space<vmem>>, vector<1x2xf32>
    %24 = arith.addf %22, %23 : vector<1x2xf32>
    %cst_16 = arith.constant 0.000000e+00 : f32
    %25 = vector.broadcast %cst_16 : f32 to vector<1x2xf32>
    %26 = arith.maximumf %24, %25 : vector<1x2xf32>
    %c0_17 = arith.constant 0 : index
    %c0_18 = arith.constant 0 : index
    %27 = vector.load %arg6[%c0_17, %c0_18] : memref<2x8xf32, #tpu.memory_space<vmem>>, vector<2x8xf32>
    %cst_19 = arith.constant dense<0.000000e+00> : vector<1x8xf32>
    %28 = tpu.matmul %26, %27, %cst_19 {dimension_numbers = #tpu.dot_dimension_numbers<[1], [0], [0], [1], [0, 0, 1, 1], [], []>} : vector<1x2xf32>, vector<2x8xf32>, vector<1x8xf32> -> vector<1x8xf32>
    %c0_20 = arith.constant 0 : index
    %c0_21 = arith.constant 0 : index
    %29 = vector.load %arg7[%c0_20, %c0_21] : memref<1x8xf32, #tpu.memory_space<vmem>>, vector<1x8xf32>
    %30 = arith.addf %28, %29 : vector<1x8xf32>
    %31 = arith.negf %30 : vector<1x8xf32>
    %32 = math.exp %31 : vector<1x8xf32>
    %cst_22 = arith.constant 1.000000e+00 : f32
    %33 = vector.broadcast %cst_22 : f32 to vector<1x8xf32>
    %34 = arith.addf %33, %32 : vector<1x8xf32>
    %35 = arith.divf %33, %34 : vector<1x8xf32>
    %36 = vector.shape_cast %35 : vector<1x8xf32> to vector<1x1x8xf32>
    %37 = vector.shape_cast %36 : vector<1x1x8xf32> to vector<1x1x8xf32>
    %38 = vector.broadcast %37 : vector<1x1x8xf32> to vector<1x16x8xf32>
    %39 = vector.shape_cast %38 : vector<1x16x8xf32> to vector<1x1x128xf32>
    %40 = vector.broadcast %39 : vector<1x1x128xf32> to vector<1x16x128xf32>
    %41 = arith.mulf %13, %40 : vector<1x16x128xf32>
    %42 = vector.shape_cast %13 : vector<1x16x128xf32> to vector<1x16x16x8xf32>
    %cst_23 = arith.constant dense<0.000000e+00> : vector<1x16x16xf32>
    %43 = vector.multi_reduction <add>, %42, %cst_23 [3] : vector<1x16x16x8xf32> to vector<1x16x16xf32>
    %cst_24 = arith.constant 8.000000e+00 : f32
    %44 = vector.broadcast %cst_24 : f32 to vector<1x16x16xf32>
    %45 = arith.divf %43, %44 : vector<1x16x16xf32>
    %cst_25 = arith.constant dense<0xFF800000> : vector<1x16x16xf32>
    %46 = vector.multi_reduction <maximumf>, %42, %cst_25 [3] : vector<1x16x16x8xf32> to vector<1x16x16xf32>
    %47 = tpu.concatenate %45, %46 in 2 : vector<1x16x16xf32>, vector<1x16x16xf32> -> vector<1x16x32xf32>
    %cst_26 = arith.constant 0.000000e+00 : f32
    %48 = vector.broadcast %cst_26 : f32 to vector<1x3x32xf32>
    %49 = tpu.concatenate %48, %47, %48 in 1 : vector<1x3x32xf32>, vector<1x16x32xf32>, vector<1x3x32xf32> -> vector<1x22x32xf32>
    %50 = vector.extract_strided_slice %49 {offsets = [0, 0, 0], sizes = [1, 16, 32], strides = [1, 1, 1]} : vector<1x22x32xf32> to vector<1x16x32xf32>
    %51 = vector.extract_strided_slice %49 {offsets = [0, 1, 0], sizes = [1, 16, 32], strides = [1, 1, 1]} : vector<1x22x32xf32> to vector<1x16x32xf32>
    %52 = vector.extract_strided_slice %49 {offsets = [0, 2, 0], sizes = [1, 16, 32], strides = [1, 1, 1]} : vector<1x22x32xf32> to vector<1x16x32xf32>
    %53 = vector.extract_strided_slice %49 {offsets = [0, 3, 0], sizes = [1, 16, 32], strides = [1, 1, 1]} : vector<1x22x32xf32> to vector<1x16x32xf32>
    %54 = vector.extract_strided_slice %49 {offsets = [0, 4, 0], sizes = [1, 16, 32], strides = [1, 1, 1]} : vector<1x22x32xf32> to vector<1x16x32xf32>
    %55 = vector.extract_strided_slice %49 {offsets = [0, 5, 0], sizes = [1, 16, 32], strides = [1, 1, 1]} : vector<1x22x32xf32> to vector<1x16x32xf32>
    %56 = vector.extract_strided_slice %49 {offsets = [0, 6, 0], sizes = [1, 16, 32], strides = [1, 1, 1]} : vector<1x22x32xf32> to vector<1x16x32xf32>
    %57 = tpu.concatenate %50, %51, %52, %53, %54, %55, %56 in 2 : vector<1x16x32xf32>, vector<1x16x32xf32>, vector<1x16x32xf32>, vector<1x16x32xf32>, vector<1x16x32xf32>, vector<1x16x32xf32>, vector<1x16x32xf32> -> vector<1x16x224xf32>
    %58 = vector.shape_cast %57 : vector<1x16x224xf32> to vector<16x224xf32>
    %c0_27 = arith.constant 0 : index
    %c0_28 = arith.constant 0 : index
    %59 = vector.load %arg8[%c0_27, %c0_28] : memref<224x16xf32, #tpu.memory_space<vmem>>, vector<224x16xf32>
    %cst_29 = arith.constant dense<0.000000e+00> : vector<16x16xf32>
    %60 = tpu.matmul %58, %59, %cst_29 {dimension_numbers = #tpu.dot_dimension_numbers<[1], [0], [0], [1], [0, 0, 1, 1], [], []>} : vector<16x224xf32>, vector<224x16xf32>, vector<16x16xf32> -> vector<16x16xf32>
    %61 = arith.negf %60 : vector<16x16xf32>
    %62 = math.exp %61 : vector<16x16xf32>
    %cst_30 = arith.constant 1.000000e+00 : f32
    %63 = vector.broadcast %cst_30 : f32 to vector<16x16xf32>
    %64 = arith.addf %63, %62 : vector<16x16xf32>
    %65 = arith.divf %63, %64 : vector<16x16xf32>
    %c0_31 = arith.constant 0 : index
    %c0_32 = arith.constant 0 : index
    %66 = vector.load %arg10[%c0_31, %c0_32] : memref<16x128xf32, #tpu.memory_space<vmem>>, vector<16x128xf32>
    %cst_33 = arith.constant dense<0.000000e+00> : vector<16x128xf32>
    %67 = tpu.matmul %65, %66, %cst_33 {dimension_numbers = #tpu.dot_dimension_numbers<[1], [0], [0], [1], [0, 0, 1, 1], [], []>} : vector<16x16xf32>, vector<16x128xf32>, vector<16x128xf32> -> vector<16x128xf32>
    %68 = vector.shape_cast %67 : vector<16x128xf32> to vector<1x16x128xf32>
    %69 = arith.mulf %13, %68 : vector<1x16x128xf32>
    %70 = arith.addf %41, %41 : vector<1x16x128xf32>
    %71 = vector.shape_cast %70 : vector<1x16x128xf32> to vector<1x16x16x8xf32>
    %cst_34 = arith.constant dense<0.000000e+00> : vector<1x16x16xf32>
    %72 = vector.multi_reduction <add>, %71, %cst_34 [3] : vector<1x16x16x8xf32> to vector<1x16x16xf32>
    %cst_35 = arith.constant 8.000000e+00 : f32
    %73 = vector.broadcast %cst_35 : f32 to vector<1x16x16xf32>
    %74 = arith.divf %72, %73 : vector<1x16x16xf32>
    %cst_36 = arith.constant dense<0xFF800000> : vector<1x16x16xf32>
    %75 = vector.multi_reduction <maximumf>, %71, %cst_36 [3] : vector<1x16x16x8xf32> to vector<1x16x16xf32>
    %76 = tpu.concatenate %74, %75 in 2 : vector<1x16x16xf32>, vector<1x16x16xf32> -> vector<1x16x32xf32>
    %cst_37 = arith.constant 0.000000e+00 : f32
    %77 = vector.broadcast %cst_37 : f32 to vector<1x3x32xf32>
    %78 = tpu.concatenate %77, %76, %77 in 1 : vector<1x3x32xf32>, vector<1x16x32xf32>, vector<1x3x32xf32> -> vector<1x22x32xf32>
    %79 = vector.extract_strided_slice %78 {offsets = [0, 0, 0], sizes = [1, 16, 32], strides = [1, 1, 1]} : vector<1x22x32xf32> to vector<1x16x32xf32>
    %80 = vector.extract_strided_slice %78 {offsets = [0, 1, 0], sizes = [1, 16, 32], strides = [1, 1, 1]} : vector<1x22x32xf32> to vector<1x16x32xf32>
    %81 = vector.extract_strided_slice %78 {offsets = [0, 2, 0], sizes = [1, 16, 32], strides = [1, 1, 1]} : vector<1x22x32xf32> to vector<1x16x32xf32>
    %82 = vector.extract_strided_slice %78 {offsets = [0, 3, 0], sizes = [1, 16, 32], strides = [1, 1, 1]} : vector<1x22x32xf32> to vector<1x16x32xf32>
    %83 = vector.extract_strided_slice %78 {offsets = [0, 4, 0], sizes = [1, 16, 32], strides = [1, 1, 1]} : vector<1x22x32xf32> to vector<1x16x32xf32>
    %84 = vector.extract_strided_slice %78 {offsets = [0, 5, 0], sizes = [1, 16, 32], strides = [1, 1, 1]} : vector<1x22x32xf32> to vector<1x16x32xf32>
    %85 = vector.extract_strided_slice %78 {offsets = [0, 6, 0], sizes = [1, 16, 32], strides = [1, 1, 1]} : vector<1x22x32xf32> to vector<1x16x32xf32>
    %86 = tpu.concatenate %79, %80, %81, %82, %83, %84, %85 in 2 : vector<1x16x32xf32>, vector<1x16x32xf32>, vector<1x16x32xf32>, vector<1x16x32xf32>, vector<1x16x32xf32>, vector<1x16x32xf32>, vector<1x16x32xf32> -> vector<1x16x224xf32>
    %87 = vector.shape_cast %86 : vector<1x16x224xf32> to vector<16x224xf32>
    %c0_38 = arith.constant 0 : index
    %c0_39 = arith.constant 0 : index
    %88 = vector.load %arg8[%c0_38, %c0_39] : memref<224x16xf32, #tpu.memory_space<vmem>>, vector<224x16xf32>
    %cst_40 = arith.constant dense<0.000000e+00> : vector<16x16xf32>
    %89 = tpu.matmul %87, %88, %cst_40 {dimension_numbers = #tpu.dot_dimension_numbers<[1], [0], [0], [1], [0, 0, 1, 1], [], []>} : vector<16x224xf32>, vector<224x16xf32>, vector<16x16xf32> -> vector<16x16xf32>
    %90 = arith.negf %89 : vector<16x16xf32>
    %91 = math.exp %90 : vector<16x16xf32>
    %cst_41 = arith.constant 1.000000e+00 : f32
    %92 = vector.broadcast %cst_41 : f32 to vector<16x16xf32>
    %93 = arith.addf %92, %91 : vector<16x16xf32>
    %94 = arith.divf %92, %93 : vector<16x16xf32>
    %c0_42 = arith.constant 0 : index
    %c0_43 = arith.constant 0 : index
    %95 = vector.load %arg10[%c0_42, %c0_43] : memref<16x128xf32, #tpu.memory_space<vmem>>, vector<16x128xf32>
    %cst_44 = arith.constant dense<0.000000e+00> : vector<16x128xf32>
    %96 = tpu.matmul %94, %95, %cst_44 {dimension_numbers = #tpu.dot_dimension_numbers<[1], [0], [0], [1], [0, 0, 1, 1], [], []>} : vector<16x16xf32>, vector<16x128xf32>, vector<16x128xf32> -> vector<16x128xf32>
    %97 = vector.shape_cast %96 : vector<16x128xf32> to vector<1x16x128xf32>
    %98 = arith.mulf %70, %97 : vector<1x16x128xf32>
    %99 = arith.addf %69, %69 : vector<1x16x128xf32>
    %100 = vector.shape_cast %99 : vector<1x16x128xf32> to vector<1x16x16x8xf32>
    %cst_45 = arith.constant dense<0.000000e+00> : vector<1x16x16xf32>
    %101 = vector.multi_reduction <add>, %100, %cst_45 [3] : vector<1x16x16x8xf32> to vector<1x16x16xf32>
    %cst_46 = arith.constant 8.000000e+00 : f32
    %102 = vector.broadcast %cst_46 : f32 to vector<1x16x16xf32>
    %103 = arith.divf %101, %102 : vector<1x16x16xf32>
    %cst_47 = arith.constant dense<0xFF800000> : vector<1x16x16xf32>
    %104 = vector.multi_reduction <maximumf>, %100, %cst_47 [3] : vector<1x16x16x8xf32> to vector<1x16x16xf32>
    %105 = tpu.concatenate %103, %104 in 2 : vector<1x16x16xf32>, vector<1x16x16xf32> -> vector<1x16x32xf32>
    %cst_48 = arith.constant 0.000000e+00 : f32
    %106 = vector.broadcast %cst_48 : f32 to vector<1x3x32xf32>
    %107 = tpu.concatenate %106, %105, %106 in 1 : vector<1x3x32xf32>, vector<1x16x32xf32>, vector<1x3x32xf32> -> vector<1x22x32xf32>
    %108 = vector.extract_strided_slice %107 {offsets = [0, 0, 0], sizes = [1, 16, 32], strides = [1, 1, 1]} : vector<1x22x32xf32> to vector<1x16x32xf32>
    %109 = vector.extract_strided_slice %107 {offsets = [0, 1, 0], sizes = [1, 16, 32], strides = [1, 1, 1]} : vector<1x22x32xf32> to vector<1x16x32xf32>
    %110 = vector.extract_strided_slice %107 {offsets = [0, 2, 0], sizes = [1, 16, 32], strides = [1, 1, 1]} : vector<1x22x32xf32> to vector<1x16x32xf32>
    %111 = vector.extract_strided_slice %107 {offsets = [0, 3, 0], sizes = [1, 16, 32], strides = [1, 1, 1]} : vector<1x22x32xf32> to vector<1x16x32xf32>
    %112 = vector.extract_strided_slice %107 {offsets = [0, 4, 0], sizes = [1, 16, 32], strides = [1, 1, 1]} : vector<1x22x32xf32> to vector<1x16x32xf32>
    %113 = vector.extract_strided_slice %107 {offsets = [0, 5, 0], sizes = [1, 16, 32], strides = [1, 1, 1]} : vector<1x22x32xf32> to vector<1x16x32xf32>
    %114 = vector.extract_strided_slice %107 {offsets = [0, 6, 0], sizes = [1, 16, 32], strides = [1, 1, 1]} : vector<1x22x32xf32> to vector<1x16x32xf32>
    %115 = tpu.concatenate %108, %109, %110, %111, %112, %113, %114 in 2 : vector<1x16x32xf32>, vector<1x16x32xf32>, vector<1x16x32xf32>, vector<1x16x32xf32>, vector<1x16x32xf32>, vector<1x16x32xf32>, vector<1x16x32xf32> -> vector<1x16x224xf32>
    %116 = vector.shape_cast %115 : vector<1x16x224xf32> to vector<16x224xf32>
    %c0_49 = arith.constant 0 : index
    %c0_50 = arith.constant 0 : index
    %117 = vector.load %arg9[%c0_49, %c0_50] : memref<224x16xf32, #tpu.memory_space<vmem>>, vector<224x16xf32>
    %cst_51 = arith.constant dense<0.000000e+00> : vector<16x16xf32>
    %118 = tpu.matmul %116, %117, %cst_51 {dimension_numbers = #tpu.dot_dimension_numbers<[1], [0], [0], [1], [0, 0, 1, 1], [], []>} : vector<16x224xf32>, vector<224x16xf32>, vector<16x16xf32> -> vector<16x16xf32>
    %119 = arith.negf %118 : vector<16x16xf32>
    %120 = math.exp %119 : vector<16x16xf32>
    %cst_52 = arith.constant 1.000000e+00 : f32
    %121 = vector.broadcast %cst_52 : f32 to vector<16x16xf32>
    %122 = arith.addf %121, %120 : vector<16x16xf32>
    %123 = arith.divf %121, %122 : vector<16x16xf32>
    %c0_53 = arith.constant 0 : index
    %c0_54 = arith.constant 0 : index
    %124 = vector.load %arg10[%c0_53, %c0_54] : memref<16x128xf32, #tpu.memory_space<vmem>>, vector<16x128xf32>
    %cst_55 = arith.constant dense<0.000000e+00> : vector<16x128xf32>
    %125 = tpu.matmul %123, %124, %cst_55 {dimension_numbers = #tpu.dot_dimension_numbers<[1], [0], [0], [1], [0, 0, 1, 1], [], []>} : vector<16x16xf32>, vector<16x128xf32>, vector<16x128xf32> -> vector<16x128xf32>
    %126 = vector.shape_cast %125 : vector<16x128xf32> to vector<1x16x128xf32>
    %127 = arith.mulf %99, %126 : vector<1x16x128xf32>
    %128 = arith.addf %98, %127 : vector<1x16x128xf32>
    %cst_56 = arith.constant 0.000000e+00 : f32
    %129 = vector.broadcast %cst_56 : f32 to vector<1x1x128xf32>
    %130 = tpu.concatenate %129, %128, %129 in 1 : vector<1x1x128xf32>, vector<1x16x128xf32>, vector<1x1x128xf32> -> vector<1x18x128xf32>
    %131 = vector.extract_strided_slice %130 {offsets = [0, 0, 0], sizes = [1, 16, 128], strides = [1, 1, 1]} : vector<1x18x128xf32> to vector<1x16x128xf32>
    %132 = vector.extract_strided_slice %130 {offsets = [0, 1, 0], sizes = [1, 16, 128], strides = [1, 1, 1]} : vector<1x18x128xf32> to vector<1x16x128xf32>
    %133 = vector.extract_strided_slice %130 {offsets = [0, 2, 0], sizes = [1, 16, 128], strides = [1, 1, 1]} : vector<1x18x128xf32> to vector<1x16x128xf32>
    %134 = tpu.concatenate %131, %132, %133 in 2 : vector<1x16x128xf32>, vector<1x16x128xf32>, vector<1x16x128xf32> -> vector<1x16x384xf32>
    %135 = vector.shape_cast %134 : vector<1x16x384xf32> to vector<16x384xf32>
    %c0_57 = arith.constant 0 : index
    %c0_58 = arith.constant 0 : index
    %136 = vector.load %arg11[%c0_57, %c0_58] : memref<384x128xf32, #tpu.memory_space<vmem>>, vector<384x128xf32>
    %cst_59 = arith.constant dense<0.000000e+00> : vector<16x128xf32>
    %137 = tpu.matmul %135, %136, %cst_59 {dimension_numbers = #tpu.dot_dimension_numbers<[1], [0], [0], [1], [0, 0, 1, 1], [], []>} : vector<16x384xf32>, vector<384x128xf32>, vector<16x128xf32> -> vector<16x128xf32>
    %c0_60 = arith.constant 0 : index
    %c0_61 = arith.constant 0 : index
    %138 = vector.load %arg12[%c0_60, %c0_61] : memref<1x128xf32, #tpu.memory_space<vmem>>, vector<1x128xf32>
    %139 = vector.broadcast %138 : vector<1x128xf32> to vector<16x128xf32>
    %140 = arith.addf %137, %139 : vector<16x128xf32>
    %141 = vector.shape_cast %140 : vector<16x128xf32> to vector<1x16x128xf32>
    %c0_62 = arith.constant 0 : index
    %c0_63 = arith.constant 0 : index
    %c0_64 = arith.constant 0 : index
    %142 = vector.load %arg13[%c0_62, %c0_63, %c0_64] : memref<1x16x128xf32, #tpu.memory_space<vmem>>, vector<1x16x128xf32>
    tpu.vector_store %arg13[%c0_62, %c0_63, %c0_64], %141 {strides = array<i32>} : memref<1x16x128xf32, #tpu.memory_space<vmem>>, vector<1x16x128xf32>,
    return
  }
  func.func @transform_0(%arg0: i32) -> (i32, i32, i32) {
    %c0_i32 = arith.constant 0 : i32
    %c0_i32_0 = arith.constant 0 : i32
    %c0_i32_1 = arith.constant 0 : i32
    return %arg0, %c0_i32, %c0_i32_0 : i32, i32, i32
  }
  func.func @transform_1(%arg0: i32) -> (i32, i32) {
    %c0_i32 = arith.constant 0 : i32
    %c0_i32_0 = arith.constant 0 : i32
    %c0_i32_1 = arith.constant 0 : i32
    return %c0_i32, %c0_i32_0 : i32, i32
  }
  func.func @transform_2(%arg0: i32) -> (i32, i32) {
    %c0_i32 = arith.constant 0 : i32
    %c0_i32_0 = arith.constant 0 : i32
    %c0_i32_1 = arith.constant 0 : i32
    return %c0_i32, %c0_i32_0 : i32, i32
  }
  func.func @transform_3(%arg0: i32) -> (i32, i32) {
    %c0_i32 = arith.constant 0 : i32
    %c0_i32_0 = arith.constant 0 : i32
    %c0_i32_1 = arith.constant 0 : i32
    return %c0_i32, %c0_i32_0 : i32, i32
  }
  func.func @transform_4(%arg0: i32) -> (i32, i32) {
    %c0_i32 = arith.constant 0 : i32
    %c0_i32_0 = arith.constant 0 : i32
    %c0_i32_1 = arith.constant 0 : i32
    return %c0_i32, %c0_i32_0 : i32, i32
  }
  func.func @transform_5(%arg0: i32) -> (i32, i32) {
    %c0_i32 = arith.constant 0 : i32
    %c0_i32_0 = arith.constant 0 : i32
    %c0_i32_1 = arith.constant 0 : i32
    return %c0_i32, %c0_i32_0 : i32, i32
  }
  func.func @transform_6(%arg0: i32) -> (i32, i32) {
    %c0_i32 = arith.constant 0 : i32
    %c0_i32_0 = arith.constant 0 : i32
    %c0_i32_1 = arith.constant 0 : i32
    return %c0_i32, %c0_i32_0 : i32, i32
  }
  func.func @transform_7(%arg0: i32) -> (i32, i32) {
    %c0_i32 = arith.constant 0 : i32
    %c0_i32_0 = arith.constant 0 : i32
    %c0_i32_1 = arith.constant 0 : i32
    return %c0_i32, %c0_i32_0 : i32, i32
  }
  func.func @transform_8(%arg0: i32) -> (i32, i32) {
    %c0_i32 = arith.constant 0 : i32
    %c0_i32_0 = arith.constant 0 : i32
    %c0_i32_1 = arith.constant 0 : i32
    return %c0_i32, %c0_i32_0 : i32, i32
  }
  func.func @transform_9(%arg0: i32) -> (i32, i32) {
    %c0_i32 = arith.constant 0 : i32
    %c0_i32_0 = arith.constant 0 : i32
    %c0_i32_1 = arith.constant 0 : i32
    return %c0_i32, %c0_i32_0 : i32, i32
  }
  func.func @transform_10(%arg0: i32) -> (i32, i32) {
    %c0_i32 = arith.constant 0 : i32
    %c0_i32_0 = arith.constant 0 : i32
    %c0_i32_1 = arith.constant 0 : i32
    return %c0_i32, %c0_i32_0 : i32, i32
  }
  func.func @transform_11(%arg0: i32) -> (i32, i32) {
    %c0_i32 = arith.constant 0 : i32
    %c0_i32_0 = arith.constant 0 : i32
    %c0_i32_1 = arith.constant 0 : i32
    return %c0_i32, %c0_i32_0 : i32, i32
  }
  func.func @transform_12(%arg0: i32) -> (i32, i32, i32) {
    %c0_i32 = arith.constant 0 : i32
    %c0_i32_0 = arith.constant 0 : i32
    %c0_i32_1 = arith.constant 0 : i32
    return %arg0, %c0_i32, %c0_i32_0 : i32, i32, i32
  }
}

</mosaic_0001>

<bundles_post_ra>
// kernel: tpu_custom_call.1
= control target key start
LH: loop header
LB: loop body
LE: loop exit
PB: predicated region body
PF: predicated region fallthrough
CT: control target
= control target key end

     0   :  { %s9836_s0 = inlined_call_operand.vmem [shape: f32[2,18,128], index: 0, kind: input, shape index: {}]   ;;  %s9837_s1 = inlined_call_operand.vmem [shape: f32[384,128], index: 1, kind: input, shape index: {}]   ;;  %s9838_s2 = inlined_call_operand.vmem [shape: f32[1,128], index: 2, kind: input, shape index: {}]   ;;  %s9839_s3 = inlined_call_operand.vmem [shape: f32[8,2], index: 3, kind: input, shape index: {}]   ;;  %s9840_s4 = inlined_call_operand.vmem [shape: f32[1,2], index: 4, kind: input, shape index: {}]   ;;  %s9841_s5 = inlined_call_operand.vmem [shape: f32[2,8], index: 5, kind: input, shape index: {}]   ;;  %s9842_s6 = inlined_call_operand.vmem [shape: f32[1,8], index: 6, kind: input, shape index: {}]   ;;  %s9843_s7 = inlined_call_operand.vmem [shape: f32[224,16], index: 7, kind: input, shape index: {}]   ;;  %s9844_s8 = inlined_call_operand.vmem [shape: f32[224,16], index: 8, kind: input, shape index: {}]   ;;  %s9845_s9 = inlined_call_operand.vmem [shape: f32[16,128], index: 9, kind: input, shape index: {}]   ;;  %s9846_s10 = inlined_call_operand.hbm [shape: f32[384,128], index: 10, kind: input, shape index: {}]   ;;  %s9847_s11 = inlined_call_operand.vmem [shape: f32[1,128], index: 11, kind: input, shape index: {}]   ;;  %s9848_s12 = inlined_call_operand.hbm [shape: f32[2,16,128], index: 12, kind: output, shape index: {}]  }
   0x1   :  { %9934 = sst [smem:[#allocation28_spill]] %s9836_s0 }
   0x2   :  { %9935 = sst [smem:[#allocation29_spill]] %s9837_s1 }
   0x3   :  { %9936 = sst [smem:[#allocation30_spill]] %s9838_s2 }
   0x4   :  { %9937 = sst [smem:[#allocation31_spill]] %s9846_s10 }
   0x5   :  { %17 = vsyncpa [#allocation3], 0 }
   0x6   :  { %18 = vsyncpa [#allocation4], 0 }
   0x7   :  { %20 = vsyncpa [#allocation4 + $0x1], 0  ;;  %s6893_s21 = smov 0   ;;  %s6895_s22 = smov 0  }
   0x8   :  { %s6897_s23 = smov 0   ;;  %s6899_s24 = smov 0  }
   0x9 LB: > { %9938 = sst [smem:[#allocation8_spill]] %s6797_s23  ;;  %s6914_s25 = sadd.s32 4294967295, %s6801_s24   ;;  %s6801_s24 = sphi %s6899_s24, %s10107_s24   ;;  %s6797_s23 = sphi %s6897_s23, %s10104_s23   ;;  %s6793_s22 = sphi %s6895_s22, %s10106_s22   ;;  %s6789_s21 = sphi %s6893_s21, %s10105_s21  }
   0xa   : > { %s6045_s26 = sadd.s32 4294967294, %s6801_s24   ;;  %s6918_s27 = sadd.s32 1, %s6801_s24  }
   0xb   : > { %s290_s28 = sadd.s32 1, %s6797_s23  ;;  %s287_s29 = ssub.s32 %s6801_s24, %s6918_s27 }
   0xc   : > { %p300_p0 = scmp.ne.s32.totalorder %s6797_s23, %s6793_s22  ;;  %p288_p1 = scmp.eq.s32.totalorder %s287_s29, 0 }
   0xd   : > { %p301_p2 = scmp.eq.s32.totalorder %s6914_s25, 1  ;;  %p306_p3 = scmp.ne.s32.totalorder %s6793_s22, %s6789_s21 }
   0xe   : > { %p307_p4 = scmp.eq.s32.totalorder %s6045_s26, 1  ;;  %p6046_p7 = scmp.ge.s32.totalorder %s6801_s24, 1 }
   0xf   : > { %s6929_s30 = scalar_select %p288_p1, %s6797_s23, %s290_s28  }
  0x10   : > { %p6931_p5 = por %p301_p2, %p300_p0  ;;  %p6935_p6 = por %p307_p4, %p306_p3 }
  0x11   : > { %9939 = sst [smem:[#allocation9_spill]] %s6929_s30  ;;  %p314_p8 = scmp.lt.s32.totalorder %s6801_s24, 3 }
  0x12   : > { %s9940_s13 = scalar_select %p6931_p5, 1, 0 }
  0x13   : > { %s9941_s14 = scalar_select %p6935_p6, 1, 0 }
  0x14   : > { %p9850_p9 = scmp.eq.s32.totalorder %s6914_s25, 0  ;;  %p6942_p10 = pnand %p6046_p7, %p314_p8 }
  0x15   : > { %s6803_s16 = smov [#allocation2]   ;;  %s9944_s10 = sld [smem:[#allocation31_spill]] }
  0x16   : > { %s9942_s15 = scalar_select %p6942_p10, 1, 0 }
  0x17   : > { %s353_s17 = sshll.u32 %s6803_s16, 4  ;;  %p6587_p11 = pneg %p6942_p10  ;;  %s354_s17 = int_to_ptr.vmem [resolvable:$true] %s353_s17 }
  0x19   : > { %p6950_p12 = pnand %p9850_p9, %p6587_p11 }
  0x1b   : > { %s6707_s26 = scalar_lea.hbm %s9944_s10, 6144  ;;  %p6709_p0 = pneg %p6950_p12 }
  0x1c   : > { %p6708_p13 = scmp.ne.s32.totalorder %s9944_s10, %s6707_s26  ;;  %p6714_p3 = scmp.lt.u32.totalorder %s6707_s26, %s9944_s10 }
  0x1e   : > { %p6710_p1 = pnand %p6709_p0, %p6708_p13 }
  0x20   : > { %p6711_p2 = pneg %p6710_p1 }
  0x22   : > { %p6716_p4 = pnand %p6714_p3, %p6711_p2 }
  0x24   : > { %6719 = shalt.err (!%p6716_p4)
}
  0x25   : > { %s6720_s23 = scalar_lea.vmem %s354_s17, 6144  ;;  %p6728_p9 = scmp.lt.s32.totalorder %s354_s17, %s354_s17 }
  0x26   : > { %p6721_p7 = scmp.ne.s32.totalorder %s354_s17, %s6720_s23  ;;  %p6729_p6 = scmp.lt.s32.totalorder %s6720_s23, %s6720_s23 }
  0x28   : > { %p6723_p8 = pnand %p6721_p7, %p6709_p0  ;;  %p6730_p5 = por %p6729_p6, %p6728_p9 }
  0x2a   : > { %p6724_p11 = pneg %p6723_p8 }
  0x2c   : > { %p6731_p10 = pnand %p6730_p5, %p6724_p11 }
  0x2e   : > { %6734 = shalt.err (!%p6731_p10)
}
  0x2f   : > { %s6804_s19 = smov 128   ;;  %s6805_s20 = smov 8  }
  0x30   : > { %6590 = dma.hbm_to_vmem [thread:$0]  (!%p6950_p12), %s9944_s10, 6144, %s354_s17, [#allocation3], %s6804_s19, %s6804_s19, %s6805_s20  }
  0x31   : > { %p9945_p13 = scmp.ne.s32.totalorder %s9942_s15, 0 }
  0x33   : > { %380 = sbr.rel (%p9945_p13) target bundleno = 2727 (0xaa7), region = 68 }
  0x3a   : > { %p9946_p1 = scmp.eq.s32.totalorder %s6914_s25, 0 }
  0x3c   : > { %6780 = dma.done.wait (%p9946_p1), [#allocation3], 6144   ;;  %p9947_p0 = pmov %p9946_p1 }
  0x3d   : > { %s9948_s1 = sld [smem:[#allocation29_spill]]  ;;  %p422_p5 = scmp.lt.s32.totalorder %s6914_s25, 1  ;;  %vm9901_vm0 = vcmask 1046528   ;;  %vm9900_vm1 = vcmask 1045504   ;;  %vm6822_vm2 = vmmov 0   ;;  %vm809_vm3 = vcmask 64512  }
  0x3e   : > { %6782 = vsyncadd (%p9947_p0), [#allocation3], 4294961152  ;;  %s9949_s0 = sld [smem:[#allocation28_spill]]  ;;  %s9950_s2 = sld [smem:[#allocation30_spill]]  ;;  %vm9903_vm4 = vcmask 1041408   ;;  %vm2027_vm5 = vcmask 130112  }
  0x3f   : > { %s7025_s20 = scalar_select %p422_p5, %s6914_s25, 1  ;;  %vm2164_vm6 = vcmask 1041409   ;;  %vm2166_vm7 = vcmask 1042434   ;;  %vm2168_vm8 = vcmask 1043459   ;;  %vm2229_vm9 = vcmask 261312  }
  0x40   : > { %s9861_s16 = smov 120   ;;  %s9863_s17 = smov 112   ;;  %vm9912_vm10 = vcmask 1044484   ;;  %vm9910_vm11 = vcmask 1045509   ;;  %vm9909_vm12 = vcmask 1046534   ;;  %vm9908_vm13 = vcmask 1047559  }
  0x41   : > { %s6580_s26 = smul.u32 24, %s7025_s20  ;;  %s9859_s15 = smov 104   ;;  %vm9911_vm14 = vcmask 130048   ;;  %vm9902_vm15 = vcmask 1042432  }
  0x42   : > { %s9877_s19 = smov 96   ;;  %s9867_s28 = smov 88  }
  0x43   : > { %v465_v0 = vld [vmem:[%s9948_s1 + $0x80] sm:$0xff]  ;;  %v466_v1 = vld [vmem:[%s9948_s1 + $0x88] sm:$0xff]  ;;  %v467_v9 = vld [vmem:[%s9948_s1 + $0x90] sm:$0xff]  ;;  %s9869_s29 = smov 80   ;;  %s9855_s23 = smov 72  }
  0x44   : > { %v449_v2 = vld [vmem:[%s9948_s1] sm:$0xff]  ;;  %v6314_v3 = vpack.c.bf16 %v466_v1, %v465_v0  ;;  %v450_v4 = vld [vmem:[%s9948_s1 + $0x8] sm:$0xff]  ;;  %v468_v10 = vld [vmem:[%s9948_s1 + $0x98] sm:$0xff]  ;;  %s7070_s10 = scalar_lea.vmem %s9949_s0, %s6580_s26  ;;  %s9879_s20 = smov 64  }
  0x45   : > { %v481_v5 = vld [vmem:[%s9948_s1 + $0x100] sm:$0xff]  ;;  %v482_v6 = vld [vmem:[%s9948_s1 + $0x108] sm:$0xff]  ;;  %v6316_v7 = vpack.c.bf16 %v450_v4, %v449_v2  ;;  %v451_v11 = vld [vmem:[%s9948_s1 + $0x10] sm:$0xff]  ;;  %v6318_v12 = vpack.c.bf16 %v468_v10, %v467_v9  ;;  %s9853_s30 = smov 56   ;;  %s9865_s26 = smov 48  }
  0x46   : > { %v6346_v8 = vpack.c.bf16 %v482_v6, %v481_v5  ;;  %6315 = vmatprep.subr.bf16.mxu0 %v6314_v3  ;;  %v452_v13 = vld [vmem:[%s9948_s1 + $0x18] sm:$0xff]  ;;  %v483_v14 = vld [vmem:[%s9948_s1 + $0x110] sm:$0xff]  ;;  %v469_v18 = vld [vmem:[%s9948_s1 + $0xa0] sm:$0xff]  ;;  %s9904_s18 = smov 32   ;;  %s9983_s0 = smov 112  }
  0x47   : > { %v484_v15 = vld [vmem:[%s9948_s1 + $0x118] sm:$0xff]  ;;  %6317 = vmatpush3.bf16.msra.mxu0 %v6316_v7  ;;  %v6320_v16 = vpack.c.bf16 %v452_v13, %v451_v11  ;;  %v470_v19 = vld [vmem:[%s9948_s1 + $0xa8] sm:$0xff]  ;;  %v453_v20 = vld [vmem:[%s9948_s1 + $0x20] sm:$0xff]  ;;  %p10101_p9 = scmp.ne.s32.totalorder %s9940_s13, 0 }
  0x48   : > { %6347 = vmatprep.subr.bf16.mxu1 %v6346_v8  ;;  %v6350_v17 = vpack.c.bf16 %v484_v15, %v483_v14  ;;  %6319 = vmatprep.subr.bf16.mxu0 %v6318_v12  ;;  %v6322_v21 = vpack.c.bf16 %v470_v19, %v469_v18  ;;  %v454_v22 = vld [vmem:[%s9948_s1 + $0x28] sm:$0xff]  ;;  %v485_v23 = vld [vmem:[%s9948_s1 + $0x120] sm:$0xff]  ;;  %v471_v26 = vld [vmem:[%s9948_s1 + $0xb0] sm:$0xff] }
  0x49   : > { %6349 = vmatpush3.bf16.msra.mxu1 %v6346_v8  ;;  %v486_v24 = vld [vmem:[%s9948_s1 + $0x128] sm:$0xff]  ;;  %v472_v27 = vld [vmem:[%s9948_s1 + $0xb8] sm:$0xff]  ;;  %v487_v28 = vld [vmem:[%s9948_s1 + $0x130] sm:$0xff]  ;;  %v6324_v30 = vpack.c.bf16 %v454_v22, %v453_v20 }
  0x4a   : > { %6351 = vmatprep.subr.bf16.mxu1 %v6350_v17  ;;  %v6354_v25 = vpack.c.bf16 %v486_v24, %v485_v23  ;;  %v488_v29 = vld [vmem:[%s9948_s1 + $0x138] sm:$0xff]  ;;  %v6326_v31 = vpack.c.bf16 %v472_v27, %v471_v26  ;;  %v455_v32 = vld [vmem:[%s9948_s1 + $0x30] sm:$0xff]  ;;  %v473_v35 = vld [vmem:[%s9948_s1 + $0xc0] sm:$0xff] }
  0x4b   : > { %6321 = vmatpush3.bf16.msra.mxu0 %v6320_v16  ;;  %v456_v33 = vld [vmem:[%s9948_s1 + $0x38] sm:$0xff]  ;;  %v6358_v34 = vpack.c.bf16 %v488_v29, %v487_v28  ;;  %v474_v36 = vld [vmem:[%s9948_s1 + $0xc8] sm:$0xff]  ;;  %v489_v37 = vld [vmem:[%s9948_s1 + $0x140] sm:$0xff] }
  0x4c   : > { %6323 = vmatprep.subr.bf16.mxu0 %v6322_v21  ;;  %v490_v38 = vld [vmem:[%s9948_s1 + $0x148] sm:$0xff]  ;;  %v6328_v39 = vpack.c.bf16 %v456_v33, %v455_v32  ;;  %v6330_v40 = vpack.c.bf16 %v474_v36, %v473_v35  ;;  %v457_v41 = vld [vmem:[%s9948_s1 + $0x40] sm:$0xff]  ;;  %v475_v44 = vld [vmem:[%s9948_s1 + $0xd0] sm:$0xff] }
  0x4d   : > { %6353 = vmatpush3.bf16.msra.mxu1 %v6350_v17  ;;  %v458_v42 = vld [vmem:[%s9948_s1 + $0x48] sm:$0xff]  ;;  %v6362_v43 = vpack.c.bf16 %v490_v38, %v489_v37  ;;  %v476_v45 = vld [vmem:[%s9948_s1 + $0xd8] sm:$0xff]  ;;  %v491_v46 = vld [vmem:[%s9948_s1 + $0x150] sm:$0xff] }
  0x4e   : > { %6355 = vmatprep.subr.bf16.mxu1 %v6354_v25  ;;  %v492_v47 = vld [vmem:[%s9948_s1 + $0x158] sm:$0xff]  ;;  %v427_v48 = vld [vmem:[%s7070_s10] sm:$0xff]  ;;  %v428_v49 = vld [vmem:[%s7070_s10 + $0x8] sm:$0xff]  ;;  %v6332_v50 = vpack.c.bf16 %v458_v42, %v457_v41  ;;  %v6334_v54 = vpack.c.bf16 %v476_v45, %v475_v44  ;;  %v9881_v45 = vmov 0.0  }
  0x4f   : > { %6325 = vmatpush3.bf16.msra.mxu0 %v6324_v30  ;;  %v434_v51 = vrot.slane %v427_v48, 1  ;;  %v435_v52 = vrot.slane %v428_v49, 1  ;;  %v442_v53 = vrot.slane %v427_v48, 2  ;;  %v459_v55 = vld [vmem:[%s9948_s1 + $0x50] sm:$0xff]  ;;  %v460_v56 = vld [vmem:[%s9948_s1 + $0x58] sm:$0xff]  ;;  %v443_v57 = vrot.slane %v428_v49, 2 }
  0x50   : > { %6327 = vmatprep.subr.bf16.mxu0 %v6326_v31  ;;  %v6366_v58 = vpack.c.bf16 %v492_v47, %v491_v46  ;;  %v477_v59 = vld [vmem:[%s9948_s1 + $0xe0] sm:$0xff]  ;;  %v478_v60 = vld [vmem:[%s9948_s1 + $0xe8] sm:$0xff]  ;;  %v6336_v1 = vpack.c.bf16 %v460_v56, %v459_v55  ;;  %v479_v6 = vld [vmem:[%s9948_s1 + $0xf0] sm:$0xff]  ;;  %v715_v55 = vlaneseq }
  0x51   : > { %6357 = vmatpush3.bf16.msra.mxu1 %v6354_v25  ;;  %v436_v61 = vsel %vm9901_vm0, %v434_v51, %v435_v52  ;;  %v493_v62 = vld [vmem:[%s9948_s1 + $0x160] sm:$0xff]  ;;  %v494_v63 = vld [vmem:[%s9948_s1 + $0x168] sm:$0xff]  ;;  %v444_v0 = vsel %vm9900_vm1, %v442_v53, %v443_v57  ;;  %v6338_v2 = vpack.c.bf16 %v478_v60, %v477_v59  ;;  %v480_v7 = vld [vmem:[%s9948_s1 + $0xf8] sm:$0xff]  ;;  %v6823_v53 = vmov 1983009808  }
  0x52   : > { %6359 = vmatprep.subr.bf16.mxu1 %v6358_v34  ;;  %568 = vmatprep.mubr.f32.mxu0 %v436_v61  ;;  %v461_v3 = vld [vmem:[%s9948_s1 + $0x60] sm:$0xff]  ;;  %v462_v4 = vld [vmem:[%s9948_s1 + $0x68] sm:$0xff]  ;;  %v6370_v5 = vpack.c.bf16 %v494_v63, %v493_v62  ;;  %v495_v8 = vld [vmem:[%s9948_s1 + $0x170] sm:$0xff]  ;;  %v6342_v11 = vpack.c.bf16 %v480_v7, %v479_v6  ;;  %v7266_v59 = vshrl.u32 %v715_v55, 7  ;;  %v6824_v61 = vmov 1934713408  }
  0x53   : > { %6329 = vmatpush3.bf16.msra.mxu0 %v6328_v39  ;;  %6245 = vmatprep.mubr.f32.mxu1 %v444_v0  ;;  %v496_v9 = vld [vmem:[%s9948_s1 + $0x178] sm:$0xff]  ;;  %v6340_v10 = vpack.c.bf16 %v462_v4, %v461_v3  ;;  %v463_v12 = vld [vmem:[%s9948_s1 + $0x70] sm:$0xff]  ;;  %v6053_v24 = vld [vmem:[%s9950_s2] ss:$0 sm:$0xff]  ;;  %v745_v62 = vunpack.c.l.s4 %v6824_v61  ;;  %s9998_s2 = smov 32  }
  0x54   : > { %6331 = vmatprep.subr.bf16.mxu0 %v6330_v40  ;;  %v464_v13 = vld [vmem:[%s9948_s1 + $0x78] sm:$0xff]  ;;  %v6374_v14 = vpack.c.bf16 %v496_v9, %v495_v8  ;;  %v429_v15 = vld [vmem:[%s7070_s10 + $0x10] sm:$0x3]  ;;  %s9857_s10 = smov 40   ;;  %v820_v44 = vld [vmem:[%s9839_s3] sm:$0xff]  ;;  %s9984_s1 = smov 120  }
  0x55   : > { %6361 = vmatpush3.bf16.msra.mxu1 %v6358_v34  ;;  %v6344_v16 = vpack.c.bf16 %v464_v13, %v463_v12  ;;  %v437_v17 = vrot.slane %v429_v15, 1  ;;  %v445_v18 = vrot.slane %v429_v15, 2 }
  0x56   : > { %6363 = vmatprep.subr.bf16.mxu1 %v6362_v43 }
  0x57   : > { %6333 = vmatpush3.bf16.msra.mxu0 %v6332_v50  ;;  %v438_v19 = vsel %vm9901_vm0, %v435_v52, %v437_v17  ;;  %v446_v20 = vsel %vm9900_vm1, %v443_v57, %v445_v18 }
  0x58   : > { %6335 = vmatprep.subr.bf16.mxu0 %v6334_v54  ;;  %v713_v54 = vunpack.c.l.s4 %v6823_v53 }
  0x59   : > { %6365 = vmatpush3.bf16.msra.mxu1 %v6362_v43 }
  0x5a   : > { %6367 = vmatprep.subr.bf16.mxu1 %v6366_v58 }
  0x5b   : > { %6337 = vmatpush3.bf16.msra.mxu0 %v6336_v1 }
  0x5c   : > { %6339 = vmatprep.subr.bf16.mxu0 %v6338_v2 }
  0x5d   : > { %6369 = vmatpush3.bf16.msra.mxu1 %v6366_v58  ;;  %v714_v58 = vunpack.c.0.s8 %v713_v54 }
  0x5e   : > { %6371 = vmatprep.subr.bf16.mxu1 %v6370_v5 }
  0x5f   : > { %6341 = vmatpush3.bf16.msra.mxu0 %v6340_v10  ;;  %v7275_v1 = vsub.s32 %v714_v58, %v7266_v59 }
  0x60   : > { %6343 = vmatprep.subr.bf16.mxu0 %v6342_v11 }
  0x61   : > { %6373 = vmatpush3.bf16.msra.mxu1 %v6370_v5  ;;  %v746_v5 = vunpack.c.0.s8 %v745_v62 }
  0x62   : > { %6375 = vmatprep.subr.bf16.mxu1 %v6374_v14 }
  0x63   : > { %6345 = vmatpush3.bf16.msra.mxu0 %v6344_v16  ;;  %v7296_v12 = vsub.s32 %v746_v5, %v7266_v59 }
  0x64   : > { %6248 = vmatprep.subr.mxu0 %v9881_v45 }
  0x65   : > { %6377 = vmatpush3.bf16.msra.mxu1 %v6374_v14 }
  0x66   : > { %569 = vmatmul.mubr.f32.vlgmr.msra.gmra.mrb[0].mxu0 %v427_v48 }
  0x67   : > { %573 = vmatprep.mubr.f32.mxu0 %v438_v19  ;;  %6249 = vmatpush3.msra.mxu0 %v820_v44 }
  0x68   : > { %6246 = vmatmul.mubr.f32.vlgmr.msra.gmra.mrb[0].mxu1 %v446_v20  ;;  %6253 = vmatprep.subr.mxu0 %v9881_v45 }
  0x6a   : > { %574 = vmatmul.mubr.f32.gmra.mrb[2].mxu0 %v428_v49 }
  0x6b   : > { %6250 = vmatprep.mubr.msk.f32.mxu0 %vm6822_vm2, %v9881_v45 }
 0x139   : > { %v6117_v21 = vpop.f32.mrb[0].mxu0 }
 0x13a   : > { %v6118_v22 = vpop.f32.mrb[1].mxu0 }
 0x13b   : > { %v6247_v23 = vpop.f32.mrb[0].mxu1  ;;  %v6119_v25 = vadd.f32 %v6118_v22, %v6117_v21 }
 0x13c   : > { %v645_v26 = vpop.f32.mrb[1].mxu1 }
 0x13d   : > { %v6120_v27 = vpop.f32.mrb[2].mxu0  ;;  %v571_v28 = vadd.f32 %v6119_v25, %v6053_v24 }
 0x13e   : > { %v6121_v29 = vpop.f32.mrb[3].mxu0 }
 0x13f   : > { %v646_v30 = vadd.f32 %v645_v26, %v571_v28  ;;  %v6122_v31 = vadd.f32 %v6121_v29, %v6120_v27 }
 0x141   : > { %v7142_v32 = vmax.f32 %v646_v30, 0.0  ;;  %v576_v33 = vadd.f32 %v6122_v31, %v6053_v24 }
 0x143   : > { %9951 = vst [vmem:[#allocation10_spill] sm:$0xff] %v7142_v32  ;;  %v651_v34 = vadd.f32 %v6247_v23, %v576_v33  ;;  %1125 = vrot.lane.b32.xlu1 %v7142_v32, %s9861_s16 }
 0x145   : > { %v7146_v35 = vmax.f32 %v651_v34, 0.0 }
 0x147   : > { %9952 = vst [vmem:[#allocation11_spill] sm:$0xff] %v7146_v35  ;;  %1127 = vrot.lane.b32.xlu0 %v7146_v35, %s9861_s16  ;;  %1131 = vrot.lane.b32.xlu1 %v7142_v32, %s9863_s17  ;;  %v656_v36 = vadd.f32 %v7146_v35, %v7142_v32 }
 0x149   : > { %v657_v37 = vrot.slane %v656_v36, 4 }
 0x14b   : > { %1133 = vrot.lane.b32.xlu0 %v7146_v35, %s9863_s17  ;;  %1137 = vrot.lane.b32.xlu1 %v7142_v32, %s9859_s15  ;;  %v658_v38 = vadd.f32 %v657_v37, %v656_v36 }
 0x14d   : > { %v659_v39 = vrot.slane %v658_v38, 2 }
 0x14f   : > { %1139 = vrot.lane.b32.xlu0 %v7146_v35, %s9859_s15  ;;  %1143 = vrot.lane.b32.xlu1 %v7142_v32, %s9877_s19  ;;  %v660_v40 = vadd.f32 %v659_v39, %v658_v38 }
 0x151   : > { %v661_v41 = vrot.slane %v660_v40, 1 }
 0x153   : > { %1145 = vrot.lane.b32.xlu0 %v7146_v35, %s9877_s19  ;;  %1149 = vrot.lane.b32.xlu1 %v7142_v32, %s9867_s28  ;;  %v662_v42 = vadd.f32 %v661_v41, %v660_v40 }
 0x155   : > { %v7206_v43 = vmul.f32 0.0625, %v662_v42 }
 0x157   : > { %1151 = vrot.lane.b32.xlu0 %v7146_v35, %s9867_s28  ;;  %1155 = vrot.lane.b32.xlu1 %v7142_v32, %s9869_s29 }
 0x15b   : > { %1157 = vrot.lane.b32.xlu0 %v7146_v35, %s9869_s29  ;;  %1161 = vrot.lane.b32.xlu1 %v7142_v32, %s9855_s23 }
 0x15f   : > { %1163 = vrot.lane.b32.xlu0 %v7146_v35, %s9855_s23  ;;  %1167 = vrot.lane.b32.xlu1 %v7142_v32, %s9879_s20  ;;  %s9873_s23 = smov 16  }
 0x163   : > { %1169 = vrot.lane.b32.xlu0 %v7146_v35, %s9879_s20  ;;  %1173 = vrot.lane.b32.xlu1 %v7142_v32, %s9853_s30 }
 0x167   : > { %1175 = vrot.lane.b32.xlu0 %v7146_v35, %s9853_s30  ;;  %1179 = vrot.lane.b32.xlu1 %v7142_v32, %s9865_s26  ;;  %s9871_s30 = smov 24  }
 0x16b   : > { %1181 = vrot.lane.b32.xlu0 %v7146_v35, %s9865_s26  ;;  %1185 = vrot.lane.b32.xlu1 %v7142_v32, %s9857_s10 }
 0x16f   : > { %1187 = vrot.lane.b32.xlu0 %v7146_v35, %s9857_s10  ;;  %1191 = vrot.lane.b32.xlu1 %v7142_v32, %s9904_s18  ;;  %s9875_s10 = smov 8  }
 0x173   : > { %1193 = vrot.lane.b32.xlu0 %v7146_v35, %s9904_s18  ;;  %1197 = vrot.lane.b32.xlu1 %v7142_v32, %s9871_s30 }
 0x177   : > { %1199 = vrot.lane.b32.xlu0 %v7146_v35, %s9871_s30  ;;  %1203 = vrot.lane.b32.xlu1 %v7142_v32, %s9873_s23 }
 0x17b   : > { %1205 = vrot.lane.b32.xlu0 %v7146_v35, %s9873_s23  ;;  %1209 = vrot.lane.b32.xlu1 %v7142_v32, %s9875_s10 }
 0x17f   : > { %1211 = vrot.lane.b32.xlu0 %v7146_v35, %s9875_s10  ;;  %672 = vrot.lane.b32.xlu1 %v7206_v43, %s9859_s15  ;;  %s9953_s15 = smov 72  }
 0x183   : > { %675 = vrot.lane.b32.xlu1 %v7206_v43, %s9877_s19  ;;  %666 = vrot.lane.b32.xlu0 %v7206_v43, %s9861_s16  ;;  %s9954_s16 = smov 56   ;;  %s9976_s19 = smov 8  }
 0x187   : > { %681 = vrot.lane.b32.xlu1 %v7206_v43, %s9869_s29  ;;  %669 = vrot.lane.b32.xlu0 %v7206_v43, %s9863_s17  ;;  %s9955_s17 = smov 40   ;;  %s9980_s29 = smov 88  }
 0x18b   : > { %687 = vrot.lane.b32.xlu1 %v7206_v43, %s9879_s20  ;;  %678 = vrot.lane.b32.xlu0 %v7206_v43, %s9867_s28  ;;  %s9977_s20 = smov 16   ;;  %s9978_s28 = smov 24  }
 0x18f   : > { %693 = vrot.lane.b32.xlu1 %v7206_v43, %s9865_s26  ;;  %684 = vrot.lane.b32.xlu0 %v7206_v43, %s9953_s15  ;;  %s9979_s26 = smov 80  }
 0x193   : > { %699 = vrot.lane.b32.xlu1 %v7206_v43, %s9904_s18  ;;  %690 = vrot.lane.b32.xlu0 %v7206_v43, %s9954_s16 }
 0x197   : > { %705 = vrot.lane.b32.xlu1 %v7206_v43, %s9873_s23  ;;  %696 = vrot.lane.b32.xlu0 %v7206_v43, %s9955_s17  ;;  %s9981_s23 = smov 48  }
 0x19b   : > { %702 = vrot.lane.b32.xlu0 %v7206_v43, %s9871_s30  ;;  %s9972_s30 = smov 64  }
 0x19f   : > { %708 = vrot.lane.b32.xlu0 %v7206_v43, %s9875_s10  ;;  %s9973_s10 = smov 96  }
 0x1b5   : > { %v7247_v46 = vpop.permute.xlu1 %1125 }
 0x1b9   : > { %v7249_v47 = vpop.permute.xlu0 %1127  ;;  %v7251_v48 = vpop.permute.xlu1 %1131 }
 0x1ba   : > { %v1215_v2 = vcombine.low %v7142_v32, %v7251_v48 }
 0x1bc   : > { %v7289_v8 = vrot.slane %v1215_v2, %v7275_v1 }
 0x1bd   : > { %v7253_v49 = vpop.permute.xlu0 %1133  ;;  %v7255_v50 = vpop.permute.xlu1 %1137 }
 0x1be   : > { %v1231_v60 = vcombine.low %v7247_v46, %v7255_v50 }
 0x1c0   : > { %v7280_v3 = vrot.slane %v1231_v60, %v7275_v1 }
 0x1c1   : > { %v7257_v51 = vpop.permute.xlu0 %1139  ;;  %v7259_v52 = vpop.permute.xlu1 %1143 }
 0x1c2   : > { %v1279_v13 = vcombine.low %v7289_v8, %v7280_v3 }
 0x1c4   : > { %v1287_v17 = vrot.slane %v1279_v13, %v7296_v12 }
 0x1c5   : > { %v7261_v56 = vpop.permute.xlu0 %1145  ;;  %v7263_v57 = vpop.permute.xlu1 %1149 }
 0x1c9   : > { %v7270_v63 = vpop.permute.xlu0 %1151  ;;  %v7272_v0 = vpop.permute.xlu1 %1155 }
 0x1ca   : > { %v1247_v4 = vcombine.low %v7259_v52, %v7272_v0 }
 0x1cc   : > { %v1255_v10 = vrot.slane %v1247_v4, %v7275_v1 }
 0x1cd   : > { %v7284_v6 = vpop.permute.xlu0 %1157  ;;  %v7286_v7 = vpop.permute.xlu1 %1161 }
 0x1ce   : > { %v1263_v9 = vcombine.low %v7263_v57, %v7286_v7 }
 0x1d0   : > { %v1271_v11 = vrot.slane %v1263_v9, %v7275_v1 }
 0x1d1   : > { %v7300_v14 = vpop.permute.xlu0 %1163  ;;  %v7302_v15 = vpop.permute.xlu1 %1167 }
 0x1d2   : > { %v1311_v16 = vcombine.low %v1255_v10, %v1271_v11  ;;  %v1312_v4 = vcombine.high %v1255_v10, %v1271_v11 }
 0x1d4   : > { %v1319_v18 = vrot.slane %v1311_v16, %v7296_v12  ;;  %v1326_v10 = vrot.slane %v1312_v4, %v7296_v12 }
 0x1d5   : > { %v7306_v19 = vpop.permute.xlu0 %1169  ;;  %v7308_v20 = vpop.permute.xlu1 %1173 }
 0x1d6   : > { %v7310_v21 = vcombine.low %v1287_v17, %v1319_v18 }
 0x1d8   : > { %v1759_v22 = vsel %vm809_vm3, %v7310_v21, 0.0 }
 0x1d9   : > { %v7314_v23 = vpop.permute.xlu0 %1175  ;;  %v7316_v24 = vpop.permute.xlu1 %1179  ;;  %1760 = vadd.xlane.f32.xlu1 %v1759_v22 }
 0x1da   : > { %v1351_v36 = vcombine.low %v7302_v15, %v7316_v24 }
 0x1dc   : > { %v1359_v41 = vrot.slane %v1351_v36, %v7275_v1 }
 0x1dd   : > { %v7318_v25 = vpop.permute.xlu0 %1181  ;;  %v1186_v26 = vpop.permute.xlu1 %1185 }
 0x1de   : > { %v1367_v31 = vcombine.low %v7308_v20, %v1186_v26 }
 0x1e0   : > { %v1375_v37 = vrot.slane %v1367_v31, %v7275_v1  ;;  %v1280_v31 = vcombine.high %v7289_v8, %v7280_v3 }
 0x1e1   : > { %v7320_v27 = vpop.permute.xlu0 %1187  ;;  %v1192_v28 = vpop.permute.xlu1 %1191 }
 0x1e2   : > { %v1415_v54 = vcombine.low %v1359_v41, %v1375_v37  ;;  %v1416_v62 = vcombine.high %v1359_v41, %v1375_v37  ;;  %v7349_v37 = vcombine.high %v1287_v17, %v1319_v18  ;;  %v1294_v8 = vrot.slane %v1280_v31, %v7296_v12 }
 0x1e3   : > { %v1368_v17 = vcombine.high %v7308_v20, %v1186_v26  ;;  %v1232_v20 = vcombine.high %v7247_v46, %v7255_v50 }
 0x1e4   : > { %v1423_v5 = vrot.slane %v1415_v54, %v7296_v12  ;;  %v7394_v46 = vcombine.high %v1294_v8, %v1326_v10 }
 0x1e5   : > { %v7322_v29 = vpop.permute.xlu0 %1193  ;;  %v1198_v30 = vpop.permute.xlu1 %1197 }
 0x1e9   : > { %v7325_v33 = vpop.permute.xlu0 %1199  ;;  %v1204_v34 = vpop.permute.xlu1 %1203 }
 0x1ea   : > { %v1383_v38 = vcombine.low %v1192_v28, %v1204_v34  ;;  %v1384_v18 = vcombine.high %v1192_v28, %v1204_v34  ;;  %v1216_v28 = vcombine.high %v7142_v32, %v7251_v48 }
 0x1ec   : > { %v1391_v44 = vrot.slane %v1383_v38, %v7275_v1 }
 0x1ed   : > { %v7330_v39 = vpop.permute.xlu0 %1205  ;;  %v1210_v40 = vpop.permute.xlu1 %1209 }
 0x1ee   : > { %v1399_v42 = vcombine.low %v1198_v30, %v1210_v40  ;;  %v1400_v11 = vcombine.high %v1198_v30, %v1210_v40  ;;  %v1264_v30 = vcombine.high %v7263_v57, %v7286_v7  ;;  %v1765_v40 = vsel %vm809_vm3, %v7349_v37, 0.0 }
 0x1ef   : > { %v1248_v57 = vcombine.high %v7259_v52, %v7272_v0 }
 0x1f0   : > { %v1407_v53 = vrot.slane %v1399_v42, %v7275_v1  ;;  %v1430_v42 = vrot.slane %v1416_v62, %v7296_v12  ;;  %v1352_v62 = vcombine.high %v7302_v15, %v7316_v24  ;;  %v7384_v15 = vrot.slane %v1368_v17, %v7275_v1 }
 0x1f1   : > { %v7335_v58 = vpop.permute.xlu0 %1211  ;;  %v7337_v60 = vpop.permute.xlu1 %672  ;;  %v7387_v24 = vrot.slane %v1384_v18, %v7275_v1  ;;  %v7392_v34 = vrot.slane %v1264_v30, %v7275_v1  ;;  %v7409_v48 = vrot.slane %v1248_v57, %v7275_v1 }
 0x1f2   : > { %v1447_v61 = vcombine.low %v1391_v44, %v1407_v53  ;;  %v1448_v2 = vcombine.high %v1391_v44, %v1407_v53  ;;  %v7397_v50 = vrot.slane %v1352_v62, %v7275_v1 }
 0x1f4   : > { %v1455_v9 = vrot.slane %v1447_v61, %v7296_v12  ;;  %v1462_v13 = vrot.slane %v1448_v2, %v7296_v12  ;;  %v7366_v61 = vcombine.low %v1294_v8, %v1326_v10  ;;  %v7371_v2 = vrot.slane %v1400_v11, %v7275_v1 }
 0x1f5   : > { %v7342_v16 = vpop.permute.xlu1 %675  ;;  %v7344_v22 = vpop.permute.xlu0 %666  ;;  %v1431_v10 = vcombine.low %v7397_v50, %v7384_v15  ;;  %v7414_v11 = vrot.slane %v1216_v28, %v7275_v1  ;;  %v1777_v8 = vsel %vm809_vm3, %v7394_v46, 0.0 }
 0x1f6   : > { %v1480_v36 = vcombine.high %v1423_v5, %v1455_v9  ;;  %v1479_v38 = vcombine.low %v1423_v5, %v1455_v9  ;;  %v7354_v53 = vcombine.low %v1430_v42, %v1462_v13  ;;  %v7375_v5 = vcombine.high %v1430_v42, %v1462_v13 }
 0x1f7   : > { %v1771_v0 = vsel %vm809_vm3, %v7366_v61, 0.0  ;;  %v1463_v9 = vcombine.low %v7387_v24, %v7371_v2  ;;  %v7406_v13 = vrot.slane %v1232_v20, %v7275_v1 }
 0x1f8   : > { %v1768_v41 = vsel %vm809_vm3, %v1480_v36, 0.0  ;;  %v1762_v44 = vsel %vm809_vm3, %v1479_v38, 0.0  ;;  %v1774_v4 = vsel %vm809_vm3, %v7354_v53, 0.0  ;;  %v1780_v52 = vsel %vm809_vm3, %v7375_v5, 0.0 }
 0x1f9   : > { %1769 = vadd.xlane.f32.xlu1 %v1768_v41  ;;  %v7356_v54 = vpop.permute.xlu1 %681  ;;  %1763 = vadd.xlane.f32.xlu0 %v1762_v44  ;;  %v7358_v3 = vpop.permute.xlu0 %669  ;;  %v1327_v41 = vcombine.low %v7409_v48, %v7392_v34  ;;  %v1891_v44 = vsel %vm809_vm3, %v1479_v38, -inf  ;;  %v1471_v17 = vrot.slane %v1463_v9, %v7296_v12  ;;  %v1295_v30 = vcombine.low %v7414_v11, %v7406_v13 }
 0x1fa   : > { %v1897_v57 = vsel %vm809_vm3, %v1480_v36, -inf  ;;  %v1888_v38 = vsel %vm809_vm3, %v7310_v21, -inf  ;;  %v727_v9 = vcombine.low %v7342_v16, %v7356_v54 }
 0x1fd   : > { %1775 = vadd.xlane.f32.xlu1 %v1774_v4  ;;  %v7381_v7 = vpop.permute.xlu1 %687  ;;  %1766 = vadd.xlane.f32.xlu0 %v1765_v40  ;;  %v679_v26 = vpop.permute.xlu0 %678  ;;  %v1439_v40 = vrot.slane %v1431_v10, %v7296_v12  ;;  %v1335_v4 = vrot.slane %v1327_v41, %v7296_v12  ;;  %v711_v10 = vcombine.low %v7206_v43, %v7358_v3 }
 0x1fe   : > { %v734_v43 = vrot.slane %v727_v9, %v7275_v1 }
 0x1ff   : > { %v7429_v28 = vcombine.low %v1439_v40, %v1471_v17  ;;  %v718_v54 = vrot.slane %v711_v10, %v7275_v1 }
 0x201   : > { %1781 = vadd.xlane.f32.xlu1 %v1780_v52  ;;  %v694_v31 = vpop.permute.xlu1 %693  ;;  %1772 = vadd.xlane.f32.xlu0 %v1771_v0  ;;  %v685_v42 = vpop.permute.xlu0 %684  ;;  %v1303_v0 = vrot.slane %v1295_v30, %v7296_v12  ;;  %v1786_v41 = vsel %vm809_vm3, %v7429_v28, 0.0 }
 0x202   : > { %v735_v20 = vcombine.low %v679_v26, %v685_v42  ;;  %v719_v26 = vcombine.low %v7344_v22, %v7337_v60  ;;  %v760_v60 = vcombine.low %v7381_v7, %v694_v31  ;;  %v1432_v31 = vcombine.high %v7397_v50, %v7384_v15 }
 0x203   : > { %v7438_v36 = vcombine.low %v1303_v0, %v1335_v4 }
 0x204   : > { %v742_v21 = vrot.slane %v735_v20, %v7275_v1  ;;  %v726_v22 = vrot.slane %v719_v26, %v7275_v1 }
 0x205   : > { %1892 = vmax.xlane.f32.xlu1 %v1891_v44  ;;  %1778 = vadd.xlane.f32.xlu0 %v1777_v8  ;;  %v691_v18 = vpop.permute.xlu0 %690  ;;  %v700_v62 = vpop.permute.xlu1 %699  ;;  %v1894_v44 = vsel %vm809_vm3, %v7349_v37, -inf  ;;  %v1783_v3 = vsel %vm809_vm3, %v7438_v36, 0.0  ;;  %v1464_v37 = vcombine.high %v7387_v24, %v7371_v2  ;;  %v1328_v2 = vcombine.high %v7409_v48, %v7392_v34 }
 0x206   : > { %v751_v30 = vcombine.low %v734_v43, %v742_v21  ;;  %v1446_v34 = vrot.slane %v1432_v31, %v7296_v12  ;;  %v1296_v48 = vcombine.high %v7414_v11, %v7406_v13  ;;  %v1639_v31 = vcombine.low %v7314_v23, %v7320_v27 }
 0x207   : > { %v1478_v9 = vrot.slane %v1464_v37, %v7296_v12 }
 0x208   : > { %v758_v10 = vrot.slane %v751_v30, %v7296_v12  ;;  %v1310_v13 = vrot.slane %v1296_v48, %v7296_v12 }
 0x209   : > { %1898 = vmax.xlane.f32.xlu1 %v1897_v57  ;;  %1889 = vmax.xlane.f32.xlu0 %v1888_v38  ;;  %v697_v52 = vpop.permute.xlu0 %696  ;;  %v706_v8 = vpop.permute.xlu1 %705  ;;  %v1903_v38 = vsel %vm809_vm3, %v7354_v53, -inf  ;;  %v7467_v53 = vcombine.high %v1303_v0, %v1335_v4  ;;  %v1485_v21 = vcombine.low %v1446_v34, %v1478_v9 }
 0x20a   : > { %v768_v42 = vcombine.low %v691_v18, %v697_v52  ;;  %v7451_v18 = vcombine.high %v1439_v40, %v1471_v17  ;;  %v776_v20 = vcombine.low %v700_v62, %v706_v8  ;;  %v743_v52 = vcombine.low %v718_v54, %v726_v22 }
 0x20b   : > { %v767_v17 = vrot.slane %v760_v60, %v7275_v1  ;;  %v1900_v62 = vsel %vm809_vm3, %v7366_v61, -inf  ;;  %v1789_v0 = vsel %vm809_vm3, %v7467_v53, 0.0  ;;  %v1798_v22 = vsel %vm809_vm3, %v1485_v21, 0.0 }
 0x20c   : > { %v775_v57 = vrot.slane %v768_v42, %v7275_v1  ;;  %v1792_v24 = vsel %vm809_vm3, %v7451_v18, 0.0  ;;  %v783_v15 = vrot.slane %v776_v20, %v7275_v1  ;;  %v750_v61 = vrot.slane %v743_v52, %v7296_v12 }
 0x20d   : > { %1787 = vadd.xlane.f32.xlu1 %v1786_v41  ;;  %1895 = vmax.xlane.f32.xlu0 %v1894_v44  ;;  %v703_v16 = vpop.permute.xlu0 %702  ;;  %v1342_v42 = vrot.slane %v1328_v2, %v7296_v12  ;;  %v1915_v20 = vsel %vm809_vm3, %v7429_v28, -inf  ;;  %v1535_v52 = vcombine.low %v7270_v63, %v7300_v14  ;;  %v1623_v28 = vcombine.low %v7306_v19, %v7318_v25 }
 0x20e   : > { %v792_v50 = vcombine.low %v767_v17, %v775_v57  ;;  %v759_v41 = vcombine.low %v750_v61, %v758_v10  ;;  %v1503_v10 = vcombine.low %v7249_v47, %v7257_v51 }
 0x20f   : > { %v1349_v43 = vcombine.low %v1310_v13, %v1342_v42  ;;  %v1631_v61 = vrot.slane %v1623_v28, %v7275_v1 }
 0x210   : > { %v799_v44 = vrot.slane %v792_v50, %v7296_v12  ;;  %v810_v54 = vsel %vm809_vm3, %v759_v41, 0.0  ;;  %v1647_v50 = vrot.slane %v1639_v31, %v7275_v1 }
 0x211   : > { %1904 = vmax.xlane.f32.xlu1 %v1903_v38  ;;  %1784 = vadd.xlane.f32.xlu0 %v1783_v3  ;;  %v709_v7 = vpop.permute.xlu0 %708  ;;  %v1906_v3 = vsel %vm809_vm3, %v7394_v46, -inf  ;;  %v1795_v57 = vsel %vm809_vm3, %v1349_v43, 0.0  ;;  %v1486_v38 = vcombine.high %v1446_v34, %v1478_v9  ;;  %v1655_v46 = vcombine.low %v7322_v29, %v7330_v39 }
 0x212   : > { %v784_v40 = vcombine.low %v703_v16, %v709_v7  ;;  %v1909_v16 = vsel %vm809_vm3, %v7375_v5, -inf  ;;  %v1671_v5 = vcombine.low %v7325_v33, %v7335_v58  ;;  %v1543_v34 = vrot.slane %v1535_v52, %v7275_v1 }
 0x214   : > { %v791_v26 = vrot.slane %v784_v40, %v7275_v1  ;;  %v1912_v40 = vsel %vm809_vm3, %v7438_v36, -inf  ;;  %v1679_v2 = vrot.slane %v1671_v5, %v7275_v1  ;;  %v1663_v36 = vrot.slane %v1655_v46, %v7275_v1 }
 0x215   : > { %1793 = vadd.xlane.f32.xlu1 %v1792_v24  ;;  %1901 = vmax.xlane.f32.xlu0 %v1900_v62  ;;  %v1804_v24 = vsel %vm809_vm3, %v1486_v38, 0.0  ;;  %v1350_v62 = vcombine.high %v1310_v13, %v1342_v42 }
 0x216   : > { %v800_v4 = vcombine.low %v783_v15, %v791_v26  ;;  %v1519_v15 = vcombine.low %v7261_v56, %v7284_v6  ;;  %v1487_v26 = vcombine.low %v7146_v35, %v7253_v49  ;;  %v1719_v42 = vcombine.low %v1663_v36, %v1679_v2 }
 0x217   : > { %v1930_v31 = vsel %vm809_vm3, %v1350_v62, -inf }
 0x218   : > { %v807_v8 = vrot.slane %v800_v4, %v7296_v12  ;;  %v1921_v4 = vsel %vm809_vm3, %v7451_v18, -inf  ;;  %v1495_v13 = vrot.slane %v1487_v26, %v7275_v1  ;;  %v1727_v18 = vrot.slane %v1719_v42, %v7296_v12 }
 0x219   : > { %1910 = vmax.xlane.f32.xlu1 %v1909_v16  ;;  %1790 = vadd.xlane.f32.xlu0 %v1789_v0  ;;  %v1801_v0 = vsel %vm809_vm3, %v1350_v62, 0.0  ;;  %v1687_v16 = vcombine.low %v1631_v61, %v1647_v50  ;;  %v1656_v26 = vcombine.high %v7322_v29, %v7330_v39 }
 0x21a   : > { %v808_v11 = vcombine.low %v799_v44, %v807_v8  ;;  %v1511_v44 = vrot.slane %v1503_v10, %v7275_v1  ;;  %v1527_v8 = vrot.slane %v1519_v15, %v7275_v1 }
 0x21c   : > { %v811_v60 = vsel %vm809_vm3, %v808_v11, 0.0  ;;  %v1584_v46 = vcombine.high %v1527_v8, %v1543_v34 }
 0x21d   : > { %v812_v37 = vadd.f32 %v811_v60, %v810_v54  ;;  %1799 = vadd.xlane.f32.xlu1 %v1798_v22  ;;  %1907 = vmax.xlane.f32.xlu0 %v1906_v3  ;;  %v1927_v54 = vsel %vm809_vm3, %v1485_v21, -inf  ;;  %v1918_v60 = vsel %vm809_vm3, %v7467_v53, -inf  ;;  %v1583_v22 = vcombine.low %v1527_v8, %v1543_v34 }
 0x21e   : > { %v1695_v3 = vrot.slane %v1687_v16, %v7296_v12  ;;  %v1933_v21 = vsel %vm809_vm3, %v1486_v38, -inf  ;;  %v1552_v38 = vcombine.high %v1495_v13, %v1511_v44  ;;  %v1536_v34 = vcombine.high %v7270_v63, %v7300_v14 }
 0x21f   : > { %v813_v30 = vrot.slane %v812_v37, 4  ;;  %v1591_v53 = vrot.slane %v1583_v22, %v7296_v12  ;;  %v1670_v14 = vrot.slane %v1656_v26, %v7275_v1 }
 0x220   : > { %v1751_v5 = vcombine.low %v1695_v3, %v1727_v18 }
 0x221   : > { %v814_v7 = vadd.f32 %v813_v30, %v812_v37  ;;  %1916 = vmax.xlane.f32.xlu1 %v1915_v20  ;;  %1796 = vadd.xlane.f32.xlu0 %v1795_v57  ;;  %v1551_v37 = vcombine.low %v1495_v13, %v1511_v44  ;;  %v1924_v30 = vsel %vm809_vm3, %v1349_v43, -inf  ;;  %v1720_v20 = vcombine.high %v1663_v36, %v1679_v2 }
 0x222   : > { %v1810_v52 = vsel %vm809_vm3, %v1751_v5, 0.0  ;;  %v1752_v43 = vcombine.high %v1695_v3, %v1727_v18  ;;  %v1640_v36 = vcombine.high %v7314_v23, %v7320_v27  ;;  %v1504_v23 = vcombine.high %v7249_v47, %v7257_v51 }
 0x223   : > { %v815_v17 = vrot.slane %v814_v7, 2  ;;  %v1559_v57 = vrot.slane %v1551_v37, %v7296_v12  ;;  %v1520_v27 = vcombine.high %v7261_v56, %v7284_v6 }
 0x224   : > { %v1816_v62 = vsel %vm809_vm3, %v1752_v43, 0.0  ;;  %v1654_v63 = vrot.slane %v1640_v36, %v7275_v1  ;;  %v1518_v51 = vrot.slane %v1504_v23, %v7275_v1 }
 0x225   : > { %v816_v9 = vadd.f32 %v815_v17, %v814_v7  ;;  %1805 = vadd.xlane.f32.xlu1 %v1804_v24  ;;  %1913 = vmax.xlane.f32.xlu0 %v1912_v40  ;;  %v1688_v7 = vcombine.high %v1631_v61, %v1647_v50  ;;  %v1615_v17 = vcombine.low %v1559_v57, %v1591_v53 }
 0x226   : > { %v1734_v40 = vrot.slane %v1720_v20, %v7296_v12  ;;  %v1616_v2 = vcombine.high %v1559_v57, %v1591_v53  ;;  %v1598_v24 = vrot.slane %v1584_v46, %v7296_v12  ;;  %v1566_v50 = vrot.slane %v1552_v38, %v7296_v12 }
 0x227   : > { %v817_v48 = vrot.slane %v816_v9, 1  ;;  %v1702_v28 = vrot.slane %v1688_v7, %v7296_v12  ;;  %v1807_v10 = vsel %vm809_vm3, %v1615_v17, 0.0  ;;  %v1534_v56 = vrot.slane %v1520_v27, %v7275_v1 }
 0x228   : > { %v1936_v18 = vsel %vm809_vm3, %v1615_v17, -inf }
 0x229   : > { %1922 = vmax.xlane.f32.xlu1 %v1921_v4  ;;  %1802 = vadd.xlane.f32.xlu0 %v1801_v0  ;;  %v818_v41 = vadd.f32 %v817_v48, %v816_v9  ;;  %v1672_v9 = vcombine.high %v7325_v33, %v7335_v58  ;;  %v1753_v15 = vcombine.low %v1702_v28, %v1734_v40  ;;  %v1813_v4 = vsel %vm809_vm3, %v1616_v2, 0.0 }
 0x22a   : > { %v1624_v33 = vcombine.high %v7306_v19, %v7318_v25  ;;  %v1617_v58 = vcombine.low %v1566_v50, %v1598_v24  ;;  %v1754_v0 = vcombine.high %v1702_v28, %v1734_v40  ;;  %v1488_v19 = vcombine.high %v7146_v35, %v7253_v49 }
 0x22b   : > { %v819_v11 = vmul.f32 0.0625, %v818_v41  ;;  %v1686_v48 = vrot.slane %v1672_v9, %v7275_v1  ;;  %v1822_v61 = vsel %vm809_vm3, %v1753_v15, 0.0  ;;  %v1550_v25 = vrot.slane %v1536_v34, %v7275_v1 }
 0x22c   : > { %v1638_v29 = vrot.slane %v1624_v33, %v7275_v1  ;;  %v1828_v39 = vsel %vm809_vm3, %v1754_v0, 0.0  ;;  %v1819_v42 = vsel %vm809_vm3, %v1617_v58, 0.0  ;;  %v1618_v41 = vcombine.high %v1566_v50, %v1598_v24 }
 0x22d   : > { %1928 = vmax.xlane.f32.xlu1 %v1927_v54  ;;  %1919 = vmax.xlane.f32.xlu0 %v1918_v60  ;;  %v1735_v47 = vcombine.low %v1670_v14, %v1686_v48  ;;  %v1502_v44 = vrot.slane %v1488_v19, %v7275_v1  ;;  %v1939_v49 = vsel %vm809_vm3, %v1751_v5, -inf  ;;  %v1599_v13 = vcombine.low %v1534_v56, %v1550_v25 }
 0x22e   : > { %6251 = vmatmul.mubr.msk.f32.vlgmr.msra.gmra.mrb[4].mxu0 %vm809_vm3, %v819_v11  ;;  %v1703_v6 = vcombine.low %v1638_v29, %v1654_v63  ;;  %v1825_v8 = vsel %vm809_vm3, %v1618_v41, 0.0  ;;  %v1945_v60 = vsel %vm809_vm3, %v1752_v43, -inf  ;;  %v1951_v53 = vsel %vm809_vm3, %v1753_v15, -inf }
 0x22f   : > { %6255 = vmatprep.mubr.msk.f32.mxu0 %vm6822_vm2, %v9881_v45  ;;  %v1743_v16 = vrot.slane %v1735_v47, %v7296_v12  ;;  %v1567_v54 = vcombine.low %v1502_v44, %v1518_v51  ;;  %v1607_v3 = vrot.slane %v1599_v13, %v7296_v12  ;;  %v1736_v7 = vcombine.high %v1670_v14, %v1686_v48  ;;  %v896_v47 = vld [vmem:[%s9841_s5] sm:$0x3] }
 0x230   : > { %v1711_v11 = vrot.slane %v1703_v6, %v7296_v12  ;;  %v1600_v46 = vcombine.high %v1534_v56, %v1550_v25  ;;  %v1948_v43 = vsel %vm809_vm3, %v1617_v58, -inf  ;;  %v1568_v38 = vcombine.high %v1502_v44, %v1518_v51  ;;  %6254 = vmatpush3.msk.msra.mxu0 %vm9903_vm4, %v896_v47 }
 0x231   : > { %1934 = vmax.xlane.f32.xlu1 %v1933_v21  ;;  %1925 = vmax.xlane.f32.xlu0 %v1924_v30  ;;  %v1575_v37 = vrot.slane %v1567_v54, %v7296_v12  ;;  %v1942_v21 = vsel %vm809_vm3, %v1616_v2, -inf  ;;  %v1750_v40 = vrot.slane %v1736_v7, %v7296_v12  ;;  %v1957_v2 = vsel %vm809_vm3, %v1754_v0, -inf  ;;  %v2472_v54 = vld [vmem:[%s9843_s7 + $0x8] sm:$0xff] }
 0x232   : > { %v1755_v22 = vcombine.low %v1711_v11, %v1743_v16  ;;  %v1756_v57 = vcombine.high %v1711_v11, %v1743_v16  ;;  %v1954_v50 = vsel %vm809_vm3, %v1618_v41, -inf  ;;  %v2471_v11 = vld [vmem:[%s9843_s7] sm:$0xff]  ;;  %vm898_vm2 = vcmask 15360  }
 0x233   : > { %v1619_v5 = vcombine.low %v1575_v37, %v1607_v3  ;;  %v1620_v17 = vcombine.high %v1575_v37, %v1607_v3  ;;  %v2474_v3 = vld [vmem:[%s9843_s7 + $0x18] sm:$0xff] }
 0x234   : > { %v1834_v30 = vsel %vm809_vm3, %v1755_v22, 0.0  ;;  %v1963_v26 = vsel %vm809_vm3, %v1755_v22, -inf  ;;  %v7644_v22 = vpack.c.bf16 %v2472_v54, %v2471_v11  ;;  %v2489_v11 = vld [vmem:[%s9843_s7 + $0x90] sm:$0xff]  ;;  %v2490_v54 = vld [vmem:[%s9843_s7 + $0x98] sm:$0xff] }
 0x235   : > { %1811 = vadd.xlane.f32.xlu1 %v1810_v52  ;;  %1931 = vmax.xlane.f32.xlu0 %v1930_v31  ;;  %v1831_v20 = vsel %vm809_vm3, %v1619_v5, 0.0  ;;  %v1704_v31 = vcombine.high %v1638_v29, %v1654_v63  ;;  %v1840_v52 = vsel %vm809_vm3, %v1756_v57, 0.0  ;;  %v1837_v24 = vsel %vm809_vm3, %v1620_v17, 0.0 }
 0x236   : > { %v1960_v48 = vsel %vm809_vm3, %v1619_v5, -inf  ;;  %v1966_v27 = vsel %vm809_vm3, %v1620_v17, -inf  ;;  %v2475_v5 = vld [vmem:[%s9843_s7 + $0x20] sm:$0xff] }
 0x237   : > { %v1718_v28 = vrot.slane %v1704_v31, %v7296_v12  ;;  %v2477_v31 = vld [vmem:[%s9843_s7 + $0x30] sm:$0xff] }
 0x239   : > { %1817 = vadd.xlane.f32.xlu1 %v1816_v62  ;;  %1808 = vadd.xlane.f32.xlu0 %v1807_v10  ;;  %v1757_v9 = vcombine.low %v1718_v28, %v1750_v40  ;;  %v1614_v62 = vrot.slane %v1600_v46, %v7296_v12  ;;  %v1582_v10 = vrot.slane %v1568_v38, %v7296_v12  ;;  %v2478_v46 = vld [vmem:[%s9843_s7 + $0x38] sm:$0xff]  ;;  %v2480_v38 = vld [vmem:[%s9843_s7 + $0x48] sm:$0xff] }
 0x23a   : > { %v1758_v33 = vcombine.high %v1718_v28, %v1750_v40  ;;  %v7682_v17 = vpack.c.bf16 %v2478_v46, %v2477_v31  ;;  %v2479_v40 = vld [vmem:[%s9843_s7 + $0x40] sm:$0xff]  ;;  %v2492_v31 = vld [vmem:[%s9843_s7 + $0xa8] sm:$0xff] }
 0x23b   : > { %v1846_v15 = vsel %vm809_vm3, %v1757_v9, 0.0  ;;  %v1621_v36 = vcombine.low %v1582_v10, %v1614_v62  ;;  %v1975_v23 = vsel %vm809_vm3, %v1757_v9, -inf  ;;  %v2481_v9 = vld [vmem:[%s9843_s7 + $0x50] sm:$0xff] }
 0x23c   : > { %v1852_v58 = vsel %vm809_vm3, %v1758_v33, 0.0  ;;  %v1981_v63 = vsel %vm809_vm3, %v1758_v33, -inf  ;;  %9958 = vst [vmem:[#allocation14_spill] sm:$0xff] %v7682_v17 }
 0x23d   : > { %1823 = vadd.xlane.f32.xlu1 %v1822_v61  ;;  %1814 = vadd.xlane.f32.xlu0 %v1813_v4  ;;  %v1843_v34 = vsel %vm809_vm3, %v1621_v36, 0.0  ;;  %v1622_v61 = vcombine.high %v1582_v10, %v1614_v62  ;;  %v1969_v4 = vsel %vm809_vm3, %v1756_v57, -inf  ;;  %v1972_v14 = vsel %vm809_vm3, %v1621_v36, -inf  ;;  %v2482_v62 = vld [vmem:[%s9843_s7 + $0x58] sm:$0xff]  ;;  %v2483_v36 = vld [vmem:[%s9843_s7 + $0x60] sm:$0xff] }
 0x23f   : > { %v1849_v0 = vsel %vm809_vm3, %v1622_v61, 0.0  ;;  %v1978_v19 = vsel %vm809_vm3, %v1622_v61, -inf  ;;  %v2486_v61 = vld [vmem:[%s9843_s7 + $0x78] sm:$0xff] }
 0x241   : > { %1829 = vadd.xlane.f32.xlu1 %v1828_v39  ;;  %1820 = vadd.xlane.f32.xlu0 %v1819_v42 }
 0x245   : > { %1940 = vmax.xlane.f32.xlu1 %v1939_v49  ;;  %1826 = vadd.xlane.f32.xlu0 %v1825_v8 }
 0x249   : > { %1946 = vmax.xlane.f32.xlu1 %v1945_v60  ;;  %1937 = vmax.xlane.f32.xlu0 %v1936_v18  ;;  %v2473_v60 = vld [vmem:[%s9843_s7 + $0x10] sm:$0xff]  ;;  %v9885_v18 = vmov 0.0|0.0  }
 0x24a   : > { %6378 = vmatprep.subr.bf16.mxu1 %v9885_v18 }
 0x24b   : > { %6380 = vmatpush1.bf16.msra.mxu1 %v7644_v22 }
 0x24c   : > { %6381 = vmatprep.subr.bf16.mxu1 %v9885_v18 }
 0x24d   : > { %1835 = vadd.xlane.f32.xlu1 %v1834_v30  ;;  %1943 = vmax.xlane.f32.xlu0 %v1942_v21  ;;  %v7654_v21 = vpack.c.bf16 %v2474_v3, %v2473_v60 }
 0x24f   : > { %9956 = vst [vmem:[#allocation12_spill] sm:$0xff] %v7654_v21  ;;  %6383 = vmatpush1.bf16.msra.mxu1 %v7654_v21 }
 0x250   : > { %6384 = vmatprep.subr.bf16.mxu1 %v9885_v18 }
 0x251   : > { %1952 = vmax.xlane.f32.xlu1 %v1951_v53  ;;  %1832 = vadd.xlane.f32.xlu0 %v1831_v20  ;;  %v2476_v53 = vld [vmem:[%s9843_s7 + $0x28] sm:$0xff] }
 0x252   : > { %v7668_v7 = vpack.c.bf16 %v2476_v53, %v2475_v5  ;;  %v7766_v5 = vpack.c.bf16 %v2490_v54, %v2489_v11  ;;  %v2491_v53 = vld [vmem:[%s9843_s7 + $0xa0] sm:$0xff] }
 0x254   : > { %9957 = vst [vmem:[#allocation13_spill] sm:$0xff] %v7668_v7  ;;  %6386 = vmatpush1.bf16.msra.mxu1 %v7668_v7  ;;  %9964 = vst [vmem:[#allocation20_spill] sm:$0xff] %v7766_v5 }
 0x255   : > { %1841 = vadd.xlane.f32.xlu1 %v1840_v52  ;;  %1949 = vmax.xlane.f32.xlu0 %v1948_v43 }
 0x256   : > { %6387 = vmatprep.subr.bf16.mxu1 %v9885_v18 }
 0x258   : > { %6389 = vmatpush1.bf16.msra.mxu1 %v7682_v17 }
 0x259   : > { %1958 = vmax.xlane.f32.xlu1 %v1957_v2  ;;  %1838 = vadd.xlane.f32.xlu0 %v1837_v24  ;;  %v7696_v24 = vpack.c.bf16 %v2480_v38, %v2479_v40  ;;  %v7780_v38 = vpack.c.bf16 %v2492_v31, %v2491_v53  ;;  %v2017_v31 = vand.u32 127, %v715_v55 }
 0x25a   : > { %6390 = vmatprep.subr.bf16.mxu1 %v9885_v18 }
 0x25b   : > { %9959 = vst [vmem:[#allocation15_spill] sm:$0xff] %v7696_v24  ;;  %9965 = vst [vmem:[#allocation21_spill] sm:$0xff] %v7780_v38  ;;  %v2219_v55 = vadd.s32 4294967280, %v2017_v31 }
 0x25c   : > { %6392 = vmatpush1.bf16.msra.mxu1 %v7696_v24 }
 0x25d   : > { %1847 = vadd.xlane.f32.xlu1 %v1846_v15  ;;  %1955 = vmax.xlane.f32.xlu0 %v1954_v50  ;;  %v7710_v50 = vpack.c.bf16 %v2482_v62, %v2481_v9  ;;  %v2493_v9 = vld [vmem:[%s9843_s7 + $0xb0] sm:$0xff]  ;;  %v2494_v62 = vld [vmem:[%s9843_s7 + $0xb8] sm:$0xff]  ;;  %v7839_v7 = vsub.s32 %v2219_v55, %v7266_v59 }
 0x25e   : > { %6393 = vmatprep.subr.bf16.mxu1 %v9885_v18 }
 0x25f   : > { %9960 = vst [vmem:[#allocation16_spill] sm:$0xff] %v7710_v50  ;;  %9969 = vst [vmem:[#allocation25_spill] sm:$0xff] %v7839_v7 }
 0x260   : > { %6395 = vmatpush1.bf16.msra.mxu1 %v7710_v50 }
 0x261   : > { %1964 = vmax.xlane.f32.xlu1 %v1963_v26  ;;  %1844 = vadd.xlane.f32.xlu0 %v1843_v34  ;;  %v2484_v26 = vld [vmem:[%s9843_s7 + $0x68] sm:$0xff] }
 0x262   : > { %6396 = vmatprep.subr.bf16.mxu1 %v9885_v18 }
 0x265   : > { %1853 = vadd.xlane.f32.xlu1 %v1852_v58  ;;  %1961 = vmax.xlane.f32.xlu0 %v1960_v48  ;;  %v7724_v58 = vpack.c.bf16 %v2484_v26, %v2483_v36  ;;  %v2485_v48 = vld [vmem:[%s9843_s7 + $0x70] sm:$0xff] }
 0x266   : > { %v7604_v25 = vpop.xlane.xlu1 %1760 }
 0x267   : > { %9961 = vst [vmem:[#allocation17_spill] sm:$0xff] %v7724_v58  ;;  %6398 = vmatpush1.bf16.msra.mxu1 %v7724_v58  ;;  %v1856_v32 = vmul.f32 0.125, %v7604_v25 }
 0x268   : > { %6399 = vmatprep.subr.bf16.mxu1 %v9885_v18 }
 0x269   : > { %1970 = vmax.xlane.f32.xlu1 %v1969_v4  ;;  %1850 = vadd.xlane.f32.xlu0 %v1849_v0 }
 0x26d   : > { %1976 = vmax.xlane.f32.xlu1 %v1975_v23  ;;  %1967 = vmax.xlane.f32.xlu0 %v1966_v27  ;;  %v7738_v23 = vpack.c.bf16 %v2486_v61, %v2485_v48  ;;  %v2487_v27 = vld [vmem:[%s9843_s7 + $0x80] sm:$0xff]  ;;  %v7794_v48 = vpack.c.bf16 %v2494_v62, %v2493_v9  ;;  %v2022_v9 = vadd.s32 4294967288, %v2017_v31 }
 0x26f   : > { %9962 = vst [vmem:[#allocation18_spill] sm:$0xff] %v7738_v23  ;;  %6401 = vmatpush1.bf16.msra.mxu1 %v7738_v23  ;;  %9966 = vst [vmem:[#allocation22_spill] sm:$0xff] %v7794_v48 }
 0x270   : > { %6402 = vmatprep.subr.bf16.mxu1 %v9885_v18 }
 0x271   : > { %1982 = vmax.xlane.f32.xlu1 %v1981_v63  ;;  %1973 = vmax.xlane.f32.xlu0 %v1972_v14  ;;  %v2488_v63 = vld [vmem:[%s9843_s7 + $0x88] sm:$0xff] }
 0x272   : > { %v7752_v47 = vpack.c.bf16 %v2488_v63, %v2487_v27 }
 0x274   : > { %9963 = vst [vmem:[#allocation19_spill] sm:$0xff] %v7752_v47  ;;  %6404 = vmatpush1.bf16.msra.mxu1 %v7752_v47 }
 0x275   : > { %1979 = vmax.xlane.f32.xlu0 %v1978_v19  ;;  %6405 = vmatprep.subr.bf16.mxu1 %v9885_v18 }
 0x278   : > { %6407 = vmatpush1.bf16.msra.mxu1 %v7766_v5  ;;  %v7822_v5 = vsub.s32 %v2017_v31, %v7266_v59 }
 0x279   : > { %6408 = vmatprep.subr.bf16.mxu1 %v9885_v18 }
 0x27a   : > { %9968 = vst [vmem:[#allocation24_spill] sm:$0xff] %v7822_v5 }
 0x27c   : > { %6410 = vmatpush1.bf16.msra.mxu1 %v7780_v38 }
 0x27d   : > { %6411 = vmatprep.subr.bf16.mxu1 %v9885_v18 }
 0x280   : > { %6413 = vmatpush1.bf16.msra.mxu1 %v7794_v48  ;;  %v7818_v48 = vsub.s32 %v2022_v9, %v7266_v59  ;;  %v2224_v9 = vadd.s32 4294967272, %v2017_v31 }
 0x281   : > { %6414 = vmatprep.subr.bf16.mxu1 %v9885_v18 }
 0x282   : > { %9967 = vst [vmem:[#allocation23_spill] sm:$0xff] %v7818_v48 }
 0x286   : > { %v7606_v29 = vpop.xlane.xlu1 %1769  ;;  %v7608_v39 = vpop.xlane.xlu0 %1763 }
 0x287   : > { %v1857_v18 = vmul.f32 0.125, %v7608_v39  ;;  %v1859_v47 = vmul.f32 0.125, %v7606_v29 }
 0x289   : > { %v2026_v24 = vrot.slane %v1857_v18, %v7818_v48 }
 0x28a   : > { %v7610_v42 = vpop.xlane.xlu1 %1775  ;;  %v7612_v41 = vpop.xlane.xlu0 %1766 }
 0x28b   : > { %v1858_v38 = vmul.f32 0.125, %v7612_v41  ;;  %v1861_v41 = vmul.f32 0.125, %v7610_v42 }
 0x28d   : > { %v2032_v50 = vrot.slane %v1858_v38, %v7822_v5  ;;  %v2045_v38 = vrot.slane %v1861_v41, %v7818_v48 }
 0x28e   : > { %v7618_v51 = vpop.xlane.xlu1 %1781  ;;  %v7620_v56 = vpop.xlane.xlu0 %1772 }
 0x28f   : > { %v1860_v23 = vmul.f32 0.125, %v7620_v56  ;;  %v1863_v29 = vmul.f32 0.125, %v7618_v51  ;;  %v2036_v56 = vrot.slane %v1859_v47, %v7818_v48  ;;  %v7849_v51 = vsub.s32 %v2224_v9, %v7266_v59 }
 0x291   : > { %v2041_v17 = vrot.slane %v1860_v23, %v7822_v5  ;;  %9970 = vst [vmem:[#allocation26_spill] sm:$0xff] %v7849_v51  ;;  %v2037_v18 = vsel %vm2027_vm5, %v2036_v56, %v2032_v50  ;;  %v2054_v21 = vrot.slane %v1863_v29, %v7818_v48 }
 0x292   : > { %v7622_v6 = vpop.xlane.xlu1 %1892  ;;  %v7624_v44 = vpop.xlane.xlu0 %1778 }
 0x293   : > { %v1862_v39 = vmul.f32 0.125, %v7624_v44  ;;  %v2021_v44 = vrot.slane %v1856_v32, %v7822_v5  ;;  %v2046_v32 = vsel %vm2027_vm5, %v2045_v38, %v2041_v17 }
 0x295   : > { %v2050_v23 = vrot.slane %v1862_v39, %v7822_v5  ;;  %v2028_v55 = vsel %vm2027_vm5, %v2026_v24, %v2021_v44  ;;  %v2228_v24 = vrot.slane %v7622_v6, %v7849_v51 }
 0x296   : > { %v7626_v49 = vpop.xlane.xlu1 %1898  ;;  %v7628_v8 = vpop.xlane.xlu0 %1889 }
 0x297   : > { %v2238_v41 = vrot.slane %v7626_v49, %v7849_v51  ;;  %v2223_v50 = vrot.slane %v7628_v8, %v7839_v7  ;;  %v2055_v29 = vsel %vm2027_vm5, %v2054_v21, %v2050_v23 }
 0x299   : > { %v2230_v38 = vsel %vm2229_vm9, %v2228_v24, %v2223_v50 }
 0x29a   : > { %v7630_v16 = vpop.xlane.xlu1 %1787  ;;  %v7632_v13 = vpop.xlane.xlu0 %1895 }
 0x29b   : > { %v1865_v47 = vmul.f32 0.125, %v7630_v16 }
 0x29d   : > { %v2063_v49 = vrot.slane %v1865_v47, %v7818_v48 }
 0x29e   : > { %v7649_v37 = vpop.xlane.xlu1 %1904  ;;  %v7651_v30 = vpop.xlane.xlu0 %1784 }
 0x29f   : > { %v1864_v25 = vmul.f32 0.125, %v7651_v30  ;;  %v2234_v30 = vrot.slane %v7632_v13, %v7839_v7  ;;  %v2165_v13 = vsel %vm2164_vm6, %v2037_v18, %v2028_v55  ;;  %v2247_v21 = vrot.slane %v7649_v37, %v7849_v51 }
 0x2a1   : > { %v2059_v9 = vrot.slane %v1864_v25, %v7822_v5  ;;  %v2239_v8 = vsel %vm2229_vm9, %v2238_v41, %v2234_v30  ;;  %v2167_v25 = vsel %vm2166_vm7, %v2046_v32, %v2165_v13 }
 0x2a2   : > { %v7663_v20 = vpop.xlane.xlu1 %1793  ;;  %v7665_v57 = vpop.xlane.xlu0 %1901  ;;  %v2169_v47 = vsel %vm2168_vm8, %v2055_v29, %v2167_v25 }
 0x2a3   : > { %v2243_v56 = vrot.slane %v7665_v57, %v7839_v7  ;;  %v1867_v44 = vmul.f32 0.125, %v7663_v20  ;;  %v2366_v20 = vsel %vm2164_vm6, %v2239_v8, %v2230_v38 }
 0x2a5   : > { %v2248_v37 = vsel %vm2229_vm9, %v2247_v21, %v2243_v56  ;;  %v2072_v50 = vrot.slane %v1867_v44, %v7818_v48 }
 0x2a6   : > { %v7677_v52 = vpop.xlane.xlu1 %1910  ;;  %v7679_v43 = vpop.xlane.xlu0 %1790  ;;  %v2367_v29 = vsel %vm2166_vm7, %v2248_v37, %v2366_v20 }
 0x2a7   : > { %v1866_v17 = vmul.f32 0.125, %v7679_v43  ;;  %v2064_v43 = vsel %vm2027_vm5, %v2063_v49, %v2059_v9 }
 0x2a8   : > { %v2171_v41 = vsel %vm9912_vm10, %v2064_v43, %v2169_v47 }
 0x2a9   : > { %v2068_v30 = vrot.slane %v1866_v17, %v7822_v5 }
 0x2aa   : > { %v7691_v28 = vpop.xlane.xlu1 %1799  ;;  %v7693_v2 = vpop.xlane.xlu0 %1907 }
 0x2ab   : > { %v2252_v6 = vrot.slane %v7693_v2, %v7839_v7  ;;  %v2256_v2 = vrot.slane %v7677_v52, %v7849_v51  ;;  %v1869_v55 = vmul.f32 0.125, %v7691_v28  ;;  %v2073_v49 = vsel %vm2027_vm5, %v2072_v50, %v2068_v30 }
 0x2ad   : > { %v2257_v9 = vsel %vm2229_vm9, %v2256_v2, %v2252_v6 }
 0x2ae   : > { %v7705_v10 = vpop.xlane.xlu1 %1916  ;;  %v7707_v15 = vpop.xlane.xlu0 %1796  ;;  %v2368_v25 = vsel %vm2168_vm8, %v2257_v9, %v2367_v29 }
 0x2af   : > { %v1868_v18 = vmul.f32 0.125, %v7707_v15  ;;  %v2265_v13 = vrot.slane %v7705_v10, %v7849_v51 }
 0x2b1   : > { %v2077_v28 = vrot.slane %v1868_v18, %v7822_v5 }
 0x2b2   : > { %v7719_v34 = vpop.xlane.xlu1 %1805  ;;  %v7721_v33 = vpop.xlane.xlu0 %1913 }
 0x2b3   : > { %v2261_v15 = vrot.slane %v7721_v33, %v7839_v7  ;;  %v1871_v24 = vmul.f32 0.125, %v7719_v34  ;;  %v2081_v34 = vrot.slane %v1869_v55, %v7818_v48 }
 0x2b5   : > { %v2266_v8 = vsel %vm2229_vm9, %v2265_v13, %v2261_v15  ;;  %v2090_v38 = vrot.slane %v1871_v24, %v7818_v48 }
 0x2b6   : > { %v7733_v4 = vpop.xlane.xlu1 %1922  ;;  %v7735_v0 = vpop.xlane.xlu0 %1802  ;;  %v2369_v47 = vsel %vm9912_vm10, %v2266_v8, %v2368_v25 }
 0x2b7   : > { %v1870_v32 = vmul.f32 0.125, %v7735_v0 }
 0x2ba   : > { %v7747_v14 = vpop.xlane.xlu1 %1928  ;;  %v7749_v19 = vpop.xlane.xlu0 %1919 }
 0x2bb   : > { %v2270_v52 = vrot.slane %v7749_v19, %v7839_v7  ;;  %v2274_v19 = vrot.slane %v7733_v4, %v7849_v51  ;;  %v2283_v56 = vrot.slane %v7747_v14, %v7849_v51 }
 0x2bd   : > { %v2275_v44 = vsel %vm2229_vm9, %v2274_v19, %v2270_v52 }
 0x2be   : > { %v7761_v60 = vpop.xlane.xlu1 %1934  ;;  %v7763_v3 = vpop.xlane.xlu0 %1925  ;;  %v2370_v30 = vsel %vm9910_vm11, %v2275_v44, %v2369_v47 }
 0x2bf   : > { %v2279_v33 = vrot.slane %v7763_v3, %v7839_v7  ;;  %v2086_v3 = vrot.slane %v1870_v32, %v7822_v5  ;;  %v2292_v6 = vrot.slane %v7761_v60, %v7849_v51 }
 0x2c1   : > { %v2284_v21 = vsel %vm2229_vm9, %v2283_v56, %v2279_v33 }
 0x2c2   : > { %v7775_v46 = vpop.xlane.xlu1 %1811  ;;  %v7777_v40 = vpop.xlane.xlu0 %1931  ;;  %v2371_v15 = vsel %vm9909_vm12, %v2284_v21, %v2370_v30 }
 0x2c3   : > { %v2288_v10 = vrot.slane %v7777_v40, %v7839_v7  ;;  %v2082_v40 = vsel %vm2027_vm5, %v2081_v34, %v2077_v28  ;;  %v1873_v32 = vmul.f32 0.125, %v7775_v46 }
 0x2c5   : > { %v2293_v20 = vsel %vm2229_vm9, %v2292_v6, %v2288_v10 }
 0x2c6   : > { %v7789_v36 = vpop.xlane.xlu1 %1817  ;;  %v7791_v26 = vpop.xlane.xlu0 %1808 }
 0x2c7   : > { %v1875_v2 = vmul.f32 0.125, %v7789_v36  ;;  %v1872_v60 = vmul.f32 0.125, %v7791_v26  ;;  %v2372_v26 = vsel %vm9908_vm13, %v2293_v20, %v2371_v15 }
 0x2c9   : > { %v2095_v28 = vrot.slane %v1872_v60, %v7822_v5 }
 0x2ca   : > { %v7797_v61 = vpop.xlane.xlu1 %1823  ;;  %v7799_v27 = vpop.xlane.xlu0 %1814 }
 0x2cb   : > { %v1874_v4 = vmul.f32 0.125, %v7799_v27  ;;  %v2091_v27 = vsel %vm2027_vm5, %v2090_v38, %v2086_v3  ;;  %v1877_v37 = vmul.f32 0.125, %v7797_v61 }
 0x2cd   : > { %v2104_v50 = vrot.slane %v1874_v4, %v7822_v5  ;;  %v2117_v46 = vrot.slane %v1877_v37, %v7818_v48 }
 0x2ce   : > { %v7803_v63 = vpop.xlane.xlu1 %1829  ;;  %v7805_v11 = vpop.xlane.xlu0 %1820 }
 0x2cf   : > { %v1876_v43 = vmul.f32 0.125, %v7805_v11  ;;  %v2173_v11 = vsel %vm9910_vm11, %v2073_v49, %v2171_v41  ;;  %v1879_v9 = vmul.f32 0.125, %v7803_v63  ;;  %v2108_v41 = vrot.slane %v1875_v2, %v7818_v48 }
 0x2d0   : > { %v2175_v36 = vsel %vm9909_vm12, %v2082_v40, %v2173_v11  ;;  %v2099_v63 = vrot.slane %v1873_v32, %v7818_v48 }
 0x2d1   : > { %v2113_v52 = vrot.slane %v1876_v43, %v7822_v5  ;;  %v2109_v19 = vsel %vm2027_vm5, %v2108_v41, %v2104_v50  ;;  %v2126_v34 = vrot.slane %v1879_v9, %v7818_v48 }
 0x2d2   : > { %v7807_v54 = vpop.xlane.xlu1 %1940  ;;  %v7809_v53 = vpop.xlane.xlu0 %1826  ;;  %v2100_v25 = vsel %vm2027_vm5, %v2099_v63, %v2095_v28 }
 0x2d3   : > { %v1878_v55 = vmul.f32 0.125, %v7809_v53  ;;  %v2177_v53 = vsel %vm9908_vm13, %v2091_v27, %v2175_v36  ;;  %v2118_v8 = vsel %vm2027_vm5, %v2117_v46, %v2113_v52  ;;  %v2301_v44 = vrot.slane %v7807_v54, %v7849_v51 }
 0x2d4   : > { %v7963_v49 = vsel %vm9911_vm14, %v2177_v53, %v2372_v26  ;;  %v2178_v6 = vsel %vm2164_vm6, %v2109_v19, %v2100_v25 }
 0x2d5   : > { %v2122_v24 = vrot.slane %v1878_v55, %v7822_v5  ;;  %v2387_v38 = vrot.slane %v7963_v49, 5 }
 0x2d6   : > { %v7812_v62 = vpop.xlane.xlu1 %1946  ;;  %v7814_v45 = vpop.xlane.xlu0 %1937 }
 0x2d7   : > { %v2297_v10 = vrot.slane %v7814_v45, %v7839_v7  ;;  %v2310_v3 = vrot.slane %v7812_v62, %v7849_v51  ;;  %v2127_v45 = vsel %vm2027_vm5, %v2126_v34, %v2122_v24  ;;  %v2179_v62 = vsel %vm2166_vm7, %v2118_v8, %v2178_v6 }
 0x2d8   : > { %v2180_v27 = vsel %vm2168_vm8, %v2127_v45, %v2179_v62  ;;  %v2495_v45 = vld [vmem:[%s9843_s7 + $0xc0] sm:$0xff] }
 0x2da   : > { %v7826_v58 = vpop.xlane.xlu1 %1835  ;;  %v7828_v35 = vpop.xlane.xlu0 %1943 }
 0x2db   : > { %v2306_v33 = vrot.slane %v7828_v35, %v7839_v7  ;;  %v1881_v35 = vmul.f32 0.125, %v7826_v58  ;;  %v2302_v58 = vsel %vm2229_vm9, %v2301_v44, %v2297_v10 }
 0x2dd   : > { %v2311_v4 = vsel %vm2229_vm9, %v2310_v3, %v2306_v33  ;;  %v2135_v43 = vrot.slane %v1881_v35, %v7818_v48 }
 0x2de   : > { %v7842_v42 = vpop.xlane.xlu1 %1952  ;;  %v7844_v31 = vpop.xlane.xlu0 %1832  ;;  %v2373_v30 = vsel %vm2164_vm6, %v2311_v4, %v2302_v58  ;;  %v2496_v4 = vld [vmem:[%s9843_s7 + $0xc8] sm:$0xff] }
 0x2df   : > { %v1880_v29 = vmul.f32 0.125, %v7844_v31 }
 0x2e1   : > { %v2131_v40 = vrot.slane %v1880_v29, %v7822_v5 }
 0x2e2   : > { %v7864_v16 = vpop.xlane.xlu1 %1841  ;;  %v7866_v39 = vpop.xlane.xlu0 %1949 }
 0x2e3   : > { %v1883_v54 = vmul.f32 0.125, %v7864_v16  ;;  %v2315_v47 = vrot.slane %v7866_v39, %v7839_v7  ;;  %v2136_v16 = vsel %vm2027_vm5, %v2135_v43, %v2131_v40 }
 0x2e4   : > { %v2181_v53 = vsel %vm9912_vm10, %v2136_v16, %v2180_v27 }
 0x2e6   : > { %v7886_v23 = vpop.xlane.xlu1 %1958  ;;  %v7888_v57 = vpop.xlane.xlu0 %1838 }
 0x2e7   : > { %v1882_v21 = vmul.f32 0.125, %v7888_v57  ;;  %v2319_v57 = vrot.slane %v7842_v42, %v7849_v51  ;;  %v2328_v11 = vrot.slane %v7886_v23, %v7849_v51 }
 0x2e9   : > { %v2140_v15 = vrot.slane %v1882_v21, %v7822_v5  ;;  %v2320_v36 = vsel %vm2229_vm9, %v2319_v57, %v2315_v47  ;;  %v8036_v21 = vpack.c.bf16 %v2496_v4, %v2495_v45 }
 0x2ea   : > { %v7911_v0 = vpop.xlane.xlu1 %1847  ;;  %v7913_v17 = vpop.xlane.xlu0 %1955  ;;  %v2374_v24 = vsel %vm2166_vm7, %v2320_v36, %v2373_v30  ;;  %v9971_v30 = vmov 0.0|0.0  }
 0x2eb   : > { %v2324_v37 = vrot.slane %v7913_v17, %v7839_v7  ;;  %v1885_v39 = vmul.f32 0.125, %v7911_v0  ;;  %v2144_v17 = vrot.slane %v1883_v54, %v7818_v48  ;;  %6416 = vmatpush1.bf16.msra.mxu1 %v8036_v21 }
 0x2ec   : > { %6417 = vmatprep.subr.bf16.mxu1 %v9971_v30 }
 0x2ed   : > { %v2329_v9 = vsel %vm2229_vm9, %v2328_v11, %v2324_v37  ;;  %v2153_v41 = vrot.slane %v1885_v39, %v7818_v48  ;;  %v2145_v33 = vsel %vm2027_vm5, %v2144_v17, %v2140_v15  ;;  %v2497_v37 = vld [vmem:[%s9843_s7 + $0xd0] sm:$0xff] }
 0x2ee   : > { %v7935_v18 = vpop.xlane.xlu1 %1964  ;;  %v1845_v14 = vpop.xlane.xlu0 %1844  ;;  %v2375_v10 = vsel %vm2168_vm8, %v2329_v9, %v2374_v24  ;;  %v2182_v40 = vsel %vm9910_vm11, %v2145_v33, %v2181_v53 }
 0x2ef   : > { %v1884_v20 = vmul.f32 0.125, %v1845_v14  ;;  %v2337_v42 = vrot.slane %v7935_v18, %v7849_v51 }
 0x2f1   : > { %v2149_v26 = vrot.slane %v1884_v20, %v7822_v5  ;;  %v8044_v20 = vsel %vm9902_vm15, 0.0, %v2387_v38 }
 0x2f2   : > { %v1854_v13 = vpop.xlane.xlu1 %1853  ;;  %v1962_v61 = vpop.xlane.xlu0 %1961  ;;  %v2439_v39 = vrot.slane %v8044_v20, 5  ;;  %v2397_v15 = vrot.slane %v8044_v20, 1  ;;  %v2450_v53 = vrot.slane %v8044_v20, 6 }
 0x2f3   : > { %v2333_v14 = vrot.slane %v1962_v61, %v7839_v7  ;;  %v1887_v32 = vmul.f32 0.125, %v1854_v13  ;;  %v821_v61 = vld [vmem:[%s9840_s4] sm:$0x1]  ;;  %v2154_v34 = vsel %vm2027_vm5, %v2153_v41, %v2149_v26 }
 0x2f4   : > { %v2183_v43 = vsel %vm9909_vm12, %v2154_v34, %v2182_v40 }
 0x2f5   : > { %v2338_v18 = vsel %vm2229_vm9, %v2337_v42, %v2333_v14  ;;  %v2162_v29 = vrot.slane %v1887_v32, %v7818_v48  ;;  %v2408_v32 = vrot.slane %v8044_v20, 2 }
 0x2f6   : > { %v1971_v31 = vpop.xlane.xlu1 %1970  ;;  %v1851_v56 = vpop.xlane.xlu0 %1850 }
 0x2f7   : > { %v1886_v55 = vmul.f32 0.125, %v1851_v56  ;;  %v2346_v52 = vrot.slane %v1971_v31, %v7849_v51  ;;  %v2376_v56 = vsel %vm9912_vm10, %v2338_v18, %v2375_v10  ;;  %vm1111_vm10 = vcmask 850944  }
 0x2f9   : > { %v2158_v23 = vrot.slane %v1886_v55, %v7822_v5  ;;  %v2498_v55 = vld [vmem:[%s9843_s7 + $0xd8] sm:$0xff] }
 0x2fa   : > { %v1977_v2 = vpop.xlane.xlu1 %1976  ;;  %v1968_v60 = vpop.xlane.xlu0 %1967  ;;  %v8058_v16 = vpack.c.bf16 %v2498_v55, %v2497_v37 }
 0x2fb   : > { %v2342_v50 = vrot.slane %v1968_v60, %v7839_v7  ;;  %v2355_v28 = vrot.slane %v1977_v2, %v7849_v51  ;;  %v2163_v25 = vsel %vm2027_vm5, %v2162_v29, %v2158_v23 }
 0x2fc   : > { %v2184_v2 = vsel %vm9908_vm13, %v2163_v25, %v2183_v43  ;;  %6419 = vmatpush1.bf16.msra.mxu1 %v8058_v16 }
 0x2fd   : > { %v2347_v63 = vsel %vm2229_vm9, %v2346_v52, %v2342_v50 }
 0x2fe   : > { %v1974_v0 = vpop.xlane.xlu0 %1973  ;;  %v1983_v46 = vpop.xlane.xlu1 %1982  ;;  %v2377_v62 = vsel %vm9910_vm11, %v2347_v63, %v2376_v56  ;;  %vm1103_vm11 = vcmask 588800  }
 0x2ff   : > { %v2351_v13 = vrot.slane %v1974_v0, %v7839_v7  ;;  %v2364_v44 = vrot.slane %v1983_v46, %v7849_v51 }
 0x301   : > { %v891_v19 = vpop.f32.mrb[4].mxu0  ;;  %v2356_v8 = vsel %vm2229_vm9, %v2355_v28, %v2351_v13  ;;  %v2420_v28 = vrot.slane %v8044_v20, 3 }
 0x302   : > { %v892_v3 = vadd.f32 %v891_v19, %v821_v61  ;;  %v6252_v35 = vpop.f32.mrb[5].mxu0  ;;  %v1980_v31 = vpop.xlane.xlu0 %1979  ;;  %v2378_v54 = vsel %vm9909_vm12, %v2356_v8, %v2377_v62  ;;  %vm1099_vm12 = vcmask 457728  }
 0x303   : > { %v2360_v6 = vrot.slane %v1980_v31, %v7839_v7  ;;  %v2432_v35 = vrot.slane %v8044_v20, 4 }
 0x304   : > { %v895_v58 = vmax.f32 %v892_v3, 0.0 }
 0x305   : > { %v2365_v47 = vsel %vm2229_vm9, %v2364_v44, %v2360_v6 }
 0x306   : > { %v2379_v60 = vsel %vm9908_vm13, %v2365_v47, %v2378_v54  ;;  %6256 = vmatmul.mubr.msk.f32.vlgmr.msra.gmra.mrb[6].mxu0 %vm898_vm2, %v895_v58  ;;  %vm9907_vm2 = vcmask 1044480   ;;  %vm1097_vm13 = vcmask 392192  }
 0x307   : > { %v2383_v27 = vsel %vm9911_vm14, %v2184_v2, %v2379_v60 }
 0x308   : > { %v2388_v57 = vrot.slane %v2383_v27, 5 }
 0x30a   : > { %v8064_v14 = vsel %vm9902_vm15, %v2387_v38, %v2388_v57  ;;  %v2394_v11 = vsel %vm9902_vm15, %v2388_v57, 0.0 }
 0x30b   : > { %v2440_v50 = vrot.slane %v8064_v14, 5  ;;  %v2398_v17 = vrot.slane %v8064_v14, 1  ;;  %v2400_v36 = vrot.slane %v2394_v11, 1  ;;  %v2409_v42 = vrot.slane %v8064_v14, 2 }
 0x30c   : > { %v2411_v26 = vrot.slane %v2394_v11, 2  ;;  %v2451_v13 = vrot.slane %v8064_v14, 6  ;;  %v2421_v41 = vrot.slane %v8064_v14, 3  ;;  %v2442_v46 = vrot.slane %v2394_v11, 5 }
 0x30d   : > { %v2441_v49 = vsel %vm9902_vm15, %v2439_v39, %v2440_v50  ;;  %v2399_v38 = vsel %vm9901_vm0, %v2397_v15, %v2398_v17  ;;  %v2401_v0 = vsel %vm9901_vm0, %v2398_v17, %v2400_v36  ;;  %v2410_v9 = vsel %vm9900_vm1, %v2408_v32, %v2409_v42  ;;  %v897_v32 = vld [vmem:[%s9842_s6] sm:$0x1] }
 0x30e   : > { %2444 = vrot.lane.b32.xlu1 %v2441_v49, %s9904_s18  ;;  %v6654_v52 = vpack.i.bf16 %v2401_v0, %v2399_v38  ;;  %v2412_v23 = vsel %vm9900_vm1, %v2409_v42, %v2411_v26  ;;  %v2452_v18 = vsel %vm9903_vm4, %v2450_v53, %v2451_v13  ;;  %v2422_v24 = vsel %vm9907_vm2, %v2420_v28, %v2421_v41 }
 0x30f   : > { %v6659_v61 = vpack.i.bf16 %v2412_v23, %v2410_v9  ;;  %v2453_v33 = vrot.slane %v2394_v11, 6  ;;  %v2443_v29 = vsel %vm9902_vm15, %v2440_v50, %v2442_v46  ;;  %v2423_v63 = vrot.slane %v2394_v11, 3  ;;  %v2593_v23 = vld [vmem:[%s9845_s9 + $0x8] sm:$0xff] }
 0x310   : > { %6655 = vrot.lane.b32.xlu0 %v6654_v52, %s9904_s18  ;;  %v2433_v8 = vrot.slane %v8064_v14, 4  ;;  %vm9906_vm1 = vcmask 1043456   ;;  %vm9913_vm0 = vcmask 261120   ;;  %vm1101_vm15 = vcmask 523264   ;;  %v2592_v52 = vld [vmem:[%s9845_s9] sm:$0xff] }
 0x311   : > { %v2454_v19 = vsel %vm9903_vm4, %v2451_v13, %v2453_v33  ;;  %v2424_v10 = vsel %vm9907_vm2, %v2421_v41, %v2423_v63  ;;  %vm1109_vm4 = vcmask 785408   ;;  %v2435_v40 = vrot.slane %v2394_v11, 4 }
 0x312   : > { %6660 = vrot.lane.b32.xlu1 %v6659_v61, %s9972_s30  ;;  %v2434_v25 = vsel %vm9906_vm1, %v2432_v35, %v2433_v8  ;;  %v984_v49 = vsub.s32 0, %v7266_v59  ;;  %v9974_v61 = vmov 0.0   ;;  %vm1095_vm2 = vcmask 326656   ;;  %v9993_v59 = vld [vmem:[#allocation18_spill] sm:$0xff] }
 0x313   : > { %v2436_v60 = vsel %vm9906_vm1, %v2433_v8, %v2435_v40  ;;  %vm1091_vm1 = vcmask 195584  }
 0x314   : > { %2455 = vrot.lane.b32.xlu0 %v2452_v18, %s9972_s30  ;;  %v8129_v18 = vpack.c.bf16 %v2593_v23, %v2592_v52 }
 0x316   : > { %2425 = vrot.lane.b32.xlu1 %v2422_v24, %s9973_s10  ;;  %9975 = vst [vmem:[#allocation27_spill] sm:$0xff] %v8129_v18  ;;  %6421 = vmatprep.subr.bf16.mxu0 %v8129_v18 }
 0x317   : > { %6467 = vmatprep.subr.bf16.mxu1 %v8129_v18  ;;  %6423 = vmatpush3.bf16.msra.mxu0 %v8129_v18 }
 0x318   : > { %2446 = vrot.lane.b32.xlu0 %v2443_v29, %s9904_s18  ;;  %6424 = vmatprep.subr.bf16.mxu0 %v9971_v30 }
 0x31a   : > { %2457 = vrot.lane.b32.xlu1 %v2454_v19, %s9972_s30 }
 0x31c   : > { %2427 = vrot.lane.b32.xlu0 %v2424_v10, %s9973_s10 }
 0x380   : > { %v2445_v34 = vpop.permute.xlu1 %2444 }
 0x381   : > { %v2467_v45 = vsel %vm9913_vm0, %v2434_v25, %v2445_v34 }
 0x382   : > { %v6656_v3 = vpop.permute.xlu0 %6655 }
 0x383   : > { %v6657_v31 = vunpack.i.l.bf16 %v6656_v3  ;;  %v6658_v62 = vunpack.i.h.bf16 %v6656_v3 }
 0x384   : > { %v6661_v56 = vpop.permute.xlu1 %6660 }
 0x385   : > { %v6662_v44 = vunpack.i.l.bf16 %v6661_v56  ;;  %v2461_v6 = vsel %vm9913_vm0, %v8044_v20, %v6657_v31  ;;  %v6663_v2 = vunpack.i.h.bf16 %v6661_v56  ;;  %v2462_v37 = vsel %vm9913_vm0, %v8064_v14, %v6658_v62 }
 0x386   : > { %v2456_v4 = vpop.permute.xlu0 %2455 }
 0x387   : > { %v2469_v58 = vsel %vm1101_vm15, %v2467_v45, %v2456_v4  ;;  %v2463_v43 = vsel %vm1101_vm15, %v2461_v6, %v6662_v44  ;;  %v2464_v11 = vsel %vm1101_vm15, %v2462_v37, %v6663_v2 }
 0x388   : > { %v2426_v54 = vpop.permute.xlu1 %2425  ;;  %6058 = vmatprep.mubr.msk.f32.mxu1 %vm1109_vm4, %v2469_v58 }
 0x389   : > { %v2465_v47 = vsel %vm1109_vm4, %v2463_v43, %v2426_v54 }
 0x38a   : > { %v2447_v27 = vpop.permute.xlu0 %2446  ;;  %2570 = vmatmul.mubr.f32.vlgmr.msra.gmra.mrb[2].mxu1 %v2465_v47 }
 0x38b   : > { %v2468_v20 = vsel %vm9913_vm0, %v2436_v60, %v2447_v27  ;;  %6469 = vmatpush3.bf16.msra.mxu1 %v8129_v18 }
 0x38c   : > { %v2458_v55 = vpop.permute.xlu1 %2457  ;;  %6513 = vmatprep.subr.bf16.mxu1 %v8129_v18 }
 0x38d   : > { %v2470_v57 = vsel %vm1101_vm15, %v2468_v20, %v2458_v55 }
 0x38e   : > { %v2428_v39 = vpop.permute.xlu0 %2427  ;;  %6059 = vmatprep.mubr.msk.f32.mxu1 %vm1109_vm4, %v2470_v57 }
 0x38f   : > { %v2466_v15 = vsel %vm1109_vm4, %v2464_v11, %v2428_v39 }
 0x390   : > { %2575 = vmatmul.mubr.f32.gmra.mrb[4].mxu1 %v2466_v15  ;;  %v9985_v15 = vld [vmem:[#allocation12_spill] sm:$0xff] }
 0x3d9   : > { %v972_v50 = vpop.f32.mrb[6].mxu0 }
 0x3da   : > { %v973_v17 = vadd.f32 %v972_v50, %v897_v32  ;;  %v6257_v36 = vpop.f32.mrb[7].mxu0 }
 0x3dc   : > { %v6057_v42 = vmul.f32 -1.442695, %v973_v17 }
 0x3de   : > { %6679 = vpow2.f32 %v6057_v42 }
 0x3e8   : > { %v6680_v14 = vpop.eup %6679 }
 0x3e9   : > { %v979_v26 = vadd.f32 1.0, %v6680_v14 }
 0x3eb   : > { %6681 = vrcp.f32 %v979_v26 }
 0x3f5   : > { %v6682_v38 = vpop.eup %6681 }
 0x3f6   : > { %v985_v0 = vrot.slane %v6682_v38, %v984_v49 }
 0x3f8   : > { %v993_v9 = vrot.slane %v985_v0, %v7275_v1  ;;  %v986_v41 = vcombine.high %v985_v0, %v9974_v61 }
 0x3fa   : > { %v1008_v13 = vrot.slane %v993_v9, %v7296_v12  ;;  %v1001_v53 = vcombine.high %v993_v9, %v9974_v61  ;;  %v1000_v24 = vrot.slane %v986_v41, %v7275_v1  ;;  %v9987_v9 = vld [vmem:[#allocation14_spill] sm:$0xff]  ;;  %v9988_v41 = vld [vmem:[#allocation15_spill] sm:$0xff] }
 0x3fc   : > { %1064 = vrot.lane.b32.xlu0 %v1008_v13, %s9972_s30  ;;  %v1031_v28 = vcombine.high %v1008_v13, %v9974_v61  ;;  %v1015_v46 = vrot.slane %v1001_v53, %v7296_v12  ;;  %v1023_v33 = vrot.slane %v1000_v24, %v7296_v12  ;;  %v1016_v19 = vcombine.high %v1000_v24, %v9974_v61 }
 0x3fe   : > { %1036 = vrot.lane.b32.xlu1 %v1031_v28, %s9976_s19  ;;  %v1032_v29 = vcombine.high %v1015_v46, %v9974_v61  ;;  %v1033_v63 = vcombine.high %v1023_v33, %v9974_v61  ;;  %v1030_v10 = vrot.slane %v1016_v19, %v7296_v12 }
 0x400   : > { %1040 = vrot.lane.b32.xlu0 %v1015_v46, %s9977_s20  ;;  %v1034_v34 = vcombine.high %v1030_v10, %v9974_v61 }
 0x402   : > { %1067 = vrot.lane.b32.xlu1 %v1031_v28, %s9953_s15 }
 0x404   : > { %1048 = vrot.lane.b32.xlu0 %v1023_v33, %s9904_s18  ;;  %s9982_s18 = smov 104  }
 0x406   : > { %1044 = vrot.lane.b32.xlu1 %v1032_v29, %s9978_s28 }
 0x408   : > { %1070 = vrot.lane.b32.xlu0 %v1015_v46, %s9979_s26 }
 0x40a   : > { %1052 = vrot.lane.b32.xlu1 %v1033_v63, %s9955_s17 }
 0x40c   : > { %1076 = vrot.lane.b32.xlu0 %v1023_v33, %s9973_s10 }
 0x40e   : > { %1073 = vrot.lane.b32.xlu1 %v1032_v29, %s9980_s29  ;;  %v9989_v29 = vld [vmem:[#allocation16_spill] sm:$0xff] }
 0x410   : > { %1056 = vrot.lane.b32.xlu0 %v1030_v10, %s9981_s23 }
 0x412   : > { %1079 = vrot.lane.b32.xlu1 %v1033_v63, %s9982_s18  ;;  %v9990_v63 = vld [vmem:[#allocation10_spill] sm:$0xff] }
 0x414   : > { %1082 = vrot.lane.b32.xlu0 %v1030_v10, %s9983_s0  ;;  %v9991_v10 = vld [vmem:[#allocation11_spill] sm:$0xff] }
 0x416   : > { %1060 = vrot.lane.b32.xlu1 %v1034_v34, %s9954_s16 }
 0x41a   : > { %1085 = vrot.lane.b32.xlu1 %v1034_v34, %s9984_s1 }
 0x45d   : > { %v2571_v8 = vpop.f32.mrb[2].mxu1 }
 0x45e   : > { %v6060_v3 = vmul.f32 -1.442695, %v2571_v8  ;;  %v2573_v35 = vpop.f32.mrb[3].mxu1 }
 0x45f   : > { %v9992_v35 = vld [vmem:[#allocation17_spill] sm:$0xff] }
 0x460   : > { %6683 = vpow2.f32 %v6060_v3 }
 0x463   : > { %v2576_v31 = vpop.f32.mrb[4].mxu1 }
 0x464   : > { %v6061_v56 = vmul.f32 -1.442695, %v2576_v31  ;;  %v2578_v25 = vpop.f32.mrb[5].mxu1  ;;  %v9995_v31 = vld [vmem:[#allocation20_spill] sm:$0xff] }
 0x465   : > { %v9997_v25 = vld [vmem:[#allocation22_spill] sm:$0xff] }
 0x466   : > { %6685 = vpow2.f32 %v6061_v56  ;;  %v9996_v56 = vld [vmem:[#allocation21_spill] sm:$0xff] }
 0x46a   : > { %v6684_v44 = vpop.eup %6683 }
 0x46b   : > { %v2586_v6 = vadd.f32 1.0, %v6684_v44 }
 0x46d   : > { %6687 = vrcp.f32 %v2586_v6 }
 0x46e   : > { %v1065_v45 = vpop.permute.xlu0 %1064 }
 0x470   : > { %v6686_v4 = vpop.eup %6685  ;;  %v1037_v40 = vpop.permute.xlu1 %1036 }
 0x471   : > { %v2587_v62 = vadd.f32 1.0, %v6686_v4  ;;  %v1088_v37 = vsel %vm809_vm3, %v1008_v13, %v1037_v40 }
 0x472   : > { %v1041_v58 = vpop.permute.xlu0 %1040 }
 0x473   : > { %6689 = vrcp.f32 %v2587_v62  ;;  %v1090_v39 = vsel %vm9911_vm14, %v1088_v37, %v1041_v58 }
 0x474   : > { %v1068_v43 = vpop.permute.xlu1 %1067 }
 0x476   : > { %v1049_v54 = vpop.permute.xlu0 %1048 }
 0x477   : > { %v6688_v47 = vpop.eup %6687 }
 0x478   : > { %v1045_v2 = vpop.permute.xlu1 %1044  ;;  %6262 = vmatprep.mubr.msk.f32.mxu0 %vm9911_vm14, %v6688_v47 }
 0x479   : > { %v1092_v11 = vsel %vm1091_vm1, %v1090_v39, %v1045_v2  ;;  %vm1105_vm1 = vcmask 654336  }
 0x47a   : > { %v1071_v60 = vpop.permute.xlu0 %1070  ;;  %v1094_v17 = vsel %vm9913_vm0, %v1092_v11, %v1049_v54  ;;  %vm1115_vm0 = vcmask 982016  }
 0x47c   : > { %v1053_v27 = vpop.permute.xlu1 %1052 }
 0x47d   : > { %v6690_v20 = vpop.eup %6689  ;;  %v1096_v36 = vsel %vm1095_vm2, %v1094_v17, %v1053_v27  ;;  %vm1113_vm2 = vcmask 916480  }
 0x47e   : > { %6263 = vmatmul.mubr.msk.f32.vlgmr.msra.gmra.mrb[8].mxu0 %vm9911_vm14, %v6690_v20  ;;  %v1077_v55 = vpop.permute.xlu0 %1076  ;;  %vm1107_vm14 = vcmask 719872  }
 0x47f   : > { %6426 = vmatpush1.bf16.msra.mxu0 %v7644_v22  ;;  %v9986_v22 = vld [vmem:[#allocation13_spill] sm:$0xff] }
 0x480   : > { %v1074_v57 = vpop.permute.xlu1 %1073  ;;  %6427 = vmatprep.subr.bf16.mxu0 %v9971_v30 }
 0x482   : > { %v1057_v50 = vpop.permute.xlu0 %1056 }
 0x483   : > { %6429 = vmatpush1.bf16.msra.mxu0 %v9985_v15  ;;  %v1098_v42 = vsel %vm1097_vm13, %v1096_v36, %v1057_v50 }
 0x484   : > { %v1080_v32 = vpop.permute.xlu1 %1079  ;;  %6430 = vmatprep.subr.bf16.mxu0 %v9971_v30 }
 0x486   : > { %v1083_v61 = vpop.permute.xlu0 %1082 }
 0x487   : > { %6432 = vmatpush1.bf16.msra.mxu0 %v9986_v22 }
 0x488   : > { %v1061_v14 = vpop.permute.xlu1 %1060  ;;  %6433 = vmatprep.subr.bf16.mxu0 %v9971_v30 }
 0x489   : > { %v1100_v26 = vsel %vm1099_vm12, %v1098_v42, %v1061_v14  ;;  %vm10023_vm12 = vcmask 1046534  }
 0x48a   : > { %v1102_v38 = vsel %vm1101_vm15, %v1100_v26, %v1065_v45 }
 0x48b   : > { %v1104_v0 = vsel %vm1103_vm11, %v1102_v38, %v1068_v43  ;;  %6435 = vmatpush1.bf16.msra.mxu0 %v9987_v9 }
 0x48c   : > { %v1106_v52 = vsel %vm1105_vm1, %v1104_v0, %v1071_v60  ;;  %6436 = vmatprep.subr.bf16.mxu0 %v9971_v30  ;;  %v1086_v28 = vpop.permute.xlu1 %1085 }
 0x48d   : > { %v1108_v23 = vsel %vm1107_vm14, %v1106_v52, %v1074_v57  ;;  %vm10025_vm14 = vmmov %vm10023_vm12 }
 0x48e   : > { %v1110_v13 = vsel %vm1109_vm4, %v1108_v23, %v1077_v55 }
 0x48f   : > { %v1112_v53 = vsel %vm1111_vm10, %v1110_v13, %v1080_v32  ;;  %6438 = vmatpush1.bf16.msra.mxu0 %v9988_v41 }
 0x490   : > { %v1114_v46 = vsel %vm1113_vm2, %v1112_v53, %v1083_v61  ;;  %6439 = vmatprep.subr.bf16.mxu0 %v9971_v30  ;;  %vm10027_vm2 = vcmask 1047559  }
 0x491   : > { %v1116_v24 = vsel %vm1115_vm0, %v1114_v46, %v1086_v28  ;;  %vm10019_vm0 = vcmask 1044484  }
 0x492   : > { %v1120_v33 = vrot.slane %v1116_v24, %v984_v49  ;;  %v9994_v49 = vld [vmem:[#allocation19_spill] sm:$0xff]  ;;  %vm10020_vm10 = vmmov %vm10019_vm0 }
 0x493   : > { %6441 = vmatpush1.bf16.msra.mxu0 %v9989_v29  ;;  %vm10022_vm11 = vmmov %vm10019_vm0 }
 0x494   : > { %v1121_v19 = vmul.f32 %v1120_v33, %v9990_v63  ;;  %v1122_v34 = vmul.f32 %v1120_v33, %v9991_v10  ;;  %6442 = vmatprep.subr.bf16.mxu0 %v9971_v30  ;;  %vm10026_vm1 = vmmov %vm10019_vm0 }
 0x496   : > { %v8184_v8 = vadd.f32 %v1121_v19, %v1121_v19  ;;  %v8186_v3 = vadd.f32 %v1122_v34, %v1122_v34 }
 0x497   : > { %6444 = vmatpush1.bf16.msra.mxu0 %v9992_v35 }
 0x498   : > { %2683 = vrot.lane.b32.xlu1 %v8186_v3, %s9984_s1  ;;  %2681 = vrot.lane.b32.xlu0 %v8184_v8, %s9984_s1 }
 0x499   : > { %6445 = vmatprep.subr.bf16.mxu0 %v9971_v30 }
 0x49b   : > { %6447 = vmatpush1.bf16.msra.mxu0 %v9993_v59 }
 0x49c   : > { %2689 = vrot.lane.b32.xlu1 %v8186_v3, %s9983_s0  ;;  %2687 = vrot.lane.b32.xlu0 %v8184_v8, %s9983_s0 }
 0x49d   : > { %6448 = vmatprep.subr.bf16.mxu0 %v9971_v30 }
 0x49f   : > { %6450 = vmatpush1.bf16.msra.mxu0 %v9994_v49 }
 0x4a0   : > { %2695 = vrot.lane.b32.xlu1 %v8186_v3, %s9982_s18  ;;  %2693 = vrot.lane.b32.xlu0 %v8184_v8, %s9982_s18 }
 0x4a1   : > { %6451 = vmatprep.subr.bf16.mxu0 %v9971_v30 }
 0x4a3   : > { %6453 = vmatpush1.bf16.msra.mxu0 %v9995_v31 }
 0x4a4   : > { %2701 = vrot.lane.b32.xlu1 %v8186_v3, %s9973_s10  ;;  %2699 = vrot.lane.b32.xlu0 %v8184_v8, %s9973_s10 }
 0x4a5   : > { %6454 = vmatprep.subr.bf16.mxu0 %v9971_v30 }
 0x4a7   : > { %6456 = vmatpush1.bf16.msra.mxu0 %v9996_v56 }
 0x4a8   : > { %2707 = vrot.lane.b32.xlu1 %v8186_v3, %s9980_s29  ;;  %2705 = vrot.lane.b32.xlu0 %v8184_v8, %s9980_s29 }
 0x4a9   : > { %6457 = vmatprep.subr.bf16.mxu0 %v9971_v30 }
 0x4ab   : > { %6459 = vmatpush1.bf16.msra.mxu0 %v9997_v25 }
 0x4ac   : > { %2713 = vrot.lane.b32.xlu1 %v8186_v3, %s9979_s26  ;;  %2711 = vrot.lane.b32.xlu0 %v8184_v8, %s9979_s26 }
 0x4ad   : > { %6460 = vmatprep.subr.bf16.mxu0 %v9971_v30 }
 0x4af   : > { %6462 = vmatpush1.bf16.msra.mxu0 %v8036_v21 }
 0x4b0   : > { %2719 = vrot.lane.b32.xlu1 %v8186_v3, %s9953_s15  ;;  %2717 = vrot.lane.b32.xlu0 %v8184_v8, %s9953_s15 }
 0x4b1   : > { %6463 = vmatprep.subr.bf16.mxu0 %v9971_v30 }
 0x4b3   : > { %6465 = vmatpush1.bf16.msra.mxu0 %v8058_v16 }
 0x4b4   : > { %2725 = vrot.lane.b32.xlu1 %v8186_v3, %s9972_s30  ;;  %2723 = vrot.lane.b32.xlu0 %v8184_v8, %s9972_s30 }
 0x4b5   : > { %6470 = vmatprep.subr.bf16.mxu0 %v9971_v30 }
 0x4b8   : > { %2731 = vrot.lane.b32.xlu1 %v8186_v3, %s9954_s16  ;;  %2729 = vrot.lane.b32.xlu0 %v8184_v8, %s9954_s16 }
 0x4bc   : > { %2737 = vrot.lane.b32.xlu1 %v8186_v3, %s9981_s23  ;;  %2735 = vrot.lane.b32.xlu0 %v8184_v8, %s9981_s23 }
 0x4c0   : > { %2743 = vrot.lane.b32.xlu1 %v8186_v3, %s9955_s17  ;;  %2741 = vrot.lane.b32.xlu0 %v8184_v8, %s9955_s17 }
 0x4c4   : > { %2749 = vrot.lane.b32.xlu1 %v8186_v3, %s9998_s2  ;;  %2747 = vrot.lane.b32.xlu0 %v8184_v8, %s9998_s2 }
 0x4c8   : > { %2755 = vrot.lane.b32.xlu1 %v8186_v3, %s9978_s28  ;;  %2753 = vrot.lane.b32.xlu0 %v8184_v8, %s9978_s28 }
 0x4cc   : > { %2761 = vrot.lane.b32.xlu1 %v8186_v3, %s9977_s20  ;;  %2759 = vrot.lane.b32.xlu0 %v8184_v8, %s9977_s20 }
 0x4d0   : > { %2767 = vrot.lane.b32.xlu1 %v8186_v3, %s9976_s19  ;;  %2765 = vrot.lane.b32.xlu0 %v8184_v8, %s9976_s19 }
 0x50a   : > { %v8264_v21 = vpop.permute.xlu0 %2681  ;;  %v8268_v44 = vpop.permute.xlu1 %2683 }
 0x50e   : > { %v8266_v16 = vpop.permute.xlu0 %2687  ;;  %v8274_v58 = vpop.permute.xlu1 %2689 }
 0x50f   : > { %v2771_v41 = vcombine.low %v8184_v8, %v8266_v16 }
 0x512   : > { %v8270_v45 = vpop.permute.xlu0 %2693  ;;  %v8286_v2 = vpop.permute.xlu1 %2695 }
 0x513   : > { %v2787_v13 = vcombine.low %v8264_v21, %v8270_v45  ;;  %v3059_v49 = vcombine.low %v8268_v44, %v8286_v2 }
 0x515   : > { %v8400_v24 = vrot.slane %v2787_v13, %v7275_v1 }
 0x516   : > { %v8284_v47 = vpop.permute.xlu0 %2699  ;;  %v8298_v27 = vpop.permute.xlu1 %2701 }
 0x51a   : > { %v8292_v60 = vpop.permute.xlu0 %2705  ;;  %v8306_v37 = vpop.permute.xlu1 %2707 }
 0x51e   : > { %v8304_v20 = vpop.permute.xlu0 %2711  ;;  %v8318_v57 = vpop.permute.xlu1 %2713 }
 0x51f   : > { %v2803_v61 = vcombine.low %v8284_v47, %v8304_v20  ;;  %v3075_v31 = vcombine.low %v8298_v27, %v8318_v57 }
 0x521   : > { %v2811_v33 = vrot.slane %v2803_v61, %v7275_v1 }
 0x522   : > { %v8312_v55 = vpop.permute.xlu0 %2717  ;;  %v8326_v11 = vpop.permute.xlu1 %2719 }
 0x523   : > { %v2819_v52 = vcombine.low %v8292_v60, %v8312_v55  ;;  %v3091_v19 = vcombine.low %v8306_v37, %v8326_v11 }
 0x525   : > { %v2827_v28 = vrot.slane %v2819_v52, %v7275_v1 }
 0x526   : > { %v8324_v39 = vpop.permute.xlu0 %2723  ;;  %v8338_v32 = vpop.permute.xlu1 %2725 }
 0x527   : > { %10001 = vst [vmem:[#allocation14_spill] sm:$0xff] %v8338_v32  ;;  %v2867_v34 = vcombine.low %v2811_v33, %v2827_v28 }
 0x52a   : > { %v8332_v15 = vpop.permute.xlu0 %2729  ;;  %v8346_v17 = vpop.permute.xlu1 %2731 }
 0x52b   : > { %10002 = vst [vmem:[#allocation15_spill] sm:$0xff] %v8346_v17 }
 0x52e   : > { %v8344_v50 = vpop.permute.xlu0 %2735  ;;  %v8358_v22 = vpop.permute.xlu1 %2737 }
 0x52f   : > { %10003 = vst [vmem:[#allocation16_spill] sm:$0xff] %v8358_v22  ;;  %v2907_v35 = vcombine.low %v8324_v39, %v8344_v50 }
 0x531   : > { %v8430_v52 = vrot.slane %v2907_v35, %v7275_v1 }
 0x532   : > { %v8352_v36 = vpop.permute.xlu0 %2741  ;;  %v8366_v14 = vpop.permute.xlu1 %2743 }
 0x533   : > { %10004 = vst [vmem:[#allocation10_spill] sm:$0xff] %v8366_v14  ;;  %v2923_v29 = vcombine.low %v8332_v15, %v8352_v36 }
 0x536   : > { %v8364_v42 = vpop.permute.xlu0 %2747  ;;  %v8378_v38 = vpop.permute.xlu1 %2749 }
 0x537   : > { %10005 = vst [vmem:[#allocation11_spill] sm:$0xff] %v8378_v38 }
 0x53a   : > { %v8372_v26 = vpop.permute.xlu0 %2753  ;;  %v8382_v9 = vpop.permute.xlu1 %2755 }
 0x53e   : > { %v8380_v0 = vpop.permute.xlu0 %2759  ;;  %v8392_v53 = vpop.permute.xlu1 %2761 }
 0x53f   : > { %10006 = vst [vmem:[#allocation17_spill] sm:$0xff] %v8392_v53  ;;  %v3211_v35 = vcombine.low %v8378_v38, %v8392_v53  ;;  %v2868_v53 = vcombine.high %v2811_v33, %v2827_v28 }
 0x541   : > { %v3219_v5 = vrot.slane %v3211_v35, %v7275_v1  ;;  %v2882_v33 = vrot.slane %v2868_v53, %v7296_v12 }
 0x542   : > { %v8386_v23 = vpop.permute.xlu0 %2765  ;;  %v8419_v56 = vpop.permute.xlu1 %2767 }
 0x543   : > { %v2955_v46 = vcombine.low %v8372_v26, %v8386_v23  ;;  %v3227_v13 = vcombine.low %v8382_v9, %v8419_v56 }
 0x545   : > { %v8413_v59 = vrot.slane %v2955_v46, %v7275_v1  ;;  %v3067_v46 = vrot.slane %v3059_v49, %v7275_v1  ;;  %v3235_v49 = vrot.slane %v3227_v13, %v7275_v1 }
 0x551   : > { %v6264_v6 = vpop.f32.mrb[8].mxu0 }
 0x552   : > { %v2676_v4 = vmul.f32 %v6264_v6, %v9991_v10  ;;  %v2666_v40 = vpop.f32.mrb[9].mxu0  ;;  %v2779_v10 = vrot.slane %v2771_v41, %v7275_v1  ;;  %v8423_v6 = vrot.slane %v2923_v29, %v7275_v1  ;;  %v2875_v41 = vrot.slane %v2867_v34, %v7296_v12 }
 0x553   : > { %v2675_v62 = vmul.f32 %v2666_v40, %v9990_v63  ;;  %v2939_v63 = vcombine.low %v8364_v42, %v8380_v0  ;;  %v3043_v40 = vcombine.low %v8186_v3, %v8274_v58  ;;  %v3083_v29 = vrot.slane %v3075_v31, %v7275_v1 }
 0x554   : > { %v8276_v43 = vadd.f32 %v2676_v4, %v2676_v4  ;;  %v2835_v25 = vcombine.low %v2779_v10, %v8400_v24  ;;  %v3179_v34 = vcombine.low %v8338_v32, %v8358_v22  ;;  %v3275_v32 = vcombine.low %v3219_v5, %v3235_v49 }
 0x555   : > { %v8278_v54 = vadd.f32 %v2675_v62, %v2675_v62  ;;  %v2947_v4 = vrot.slane %v2939_v63, %v7275_v1  ;;  %v3099_v62 = vrot.slane %v3091_v19, %v7275_v1  ;;  %v3195_v63 = vcombine.low %v8346_v17, %v8366_v14 }
 0x556   : > { %9999 = vst [vmem:[#allocation12_spill] sm:$0xff] %v8276_v43  ;;  %4191 = vrot.lane.b32.xlu1 %v8276_v43, %s9984_s1  ;;  %v2971_v19 = vcombine.low %v8430_v52, %v8423_v6  ;;  %v2843_v18 = vrot.slane %v2835_v25, %v7296_v12  ;;  %v3051_v30 = vrot.slane %v3043_v40, %v7275_v1 }
 0x557   : > { %10000 = vst [vmem:[#allocation13_spill] sm:$0xff] %v8278_v54  ;;  %4189 = vrot.lane.b32.xlu0 %v8278_v54, %s9984_s1  ;;  %v3003_v61 = vcombine.low %v2947_v4, %v8413_v59  ;;  %v3139_v51 = vcombine.low %v3083_v29, %v3099_v62  ;;  %v3203_v48 = vrot.slane %v3195_v63, %v7275_v1 }
 0x558   : > { %v8449_v31 = vcombine.low %v2843_v18, %v2875_v41  ;;  %v8455_v25 = vcombine.high %v2843_v18, %v2875_v41  ;;  %v3187_v38 = vrot.slane %v3179_v34, %v7275_v1  ;;  %v2836_v34 = vcombine.high %v2779_v10, %v8400_v24 }
 0x559   : > { %v3011_v7 = vrot.slane %v3003_v61, %v7296_v12  ;;  %v3147_v40 = vrot.slane %v3139_v51, %v7296_v12  ;;  %v3004_v17 = vcombine.high %v2947_v4, %v8413_v59  ;;  %v2972_v10 = vcombine.high %v8430_v52, %v8423_v6 }
 0x55a   : > { %4197 = vrot.lane.b32.xlu1 %v8276_v43, %s9983_s0  ;;  %v3315_v13 = vsel %vm809_vm3, %v8449_v31, 0.0  ;;  %v3243_v63 = vcombine.low %v3187_v38, %v3203_v48  ;;  %v3321_v51 = vsel %vm809_vm3, %v8455_v25, 0.0  ;;  %v2850_v24 = vrot.slane %v2836_v34, %v7296_v12 }
 0x55b   : > { %4195 = vrot.lane.b32.xlu0 %v8278_v54, %s9983_s0  ;;  %v3244_v6 = vcombine.high %v3187_v38, %v3203_v48  ;;  %v2986_v52 = vrot.slane %v2972_v10, %v7296_v12 }
 0x55c   : > { %v8490_v59 = vcombine.low %v2850_v24, %v2882_v33 }
 0x55e   : > { %4203 = vrot.lane.b32.xlu1 %v8276_v43, %s9982_s18 }
 0x55f   : > { %4201 = vrot.lane.b32.xlu0 %v8278_v54, %s9982_s18  ;;  %s419_s18 = sand.u32 1, %s6793_s22  }
 0x562   : > { %4209 = vrot.lane.b32.xlu1 %v8276_v43, %s9973_s10 }
 0x563   : > { %4207 = vrot.lane.b32.xlu0 %v8278_v54, %s9973_s10 }
 0x566   : > { %4215 = vrot.lane.b32.xlu1 %v8276_v43, %s9980_s29 }
 0x567   : > { %4213 = vrot.lane.b32.xlu0 %v8278_v54, %s9980_s29 }
 0x56a   : > { %4221 = vrot.lane.b32.xlu1 %v8276_v43, %s9979_s26 }
 0x56b   : > { %4219 = vrot.lane.b32.xlu0 %v8278_v54, %s9979_s26 }
 0x56e   : > { %4227 = vrot.lane.b32.xlu1 %v8276_v43, %s9953_s15 }
 0x56f   : > { %4225 = vrot.lane.b32.xlu0 %v8278_v54, %s9953_s15 }
 0x572   : > { %4233 = vrot.lane.b32.xlu1 %v8276_v43, %s9972_s30 }
 0x573   : > { %4231 = vrot.lane.b32.xlu0 %v8278_v54, %s9972_s30 }
 0x576   : > { %4239 = vrot.lane.b32.xlu1 %v8276_v43, %s9954_s16 }
 0x577   : > { %4237 = vrot.lane.b32.xlu0 %v8278_v54, %s9954_s16  ;;  %s6826_s16 = smov [#allocation5]  }
 0x57a   : > { %4245 = vrot.lane.b32.xlu1 %v8276_v43, %s9981_s23 }
 0x57b   : > { %4243 = vrot.lane.b32.xlu0 %v8278_v54, %s9981_s23  ;;  %s6084_s23 = sshll.u32 %s6914_s25, 8 }
 0x57e   : > { %4251 = vrot.lane.b32.xlu1 %v8276_v43, %s9955_s17 }
 0x57f   : > { %4249 = vrot.lane.b32.xlu0 %v8278_v54, %s9955_s17  ;;  %s6739_s17 = sshll.u32 %s6826_s16, 4  ;;  %s6740_s17 = int_to_ptr.vmem [resolvable:$false] %s6739_s17 }
 0x580   : > { %s6741_s15 = scalar_lea.vmem %s6740_s17, 512 }
 0x582   : > { %4257 = vrot.lane.b32.xlu1 %v8276_v43, %s9998_s2 }
 0x583   : > { %4255 = vrot.lane.b32.xlu0 %v8278_v54, %s9998_s2 }
 0x586   : > { %4263 = vrot.lane.b32.xlu1 %v8276_v43, %s9978_s28 }
 0x587   : > { %4261 = vrot.lane.b32.xlu0 %v8278_v54, %s9978_s28 }
 0x58a   : > { %4269 = vrot.lane.b32.xlu1 %v8276_v43, %s9977_s20 }
 0x58b   : > { %4267 = vrot.lane.b32.xlu0 %v8278_v54, %s9977_s20  ;;  %s6051_s20 = sshll.u32 %s419_s18, 4 }
 0x58e   : > { %4275 = vrot.lane.b32.xlu1 %v8276_v43, %s9976_s19  ;;  %v2979_v43 = vrot.slane %v2971_v19, %v7296_v12  ;;  %v3283_v19 = vrot.slane %v3275_v32, %v7296_v12  ;;  %v3108_v32 = vcombine.high %v3051_v30, %v3067_v46 }
 0x58f   : > { %4273 = vrot.lane.b32.xlu0 %v8278_v54, %s9976_s19  ;;  %v3107_v54 = vcombine.low %v3051_v30, %v3067_v46  ;;  %v3018_v30 = vrot.slane %v3004_v17, %v7296_v12  ;;  %v3258_v17 = vrot.slane %v3244_v6, %v7296_v12  ;;  %v10009_v6 = vld [vmem:[#allocation17_spill] sm:$0xff] }
 0x590   : > { %v8461_v22 = vcombine.low %v2979_v43, %v3011_v7  ;;  %v8470_v41 = vcombine.high %v2979_v43, %v3011_v7 }
 0x591   : > { %v3115_v61 = vrot.slane %v3107_v54, %v7296_v12  ;;  %v3251_v54 = vrot.slane %v3243_v63, %v7296_v12 }
 0x592   : > { %v3318_v18 = vsel %vm809_vm3, %v8461_v22, 0.0  ;;  %v3324_v7 = vsel %vm809_vm3, %v8470_v41, 0.0 }
 0x593   : > { %v8464_v35 = vcombine.low %v3115_v61, %v3147_v40  ;;  %v8475_v28 = vcombine.high %v3115_v61, %v3147_v40  ;;  %v8483_v43 = vcombine.low %v3251_v54, %v3283_v19  ;;  %v8495_v40 = vcombine.high %v3251_v54, %v3283_v19 }
 0x594   : > { %v3327_v61 = vsel %vm809_vm3, %v8490_v59, 0.0 }
 0x595   : > { %v3363_v14 = vsel %vm809_vm3, %v8464_v35, 0.0  ;;  %v3369_v53 = vsel %vm809_vm3, %v8475_v28, 0.0 }
 0x5ae   : > { %3316 = vadd.xlane.f32.xlu0 %v3315_v13  ;;  %v3140_v13 = vcombine.high %v3083_v29, %v3099_v62  ;;  %v3276_v62 = vcombine.high %v3219_v5, %v3235_v49  ;;  %v3366_v29 = vsel %vm809_vm3, %v8483_v43, 0.0  ;;  %v3372_v5 = vsel %vm809_vm3, %v8495_v40, 0.0 }
 0x5af   : > { %v8506_v49 = vcombine.low %v2986_v52, %v3018_v30 }
 0x5b0   : > { %v3154_v4 = vrot.slane %v3140_v13, %v7296_v12  ;;  %v3290_v63 = vrot.slane %v3276_v62, %v7296_v12  ;;  %v8524_v13 = vcombine.high %v2986_v52, %v3018_v30  ;;  %v2772_v62 = vcombine.high %v8184_v8, %v8266_v16  ;;  %v10010_v52 = vld [vmem:[#allocation11_spill] sm:$0xff] }
 0x5b1   : > { %v3330_v38 = vsel %vm809_vm3, %v8506_v49, 0.0  ;;  %v3443_v30 = vsel %vm809_vm3, %v8449_v31, -inf  ;;  %v2956_v16 = vcombine.high %v8372_v26, %v8386_v23  ;;  %v2940_v26 = vcombine.high %v8364_v42, %v8380_v0 }
 0x5b2   : > { %3319 = vadd.xlane.f32.xlu1 %v3318_v18  ;;  %3322 = vadd.xlane.f32.xlu0 %v3321_v51  ;;  %v8514_v18 = vcombine.high %v2850_v24, %v2882_v33  ;;  %v8516_v51 = vcombine.low %v3258_v17, %v3290_v63  ;;  %v2820_v33 = vcombine.high %v8292_v60, %v8312_v55  ;;  %v3336_v24 = vsel %vm809_vm3, %v8524_v13, 0.0 }
 0x5b3   : > { %v8534_v10 = vcombine.high %v3258_v17, %v3290_v63  ;;  %v3092_v60 = vcombine.high %v8306_v37, %v8326_v11  ;;  %v3076_v37 = vcombine.high %v8298_v27, %v8318_v57  ;;  %v8568_v31 = vrot.slane %v2772_v62, %v7275_v1  ;;  %v10011_v17 = vld [vmem:[#allocation16_spill] sm:$0xff] }
 0x5b4   : > { %v3333_v19 = vsel %vm809_vm3, %v8514_v18, 0.0  ;;  %v3378_v34 = vsel %vm809_vm3, %v8516_v51, 0.0  ;;  %v8545_v55 = vrot.slane %v2820_v33, %v7275_v1  ;;  %v3449_v27 = vsel %vm809_vm3, %v8455_v25, -inf }
 0x5b5   : > { %v3446_v57 = vsel %vm809_vm3, %v8461_v22, -inf  ;;  %v2908_v23 = vcombine.high %v8324_v39, %v8344_v50  ;;  %v8599_v25 = vrot.slane %v3076_v37, %v7275_v1  ;;  %v10007_v50 = vld [vmem:[#allocation10_spill] sm:$0xff] }
 0x5b6   : > { %3364 = vadd.xlane.f32.xlu1 %v3363_v14  ;;  %3325 = vadd.xlane.f32.xlu0 %v3324_v7  ;;  %v3122_v14 = vrot.slane %v3108_v32, %v7296_v12 }
 0x5b7   : > { %v8621_v33 = vrot.slane %v2908_v23, %v7275_v1 }
 0x5b8   : > { %v8500_v46 = vcombine.low %v3122_v14, %v3154_v4  ;;  %v8522_v54 = vcombine.high %v3122_v14, %v3154_v4  ;;  %v2804_v4 = vcombine.high %v8284_v47, %v8304_v20  ;;  %v3060_v47 = vcombine.high %v8268_v44, %v8286_v2 }
 0x5b9   : > { %v8575_v44 = vrot.slane %v3092_v60, %v7275_v1 }
 0x5ba   : > { %3370 = vadd.xlane.f32.xlu1 %v3369_v53  ;;  %3367 = vadd.xlane.f32.xlu0 %v3366_v29  ;;  %v3375_v48 = vsel %vm809_vm3, %v8500_v46, 0.0  ;;  %v3381_v32 = vsel %vm809_vm3, %v8522_v54, 0.0  ;;  %v2788_v53 = vcombine.high %v8264_v21, %v8270_v45  ;;  %v3384_v21 = vsel %vm809_vm3, %v8534_v10, 0.0 }
 0x5bb   : > { %v3044_v45 = vcombine.high %v8186_v3, %v8274_v58  ;;  %v8565_v11 = vrot.slane %v2804_v4, %v7275_v1  ;;  %v2924_v58 = vcombine.high %v8332_v15, %v8352_v36  ;;  %v3228_v15 = vcombine.high %v8382_v9, %v8419_v56  ;;  %v10008_v9 = vld [vmem:[#allocation15_spill] sm:$0xff] }
 0x5bc   : > { %v8560_v20 = vrot.slane %v2788_v53, %v7275_v1  ;;  %v8588_v36 = vrot.slane %v2956_v16, %v7275_v1  ;;  %v8594_v0 = vrot.slane %v3060_v47, %v7275_v1  ;;  %v3196_v56 = vcombine.high %v10008_v9, %v10007_v50 }
 0x5bd   : > { %v2883_v2 = vcombine.low %v8565_v11, %v8545_v55  ;;  %v8591_v42 = vrot.slane %v3044_v45, %v7275_v1  ;;  %v8606_v14 = vrot.slane %v2924_v58, %v7275_v1  ;;  %v3155_v63 = vcombine.low %v8599_v25, %v8575_v44 }
 0x5be   : > { %3328 = vadd.xlane.f32.xlu1 %v3327_v61  ;;  %3373 = vadd.xlane.f32.xlu0 %v3372_v5  ;;  %v2851_v22 = vcombine.low %v8568_v31, %v8560_v20  ;;  %v3212_v61 = vcombine.high %v10010_v52, %v10009_v6  ;;  %v8611_v5 = vrot.slane %v2940_v26, %v7275_v1  ;;  %v3452_v53 = vsel %vm809_vm3, %v8470_v41, -inf }
 0x5bf   : > { %v3123_v4 = vcombine.low %v8591_v42, %v8594_v0  ;;  %v8634_v62 = vrot.slane %v3196_v56, %v7275_v1  ;;  %v2987_v60 = vcombine.low %v8621_v33, %v8606_v14  ;;  %v3497_v41 = vsel %vm809_vm3, %v8475_v28, -inf }
 0x5c0   : > { %v3163_v16 = vrot.slane %v3155_v63, %v7296_v12  ;;  %v3494_v58 = vsel %vm809_vm3, %v8483_v43, -inf  ;;  %v3455_v63 = vsel %vm809_vm3, %v8490_v59, -inf }
 0x5c2   : > { %3376 = vadd.xlane.f32.xlu1 %v3375_v48  ;;  %3331 = vadd.xlane.f32.xlu0 %v3330_v38  ;;  %v10012_v48 = vld [vmem:[#allocation14_spill] sm:$0xff] }
 0x5c3   : > { %v3180_v38 = vcombine.high %v10012_v48, %v10011_v17 }
 0x5c5   : > { %v8649_v47 = vrot.slane %v3180_v38, %v7275_v1  ;;  %v3503_v38 = vsel %vm809_vm3, %v8500_v46, -inf }
 0x5c6   : > { %3334 = vadd.xlane.f32.xlu1 %v3333_v19  ;;  %3379 = vadd.xlane.f32.xlu0 %v3378_v34  ;;  %v3491_v19 = vsel %vm809_vm3, %v8464_v35, -inf  ;;  %v2891_v34 = vrot.slane %v2883_v2, %v7296_v12  ;;  %v2859_v35 = vrot.slane %v2851_v22, %v7296_v12  ;;  %v3131_v2 = vrot.slane %v3123_v4, %v7296_v12 }
 0x5c7   : > { %v3259_v28 = vcombine.low %v8649_v47, %v8634_v62 }
 0x5c8   : > { %v8526_v7 = vpop.permute.xlu1 %4191  ;;  %v8645_v45 = vcombine.low %v2859_v35, %v2891_v34  ;;  %v8662_v23 = vcombine.low %v3131_v2, %v3163_v16  ;;  %v8698_v4 = vcombine.high %v3131_v2, %v3163_v16  ;;  %v3020_v2 = vcombine.high %v8611_v5, %v8588_v36 }
 0x5c9   : > { %v3267_v9 = vrot.slane %v3259_v28, %v7296_v12 }
 0x5ca   : > { %3382 = vadd.xlane.f32.xlu1 %v3381_v32  ;;  %3337 = vadd.xlane.f32.xlu0 %v3336_v24  ;;  %v8624_v32 = vrot.slane %v3228_v15, %v7275_v1  ;;  %v3019_v24 = vcombine.low %v8611_v5, %v8588_v36  ;;  %v3500_v15 = vsel %vm809_vm3, %v8495_v40, -inf  ;;  %v3387_v56 = vsel %vm809_vm3, %v8662_v23, 0.0 }
 0x5cc   : > { %v8547_v29 = vpop.permute.xlu1 %4197  ;;  %v3027_v26 = vrot.slane %v3019_v24, %v7296_v12  ;;  %v3458_v24 = vsel %vm809_vm3, %v8506_v49, -inf  ;;  %v2884_v49 = vcombine.high %v8565_v11, %v8545_v55  ;;  %v3461_v55 = vsel %vm809_vm3, %v8514_v18, -inf }
 0x5cd   : > { %v2988_v18 = vcombine.high %v8621_v33, %v8606_v14 }
 0x5ce   : > { %3444 = vmax.xlane.f32.xlu1 %v3443_v30  ;;  %3385 = vadd.xlane.f32.xlu0 %v3384_v21  ;;  %v8639_v30 = vrot.slane %v3212_v61, %v7275_v1  ;;  %v8678_v61 = vpop.permute.xlu0 %4189  ;;  %v2898_v11 = vrot.slane %v2884_v49, %v7296_v12 }
 0x5cf   : > { %v3002_v33 = vrot.slane %v2988_v18, %v7296_v12 }
 0x5d0   : > { %v8601_v39 = vpop.permute.xlu1 %4203  ;;  %v3291_v37 = vcombine.low %v8639_v30, %v8624_v32  ;;  %v3292_v5 = vcombine.high %v8639_v30, %v8624_v32 }
 0x5d2   : > { %3450 = vmax.xlane.f32.xlu1 %v3449_v27  ;;  %3447 = vmax.xlane.f32.xlu0 %v3446_v57  ;;  %v2995_v27 = vrot.slane %v2987_v60, %v7296_v12  ;;  %v3339_v57 = vsel %vm809_vm3, %v8645_v45, 0.0  ;;  %v3299_v22 = vrot.slane %v3291_v37, %v7296_v12  ;;  %v8686_v48 = vpop.permute.xlu0 %4195  ;;  %v3506_v60 = vsel %vm809_vm3, %v8516_v51, -inf }
 0x5d3   : > { %v2852_v51 = vcombine.high %v8568_v31, %v8560_v20  ;;  %v3124_v20 = vcombine.high %v8591_v42, %v8594_v0  ;;  %v3464_v42 = vsel %vm809_vm3, %v8524_v13, -inf  ;;  %v3034_v0 = vrot.slane %v3020_v2, %v7296_v12 }
 0x5d4   : > { %v8641_v21 = vpop.permute.xlu1 %4209  ;;  %v8666_v43 = vcombine.low %v2995_v27, %v3027_v26  ;;  %v8676_v52 = vcombine.low %v3267_v9, %v3299_v22  ;;  %v8714_v37 = vcombine.high %v3267_v9, %v3299_v22  ;;  %v3512_v13 = vsel %vm809_vm3, %v8534_v10, -inf }
 0x5d5   : > { %v3138_v14 = vrot.slane %v3124_v20, %v7296_v12  ;;  %v8760_v22 = vcombine.low %v3002_v33, %v3034_v0  ;;  %v3306_v9 = vrot.slane %v3292_v5, %v7296_v12  ;;  %v3467_v10 = vsel %vm809_vm3, %v8645_v45, -inf }
 0x5d6   : > { %3492 = vmax.xlane.f32.xlu1 %v3491_v19  ;;  %3453 = vmax.xlane.f32.xlu0 %v3452_v53  ;;  %v3342_v6 = vsel %vm809_vm3, %v8666_v43, 0.0  ;;  %v3390_v17 = vsel %vm809_vm3, %v8676_v52, 0.0  ;;  %v8690_v19 = vcombine.high %v2859_v35, %v2891_v34  ;;  %v8704_v46 = vpop.permute.xlu0 %4201  ;;  %v3393_v35 = vsel %vm809_vm3, %v8698_v4, 0.0 }
 0x5d7   : > { %v3396_v28 = vsel %vm809_vm3, %v8714_v37, 0.0 }
 0x5d8   : > { %v8669_v50 = vpop.permute.xlu1 %4215  ;;  %v3345_v59 = vsel %vm809_vm3, %v8690_v19, 0.0 }
 0x5da   : > { %3498 = vmax.xlane.f32.xlu1 %v3497_v41  ;;  %3495 = vmax.xlane.f32.xlu0 %v3494_v58  ;;  %v8702_v41 = vcombine.high %v2995_v27, %v3027_v26  ;;  %v3156_v58 = vcombine.high %v8599_v25, %v8575_v44  ;;  %v8720_v26 = vpop.permute.xlu0 %4207  ;;  %v2866_v44 = vrot.slane %v2852_v51, %v7296_v12  ;;  %v3509_v25 = vsel %vm809_vm3, %v8522_v54, -inf }
 0x5db   : > { %v3260_v54 = vcombine.high %v8649_v47, %v8634_v62 }
 0x5dc   : > { %v8680_v40 = vpop.permute.xlu1 %4221  ;;  %v3348_v16 = vsel %vm809_vm3, %v8702_v41, 0.0  ;;  %v8738_v27 = vcombine.low %v2866_v44, %v2898_v11  ;;  %v3170_v36 = vrot.slane %v3156_v58, %v7296_v12  ;;  %v2906_v49 = vcombine.high %v2866_v44, %v2898_v11 }
 0x5dd   : > { %v3274_v62 = vrot.slane %v3260_v54, %v7296_v12  ;;  %v3518_v58 = vsel %vm809_vm3, %v8676_v52, -inf  ;;  %v3473_v44 = vsel %vm809_vm3, %v8690_v19, -inf  ;;  %v3476_v5 = vsel %vm809_vm3, %v8702_v41, -inf }
 0x5de   : > { %3340 = vadd.xlane.f32.xlu1 %v3339_v57  ;;  %3501 = vmax.xlane.f32.xlu0 %v3500_v15  ;;  %v8746_v57 = vpop.permute.xlu0 %4213  ;;  %v3351_v32 = vsel %vm809_vm3, %v8738_v27, 0.0  ;;  %v8756_v30 = vcombine.low %v3138_v14, %v3170_v36  ;;  %v3357_v45 = vsel %vm809_vm3, %v2906_v49, 0.0  ;;  %v3178_v51 = vcombine.high %v3138_v14, %v3170_v36  ;;  %v10013_v14 = vld [vmem:[#allocation12_spill] sm:$0xff] }
 0x5df   : > { %v3521_v36 = vsel %vm809_vm3, %v8698_v4, -inf  ;;  %v4567_v19 = vcombine.low %v8526_v7, %v8601_v39  ;;  %v4551_v54 = vcombine.low %v10013_v14, %v8547_v29  ;;  %v3479_v4 = vsel %vm809_vm3, %v8738_v27, -inf }
 0x5e0   : > { %v8694_v53 = vpop.permute.xlu1 %4227 }
 0x5e1   : > { %v4599_v18 = vcombine.low %v8669_v50, %v8694_v53 }
 0x5e2   : > { %3388 = vadd.xlane.f32.xlu1 %v3387_v56  ;;  %3343 = vadd.xlane.f32.xlu0 %v3342_v6  ;;  %v8764_v47 = vpop.permute.xlu0 %4219  ;;  %v3399_v56 = vsel %vm809_vm3, %v8756_v30, 0.0  ;;  %v3354_v6 = vsel %vm809_vm3, %v8760_v22, 0.0 }
 0x5e4   : > { %v8708_v34 = vpop.permute.xlu1 %4233 }
 0x5e6   : > { %3456 = vmax.xlane.f32.xlu1 %v3455_v63  ;;  %3391 = vadd.xlane.f32.xlu0 %v3390_v17  ;;  %v8770_v63 = vcombine.low %v3274_v62, %v3306_v9 }
 0x5e8   : > { %v8731_v31 = vpop.permute.xlu1 %4239 }
 0x5ea   : > { %3504 = vmax.xlane.f32.xlu1 %v3503_v38  ;;  %3459 = vmax.xlane.f32.xlu0 %v3458_v24  ;;  %v3402_v38 = vsel %vm809_vm3, %v8770_v63, 0.0  ;;  %v8778_v24 = vpop.permute.xlu0 %4225 }
 0x5ec   : > { %v8752_v15 = vpop.permute.xlu1 %4245 }
 0x5ee   : > { %3346 = vadd.xlane.f32.xlu1 %v3345_v59  ;;  %3507 = vmax.xlane.f32.xlu0 %v3506_v60  ;;  %v3515_v60 = vsel %vm809_vm3, %v8662_v23, -inf  ;;  %v3405_v23 = vsel %vm809_vm3, %v3178_v51, 0.0 }
 0x5f0   : > { %v8772_v17 = vpop.permute.xlu1 %4251 }
 0x5f2   : > { %3394 = vadd.xlane.f32.xlu1 %v3393_v35  ;;  %3349 = vadd.xlane.f32.xlu0 %v3348_v16  ;;  %v3470_v35 = vsel %vm809_vm3, %v8666_v43, -inf  ;;  %v8786_v16 = vpop.permute.xlu0 %4231  ;;  %v8795_v43 = vcombine.high %v3274_v62, %v3306_v9 }
 0x5f4   : > { %v8780_v59 = vpop.permute.xlu1 %4257  ;;  %v3408_v52 = vsel %vm809_vm3, %v8795_v43, 0.0 }
 0x5f6   : > { %3462 = vmax.xlane.f32.xlu1 %v3461_v55  ;;  %3397 = vadd.xlane.f32.xlu0 %v3396_v28  ;;  %v3042_v55 = vcombine.high %v3002_v33, %v3034_v0  ;;  %v8797_v28 = vpop.permute.xlu0 %4237  ;;  %v4607_v33 = vrot.slane %v4599_v18, %v7275_v1 }
 0x5f8   : > { %v8791_v2 = vpop.permute.xlu1 %4263  ;;  %v3360_v11 = vsel %vm809_vm3, %v3042_v55, 0.0 }
 0x5fa   : > { %3510 = vmax.xlane.f32.xlu1 %v3509_v25  ;;  %3465 = vmax.xlane.f32.xlu0 %v3464_v42  ;;  %v8807_v25 = vpop.permute.xlu0 %4243  ;;  %v4583_v42 = vcombine.low %v8641_v21, %v8680_v40 }
 0x5fc   : > { %v8799_v20 = vpop.permute.xlu1 %4269  ;;  %v4591_v9 = vrot.slane %v4583_v42, %v7275_v1  ;;  %v3533_v42 = vsel %vm809_vm3, %v3178_v51, -inf  ;;  %v3536_v51 = vsel %vm809_vm3, %v8795_v43, -inf }
 0x5fd   : > { %v4719_v27 = vcombine.low %v8780_v59, %v8799_v20 }
 0x5fe   : > { %3352 = vadd.xlane.f32.xlu1 %v3351_v32  ;;  %3513 = vmax.xlane.f32.xlu0 %v3512_v13  ;;  %v3524_v32 = vsel %vm809_vm3, %v8714_v37, -inf  ;;  %v4575_v13 = vrot.slane %v4567_v19, %v7275_v1  ;;  %v8830_v62 = vpop.permute.xlu0 %4249  ;;  %v4687_v37 = vcombine.low %v8708_v34, %v8752_v15  ;;  %v4648_v19 = vcombine.high %v4591_v9, %v4607_v33 }
 0x600   : > { %v8817_v0 = vpop.permute.xlu1 %4275 }
 0x601   : > { %v4735_v41 = vcombine.low %v8791_v2, %v8817_v0 }
 0x602   : > { %3400 = vadd.xlane.f32.xlu1 %v3399_v56  ;;  %3355 = vadd.xlane.f32.xlu0 %v3354_v6  ;;  %v4703_v56 = vcombine.low %v8731_v31, %v8772_v17  ;;  %v4559_v6 = vrot.slane %v4551_v54, %v7275_v1 }
 0x606   : > { %3468 = vmax.xlane.f32.xlu1 %v3467_v10  ;;  %3403 = vadd.xlane.f32.xlu0 %v3402_v38  ;;  %v4647_v10 = vcombine.low %v4591_v9, %v4607_v33  ;;  %v3527_v38 = vsel %vm809_vm3, %v8756_v30, -inf }
 0x608   : > { %v4655_v30 = vrot.slane %v4647_v10, %v7296_v12  ;;  %v4662_v10 = vrot.slane %v4648_v19, %v7296_v12 }
 0x60a   : > { %3516 = vmax.xlane.f32.xlu1 %v3515_v60  ;;  %3471 = vmax.xlane.f32.xlu0 %v3470_v35  ;;  %v4743_v60 = vrot.slane %v4735_v41, %v7275_v1  ;;  %v3482_v35 = vsel %vm809_vm3, %v8760_v22, -inf  ;;  %v4616_v41 = vcombine.high %v4559_v6, %v4575_v13 }
 0x60e   : > { %3358 = vadd.xlane.f32.xlu1 %v3357_v45  ;;  %3519 = vmax.xlane.f32.xlu0 %v3518_v58  ;;  %v4615_v45 = vcombine.low %v4559_v6, %v4575_v13  ;;  %v4711_v58 = vrot.slane %v4703_v56, %v7275_v1  ;;  %v4600_v6 = vcombine.high %v8669_v50, %v8694_v53 }
 0x60f   : > { %v4584_v50 = vcombine.high %v8641_v21, %v8680_v40  ;;  %v4552_v53 = vcombine.high %v10013_v14, %v8547_v29  ;;  %v4704_v40 = vcombine.high %v8731_v31, %v8772_v17 }
 0x610   : > { %v4623_v22 = vrot.slane %v4615_v45, %v7296_v12 }
 0x611   : > { %v8903_v21 = vrot.slane %v4584_v50, %v7275_v1  ;;  %v10015_v50 = vld [vmem:[#allocation23_spill] sm:$0xff] }
 0x612   : > { %3406 = vadd.xlane.f32.xlu1 %v3405_v23  ;;  %3361 = vadd.xlane.f32.xlu0 %v3360_v11  ;;  %v4727_v23 = vrot.slane %v4719_v27, %v7275_v1  ;;  %v8846_v11 = vpop.permute.xlu0 %4255  ;;  %v4679_v54 = vcombine.low %v4623_v22, %v4655_v30  ;;  %v4680_v27 = vcombine.high %v4623_v22, %v4655_v30 }
 0x613   : > { %v4736_v30 = vcombine.high %v8791_v2, %v8817_v0  ;;  %v4720_v2 = vcombine.high %v8780_v59, %v8799_v20 }
 0x614   : > { %v4783_v18 = vcombine.low %v4727_v23, %v4743_v60  ;;  %v4784_v33 = vcombine.high %v4727_v23, %v4743_v60 }
 0x615   : > { %v8919_v19 = vrot.slane %v4736_v30, %v7275_v1 }
 0x616   : > { %3474 = vmax.xlane.f32.xlu1 %v3473_v44  ;;  %3409 = vadd.xlane.f32.xlu0 %v3408_v52  ;;  %v3485_v44 = vsel %vm809_vm3, %v2906_v49, -inf  ;;  %v4695_v52 = vrot.slane %v4687_v37, %v7275_v1  ;;  %v3488_v49 = vsel %vm809_vm3, %v3042_v55, -inf  ;;  %v4630_v55 = vrot.slane %v4616_v41, %v7296_v12 }
 0x617   : > { %v4877_v37 = vsel %vm809_vm3, %v4680_v27, 0.0  ;;  %v4798_v45 = vrot.slane %v4784_v33, %v7296_v12  ;;  %v4999_v41 = vsel %vm809_vm3, %v4679_v54, -inf }
 0x618   : > { %v4752_v13 = vcombine.high %v4695_v52, %v4711_v58 }
 0x61a   : > { %3522 = vmax.xlane.f32.xlu1 %v3521_v36  ;;  %3477 = vmax.xlane.f32.xlu0 %v3476_v5  ;;  %v3530_v36 = vsel %vm809_vm3, %v8770_v63, -inf  ;;  %v4751_v5 = vcombine.low %v4695_v52, %v4711_v58  ;;  %v4871_v63 = vsel %vm809_vm3, %v4679_v54, 0.0  ;;  %v4568_v58 = vcombine.high %v8526_v7, %v8601_v39 }
 0x61b   : > { %v4766_v23 = vrot.slane %v4752_v13, %v7296_v12 }
 0x61c   : > { %v4759_v56 = vrot.slane %v4751_v5, %v7296_v12  ;;  %v8900_v29 = vrot.slane %v4568_v58, %v7275_v1  ;;  %v4688_v5 = vcombine.high %v8708_v34, %v8752_v15  ;;  %v8933_v34 = vrot.slane %v4720_v2, %v7275_v1 }
 0x61d   : > { %v8897_v39 = vcombine.low %v4766_v23, %v4798_v45  ;;  %v8925_v59 = vcombine.high %v4766_v23, %v4798_v45  ;;  %v10014_v45 = vld [vmem:[#allocation24_spill] sm:$0xff] }
 0x61e   : > { %3480 = vmax.xlane.f32.xlu1 %v3479_v4  ;;  %3525 = vmax.xlane.f32.xlu0 %v3524_v32  ;;  %v4791_v4 = vrot.slane %v4783_v18, %v7296_v12  ;;  %v8857_v32 = vpop.permute.xlu0 %4261  ;;  %v8893_v18 = vcombine.high %v4630_v55, %v4662_v10 }
 0x61f   : > { %v4886_v17 = vsel %vm809_vm3, %v8897_v39, 0.0 }
 0x620   : > { %v8864_v9 = vcombine.low %v4759_v56, %v4791_v4  ;;  %v8876_v43 = vcombine.high %v4759_v56, %v4791_v4  ;;  %v4889_v31 = vsel %vm809_vm3, %v8893_v18, 0.0  ;;  %v4799_v4 = vcombine.low %v8933_v34, %v8919_v19 }
 0x622   : > { %3528 = vmax.xlane.f32.xlu1 %v3527_v38  ;;  %3483 = vmax.xlane.f32.xlu0 %v3482_v35  ;;  %v8869_v38 = vpop.permute.xlu0 %4267  ;;  %v8872_v35 = vcombine.low %v4630_v55, %v4662_v10  ;;  %v4874_v60 = vsel %vm809_vm3, %v8864_v9, 0.0  ;;  %v4880_v7 = vsel %vm809_vm3, %v8876_v43, 0.0  ;;  %v4892_v10 = vsel %vm809_vm3, %v8925_v59, 0.0 }
 0x623   : > { %v4807_v54 = vrot.slane %v4799_v4, %v7296_v12  ;;  %v5002_v30 = vsel %vm809_vm3, %v8864_v9, -inf  ;;  %v5008_v9 = vsel %vm809_vm3, %v8876_v43, -inf }
 0x624   : > { %v4883_v52 = vsel %vm809_vm3, %v8872_v35, 0.0 }
 0x626   : > { %3486 = vmax.xlane.f32.xlu1 %v3485_v44  ;;  %3531 = vmax.xlane.f32.xlu0 %v3530_v36  ;;  %v8887_v44 = vrot.slane %v4600_v6, %v7275_v1  ;;  %v8909_v0 = vpop.permute.xlu0 %4273  ;;  %v8912_v36 = vrot.slane %v4552_v53, %v7275_v1 }
 0x628   : > { %v4663_v22 = vcombine.low %v8903_v21, %v8887_v44  ;;  %v4631_v20 = vcombine.low %v8912_v36, %v8900_v29 }
 0x62a   : > { %3534 = vmax.xlane.f32.xlu1 %v3533_v42  ;;  %3489 = vmax.xlane.f32.xlu0 %v3488_v49  ;;  %v8930_v42 = vrot.slane %v4704_v40, %v7275_v1  ;;  %v8936_v49 = vrot.slane %v4688_v5, %v7275_v1  ;;  %v4671_v56 = vrot.slane %v4663_v22, %v7296_v12 }
 0x62b   : > { %v4639_v13 = vrot.slane %v4631_v20, %v7296_v12 }
 0x62c   : > { %v4767_v33 = vcombine.low %v8936_v49, %v8930_v42 }
 0x62e   : > { %4872 = vadd.xlane.f32.xlu1 %v4871_v63  ;;  %3537 = vmax.xlane.f32.xlu0 %v3536_v51  ;;  %v4775_v40 = vrot.slane %v4767_v33, %v7296_v12 }
 0x630   : > { %v8959_v5 = vcombine.low %v4775_v40, %v4807_v54 }
 0x632   : > { %4878 = vadd.xlane.f32.xlu1 %v4877_v37  ;;  %4875 = vadd.xlane.f32.xlu0 %v4874_v60  ;;  %v5005_v37 = vsel %vm809_vm3, %v4680_v27, -inf  ;;  %v8948_v60 = vcombine.low %v4639_v13, %v4671_v56 }
 0x634   : > { %v4895_v22 = vsel %vm809_vm3, %v8948_v60, 0.0 }
 0x636   : > { %4884 = vadd.xlane.f32.xlu1 %v4883_v52  ;;  %4881 = vadd.xlane.f32.xlu0 %v4880_v7 }
 0x63a   : > { %4890 = vadd.xlane.f32.xlu1 %v4889_v31  ;;  %4887 = vadd.xlane.f32.xlu0 %v4886_v17 }
 0x63b   : > { %v3317_v15 = vpop.xlane.xlu0 %3316 }
 0x63c   : > { %v3411_v63 = vmul.f32 0.125, %v3317_v15 }
 0x63e   : > { %5000 = vmax.xlane.f32.xlu1 %v4999_v41  ;;  %4893 = vadd.xlane.f32.xlu0 %v4892_v10  ;;  %v3574_v58 = vrot.slane %v3411_v63, %v10014_v45  ;;  %v4664_v10 = vcombine.high %v8903_v21, %v8887_v44 }
 0x63f   : > { %v3320_v51 = vpop.xlane.xlu1 %3319  ;;  %v3323_v55 = vpop.xlane.xlu0 %3322 }
 0x640   : > { %v3412_v6 = vmul.f32 0.125, %v3320_v51  ;;  %v3413_v23 = vmul.f32 0.125, %v3323_v55  ;;  %v5011_v51 = vsel %vm809_vm3, %v8872_v35, -inf  ;;  %v8971_v55 = vcombine.high %v4639_v13, %v4671_v56 }
 0x641   : > { %v4800_v56 = vcombine.high %v8933_v34, %v8919_v19 }
 0x642   : > { %v3578_v53 = vrot.slane %v3412_v6, %v10015_v50  ;;  %5006 = vmax.xlane.f32.xlu1 %v5005_v37  ;;  %5003 = vmax.xlane.f32.xlu0 %v5002_v30  ;;  %v3583_v31 = vrot.slane %v3413_v23, %v10014_v45  ;;  %v4901_v13 = vsel %vm809_vm3, %v8971_v55, 0.0  ;;  %v8984_v30 = vcombine.high %v4775_v40, %v4807_v54 }
 0x643   : > { %v3365_v52 = vpop.xlane.xlu1 %3364  ;;  %v3326_v7 = vpop.xlane.xlu0 %3325 }
 0x644   : > { %v3579_v27 = vsel %vm2027_vm5, %v3578_v53, %v3574_v58  ;;  %v3414_v2 = vmul.f32 0.125, %v3326_v7  ;;  %v3427_v17 = vmul.f32 0.125, %v3365_v52  ;;  %v4898_v58 = vsel %vm809_vm3, %v8959_v5, 0.0 }
 0x645   : > { %v4632_v53 = vcombine.high %v8912_v36, %v8900_v29  ;;  %v4678_v52 = vrot.slane %v4664_v10, %v7296_v12  ;;  %v5014_v36 = vsel %vm809_vm3, %v8897_v39, -inf  ;;  %v4814_v39 = vrot.slane %v4800_v56, %v7296_v12 }
 0x646   : > { %v3587_v20 = vrot.slane %v3414_v2, %v10015_v50  ;;  %4896 = vadd.xlane.f32.xlu1 %v4895_v22  ;;  %5009 = vmax.xlane.f32.xlu0 %v5008_v9  ;;  %v3646_v6 = vrot.slane %v3427_v17, %v10014_v45  ;;  %v4768_v2 = vcombine.high %v8936_v49, %v8930_v42  ;;  %v5017_v17 = vsel %vm809_vm3, %v8893_v18, -inf }
 0x647   : > { %v3371_v15 = vpop.xlane.xlu1 %3370  ;;  %v3368_v4 = vpop.xlane.xlu0 %3367  ;;  %v4646_v54 = vrot.slane %v4632_v53, %v7296_v12  ;;  %v4327_v56 = vcombine.low %v8746_v57, %v8778_v24 }
 0x648   : > { %v3588_v41 = vsel %vm2027_vm5, %v3587_v20, %v3583_v31  ;;  %v3428_v63 = vmul.f32 0.125, %v3368_v4  ;;  %v3429_v37 = vmul.f32 0.125, %v3371_v15  ;;  %v4904_v15 = vsel %vm809_vm3, %v8984_v30, 0.0 }
 0x649   : > { %v3715_v33 = vsel %vm2164_vm6, %v3588_v41, %v3579_v27  ;;  %v8998_v20 = vcombine.low %v4646_v54, %v4678_v52 }
 0x64a   : > { %v3650_v43 = vrot.slane %v3428_v63, %v10015_v50  ;;  %5012 = vmax.xlane.f32.xlu1 %v5011_v51  ;;  %4899 = vadd.xlane.f32.xlu0 %v4898_v58  ;;  %v3655_v7 = vrot.slane %v3429_v37, %v10014_v45  ;;  %v4782_v63 = vrot.slane %v4768_v2, %v7296_v12 }
 0x64b   : > { %v3329_v44 = vpop.xlane.xlu1 %3328  ;;  %v3374_v21 = vpop.xlane.xlu0 %3373 }
 0x64c   : > { %v3651_v23 = vsel %vm2027_vm5, %v3650_v43, %v3646_v6  ;;  %v3430_v35 = vmul.f32 0.125, %v3374_v21  ;;  %v3415_v27 = vmul.f32 0.125, %v3329_v44  ;;  %v4907_v6 = vsel %vm809_vm3, %v8998_v20, 0.0 }
 0x64d   : > { %v9010_v37 = vcombine.low %v4782_v63, %v4814_v39  ;;  %v5020_v44 = vsel %vm809_vm3, %v8925_v59, -inf }
 0x64e   : > { %v3659_v29 = vrot.slane %v3430_v35, %v10015_v50  ;;  %4902 = vadd.xlane.f32.xlu1 %v4901_v13  ;;  %5015 = vmax.xlane.f32.xlu0 %v5014_v36  ;;  %v3592_v9 = vrot.slane %v3415_v27, %v10014_v45  ;;  %v9022_v27 = vcombine.high %v4646_v54, %v4678_v52  ;;  %v10016_v52 = vld [vmem:[#allocation13_spill] sm:$0xff] }
 0x64f   : > { %v3377_v19 = vpop.xlane.xlu1 %3376  ;;  %v3332_v34 = vpop.xlane.xlu0 %3331  ;;  %v4910_v2 = vsel %vm809_vm3, %v9010_v37, 0.0  ;;  %v4279_v54 = vcombine.low %v10016_v52, %v8686_v48 }
 0x650   : > { %v3660_v40 = vsel %vm2027_vm5, %v3659_v29, %v3655_v7  ;;  %v3416_v22 = vmul.f32 0.125, %v3332_v34  ;;  %v3431_v42 = vmul.f32 0.125, %v3377_v19  ;;  %v5023_v7 = vsel %vm809_vm3, %v8948_v60, -inf }
 0x651   : > { %v3722_v31 = vsel %vm2164_vm6, %v3660_v40, %v3651_v23  ;;  %v4295_v19 = vcombine.low %v8678_v61, %v8704_v46  ;;  %v4311_v34 = vcombine.low %v8720_v26, %v8764_v47 }
 0x652   : > { %v3596_v49 = vrot.slane %v3416_v22, %v10015_v50  ;;  %5018 = vmax.xlane.f32.xlu1 %v5017_v17  ;;  %4905 = vadd.xlane.f32.xlu0 %v4904_v15  ;;  %v3664_v43 = vrot.slane %v3431_v42, %v10014_v45  ;;  %v9036_v17 = vrot.slane %v4327_v56, %v7275_v1  ;;  %v5029_v56 = vsel %vm809_vm3, %v8971_v55, -inf }
 0x653   : > { %v3335_v4 = vpop.xlane.xlu1 %3334  ;;  %v3380_v41 = vpop.xlane.xlu0 %3379 }
 0x654   : > { %v3597_v18 = vsel %vm2027_vm5, %v3596_v49, %v3592_v9  ;;  %v3432_v10 = vmul.f32 0.125, %v3380_v41  ;;  %v3417_v58 = vmul.f32 0.125, %v3335_v4  ;;  %v4463_v9 = vcombine.low %v8857_v32, %v8909_v0 }
 0x655   : > { %v3716_v51 = vsel %vm2166_vm7, %v3597_v18, %v3715_v33  ;;  %v4913_v49 = vsel %vm809_vm3, %v9022_v27, 0.0  ;;  %v5026_v41 = vsel %vm809_vm3, %v8959_v5, -inf  ;;  %v4822_v18 = vcombine.high %v4782_v63, %v4814_v39  ;;  %v10018_v5 = vld [vmem:[#allocation26_spill] sm:$0xff] }
 0x656   : > { %v3668_v53 = vrot.slane %v3432_v10, %v10015_v50  ;;  %4908 = vadd.xlane.f32.xlu1 %v4907_v6  ;;  %5021 = vmax.xlane.f32.xlu0 %v5020_v44  ;;  %v3601_v29 = vrot.slane %v3417_v58, %v10014_v45  ;;  %v9050_v10 = vrot.slane %v4295_v19, %v7275_v1  ;;  %v10017_v44 = vld [vmem:[#allocation25_spill] sm:$0xff] }
 0x657   : > { %v3383_v21 = vpop.xlane.xlu1 %3382  ;;  %v3338_v23 = vpop.xlane.xlu0 %3337  ;;  %v4319_v6 = vrot.slane %v4311_v34, %v7275_v1  ;;  %v4287_v63 = vrot.slane %v4279_v54, %v7275_v1  ;;  %v5035_v54 = vsel %vm809_vm3, %v8998_v20, -inf }
 0x658   : > { %v3669_v35 = vsel %vm2027_vm5, %v3668_v53, %v3664_v43  ;;  %v3418_v33 = vmul.f32 0.125, %v3338_v23  ;;  %v3433_v36 = vmul.f32 0.125, %v3383_v21  ;;  %v4447_v53 = vcombine.low %v8846_v11, %v8869_v38 }
 0x659   : > { %v3723_v13 = vsel %vm2166_vm7, %v3669_v35, %v3722_v31  ;;  %v4375_v35 = vcombine.low %v4319_v6, %v9036_v17 }
 0x65a   : > { %v3605_v59 = vrot.slane %v3418_v33, %v10015_v50  ;;  %5024 = vmax.xlane.f32.xlu1 %v5023_v7  ;;  %4911 = vadd.xlane.f32.xlu0 %v4910_v2  ;;  %v3673_v15 = vrot.slane %v3433_v36, %v10014_v45  ;;  %v4415_v7 = vcombine.low %v8786_v16, %v8807_v25 }
 0x65b   : > { %v3445_v40 = vpop.xlane.xlu1 %3444  ;;  %v3386_v60 = vpop.xlane.xlu0 %3385  ;;  %v4343_v2 = vcombine.low %v4287_v63, %v9050_v10  ;;  %v4455_v55 = vrot.slane %v4447_v53, %v7275_v1 }
 0x65c   : > { %v3606_v22 = vsel %vm2027_vm5, %v3605_v59, %v3601_v29  ;;  %v3434_v31 = vmul.f32 0.125, %v3386_v60  ;;  %v3766_v21 = vrot.slane %v3445_v40, %v10017_v44  ;;  %v9070_v29 = vrot.slane %v4463_v9, %v7275_v1 }
 0x65d   : > { %v9041_v42 = vsel %vm2168_vm8, %v3606_v22, %v3716_v51  ;;  %v4431_v51 = vcombine.low %v8797_v28, %v8830_v62  ;;  %v4916_v59 = vsel %vm809_vm3, %v4822_v18, 0.0  ;;  %v4383_v22 = vrot.slane %v4375_v35, %v7296_v12 }
 0x65e   : > { %v3677_v4 = vrot.slane %v3434_v31, %v10015_v50  ;;  %4914 = vadd.xlane.f32.xlu1 %v4913_v49  ;;  %5027 = vmax.xlane.f32.xlu0 %v5026_v41  ;;  %v4423_v31 = vrot.slane %v4415_v7, %v7275_v1  ;;  %v4511_v9 = vcombine.low %v4455_v55, %v9070_v29  ;;  %v5032_v49 = vsel %vm809_vm3, %v8984_v30, -inf }
 0x65f   : > { %v3451_v43 = vpop.xlane.xlu1 %3450  ;;  %v3448_v58 = vpop.xlane.xlu0 %3447  ;;  %v4351_v41 = vrot.slane %v4343_v2, %v7296_v12  ;;  %v5041_v30 = vsel %vm809_vm3, %v9022_v27, -inf }
 0x660   : > { %v3678_v23 = vsel %vm2027_vm5, %v3677_v4, %v3673_v15  ;;  %v3770_v39 = vrot.slane %v3448_v58, %v10018_v5  ;;  %v3775_v40 = vrot.slane %v3451_v43, %v10017_v44 }
 0x661   : > { %v9063_v33 = vsel %vm2168_vm8, %v3678_v23, %v3723_v13  ;;  %v9076_v13 = vrot.slane %v4431_v51, %v7275_v1  ;;  %v4376_v51 = vcombine.high %v4319_v6, %v9036_v17  ;;  %v9099_v23 = vcombine.low %v4351_v41, %v4383_v22 }
 0x662   : > { %v3771_v36 = vsel %vm2229_vm9, %v3770_v39, %v3766_v21  ;;  %5030 = vmax.xlane.f32.xlu1 %v5029_v56  ;;  %4917 = vadd.xlane.f32.xlu0 %v4916_v59  ;;  %v5038_v39 = vsel %vm809_vm3, %v9010_v37, -inf  ;;  %v4519_v17 = vrot.slane %v4511_v9, %v7296_v12  ;;  %v4344_v6 = vcombine.high %v4287_v63, %v9050_v10 }
 0x663   : > { %v3493_v19 = vpop.xlane.xlu1 %3492  ;;  %v3454_v34 = vpop.xlane.xlu0 %3453  ;;  %v4479_v20 = vcombine.low %v4423_v31, %v9076_v13  ;;  %v4390_v59 = vrot.slane %v4376_v51, %v7296_v12  ;;  %v4823_v37 = vsel %vm809_vm3, %v9099_v23, 0.0  ;;  %v4512_v10 = vcombine.high %v4455_v55, %v9070_v29 }
 0x664   : > { %v3779_v60 = vrot.slane %v3454_v34, %v10018_v5  ;;  %v3838_v53 = vrot.slane %v3493_v19, %v10017_v44  ;;  %v9112_v19 = vcombine.high %v4351_v41, %v4383_v22  ;;  %v5044_v63 = vsel %vm809_vm3, %v4822_v18, -inf }
 0x665   : > { %v4358_v9 = vrot.slane %v4344_v6, %v7296_v12  ;;  %v4328_v22 = vcombine.high %v8746_v57, %v8778_v24  ;;  %v4480_v29 = vcombine.high %v4423_v31, %v9076_v13  ;;  %v4280_v51 = vcombine.high %v10016_v52, %v8686_v48 }
 0x666   : > { %5036 = vmax.xlane.f32.xlu1 %v5035_v54  ;;  %v3780_v15 = vsel %vm2229_vm9, %v3779_v60, %v3775_v40  ;;  %5033 = vmax.xlane.f32.xlu0 %v5032_v49  ;;  %v4312_v49 = vcombine.high %v8720_v26, %v8764_v47  ;;  %v4526_v47 = vrot.slane %v4512_v10, %v7296_v12 }
 0x667   : > { %v3499_v4 = vpop.xlane.xlu1 %3498  ;;  %v9093_v43 = vsel %vm2164_vm6, %v3780_v15, %v3771_v36  ;;  %v3496_v58 = vpop.xlane.xlu0 %3495  ;;  %v4487_v36 = vrot.slane %v4479_v20, %v7296_v12  ;;  %v9130_v41 = vcombine.low %v4358_v9, %v4390_v59  ;;  %v4296_v24 = vcombine.high %v8678_v61, %v8704_v46 }
 0x668   : > { %v3842_v21 = vrot.slane %v3496_v58, %v10018_v5  ;;  %v3847_v27 = vrot.slane %v3499_v4, %v10017_v44  ;;  %v4829_v4 = vsel %vm809_vm3, %v9112_v19, 0.0  ;;  %v9144_v48 = vrot.slane %v4312_v49, %v7275_v1 }
 0x669   : > { %v9116_v34 = vcombine.low %v4487_v36, %v4519_v17  ;;  %v9136_v57 = vcombine.high %v4487_v36, %v4519_v17  ;;  %v4835_v61 = vsel %vm809_vm3, %v9130_v41, 0.0  ;;  %v9153_v46 = vcombine.high %v4358_v9, %v4390_v59 }
 0x66a   : > { %5042 = vmax.xlane.f32.xlu1 %v5041_v30  ;;  %v3843_v35 = vsel %vm2229_vm9, %v3842_v21, %v3838_v53  ;;  %5039 = vmax.xlane.f32.xlu0 %v5038_v39  ;;  %v9147_v53 = vrot.slane %v4328_v22, %v7275_v1  ;;  %v4494_v30 = vrot.slane %v4480_v29, %v7296_v12 }
 0x66b   : > { %v3341_v56 = vpop.xlane.xlu1 %3340  ;;  %v3502_v7 = vpop.xlane.xlu0 %3501  ;;  %v4826_v26 = vsel %vm809_vm3, %v9116_v34, 0.0  ;;  %v4464_v6 = vcombine.high %v8857_v32, %v8909_v0  ;;  %v9166_v36 = vrot.slane %v4280_v51, %v7275_v1  ;;  %v4448_v10 = vcombine.high %v8846_v11, %v8869_v38 }
 0x66c   : > { %v3851_v2 = vrot.slane %v3502_v7, %v10018_v5  ;;  %v3419_v40 = vmul.f32 0.125, %v3341_v56  ;;  %v4832_v56 = vsel %vm809_vm3, %v9136_v57, 0.0  ;;  %v9163_v7 = vcombine.low %v4494_v30, %v4526_v47 }
 0x66d   : > { %v4841_v9 = vsel %vm809_vm3, %v9153_v46, 0.0  ;;  %v9189_v49 = vrot.slane %v4464_v6, %v7275_v1  ;;  %v4462_v29 = vrot.slane %v4448_v10, %v7275_v1 }
 0x66e   : > { %4824 = vadd.xlane.f32.xlu1 %v4823_v37  ;;  %v3852_v60 = vsel %vm2229_vm9, %v3851_v2, %v3847_v27  ;;  %5045 = vmax.xlane.f32.xlu0 %v5044_v63  ;;  %v3610_v13 = vrot.slane %v3419_v40, %v10014_v45  ;;  %v9169_v27 = vrot.slane %v4296_v24, %v7275_v1 }
 0x66f   : > { %v3389_v54 = vpop.xlane.xlu1 %3388  ;;  %v9126_v55 = vsel %vm2164_vm6, %v3852_v60, %v3843_v35  ;;  %v3344_v18 = vpop.xlane.xlu0 %3343  ;;  %v4416_v2 = vcombine.high %v8786_v16, %v8807_v25  ;;  %v4432_v37 = vcombine.high %v8797_v28, %v8830_v62  ;;  %v4838_v28 = vsel %vm809_vm3, %v9163_v7, 0.0 }
 0x670   : > { %v3420_v15 = vmul.f32 0.125, %v3344_v18  ;;  %v3435_v31 = vmul.f32 0.125, %v3389_v54  ;;  %v9197_v25 = vcombine.high %v4494_v30, %v4526_v47  ;;  %v4359_v62 = vcombine.low %v9166_v36, %v9169_v27 }
 0x671   : > { %v4446_v22 = vrot.slane %v4432_v37, %v7275_v1  ;;  %v4430_v51 = vrot.slane %v4416_v2, %v7275_v1  ;;  %v4954_v1 = vsel %vm809_vm3, %v9116_v34, -inf  ;;  %v4360_v2 = vcombine.high %v9166_v36, %v9169_v27 }
 0x672   : > { %4830 = vadd.xlane.f32.xlu1 %v4829_v4  ;;  %v3614_v20 = vrot.slane %v3420_v15, %v10015_v50  ;;  %4827 = vadd.xlane.f32.xlu0 %v4826_v26  ;;  %v3682_v59 = vrot.slane %v3435_v31, %v10014_v45  ;;  %v4951_v15 = vsel %vm809_vm3, %v9099_v23, -inf  ;;  %v4527_v26 = vcombine.low %v4462_v29, %v9189_v49 }
 0x673   : > { %v3457_v58 = vpop.xlane.xlu1 %3456  ;;  %v3392_v21 = vpop.xlane.xlu0 %3391  ;;  %v4844_v47 = vsel %vm809_vm3, %v9197_v25, 0.0  ;;  %v4957_v23 = vsel %vm809_vm3, %v9112_v19, -inf  ;;  %v4960_v19 = vsel %vm809_vm3, %v9136_v57, -inf  ;;  %v4374_v36 = vrot.slane %v4360_v2, %v7296_v12 }
 0x674   : > { %v3615_v39 = vsel %vm2027_vm5, %v3614_v20, %v3610_v13  ;;  %v3436_v17 = vmul.f32 0.125, %v3392_v21  ;;  %v3784_v40 = vrot.slane %v3457_v58, %v10017_v44  ;;  %v4495_v13 = vcombine.low %v4430_v51, %v4446_v22 }
 0x675   : > { %v9159_v35 = vsel %vm10019_vm0, %v3615_v39, %v9041_v42  ;;  %v4391_v42 = vcombine.low %v9144_v48, %v9147_v53  ;;  %v4535_v58 = vrot.slane %v4527_v26, %v7296_v12  ;;  %v4496_v27 = vcombine.high %v4430_v51, %v4446_v22  ;;  %vm10028_vm0 = vmmov %vm10027_vm2 }
 0x676   : > { %4836 = vadd.xlane.f32.xlu1 %v4835_v61  ;;  %v3686_v32 = vrot.slane %v3436_v17, %v10015_v50  ;;  %4833 = vadd.xlane.f32.xlu0 %v4832_v56  ;;  %v4503_v39 = vrot.slane %v4495_v13, %v7296_v12  ;;  %v4392_v56 = vcombine.high %v9144_v48, %v9147_v53  ;;  %v4972_v22 = vsel %vm809_vm3, %v9197_v25, -inf }
 0x677   : > { %v9173_v0 = vpop.xlane.xlu1 %3504  ;;  %v3460_v63 = vpop.xlane.xlu0 %3459  ;;  %v4399_v4 = vrot.slane %v4391_v42, %v7296_v12  ;;  %v4528_v48 = vcombine.high %v4462_v29, %v9189_v49 }
 0x678   : > { %v3687_v60 = vsel %vm2027_vm5, %v3686_v32, %v3682_v59  ;;  %v3788_v54 = vrot.slane %v3460_v63, %v10018_v5  ;;  %v4547_v61 = vcombine.low %v4503_v39, %v4535_v58  ;;  %v4963_v59 = vsel %vm809_vm3, %v9130_v41, -inf }
 0x679   : > { %v9193_v16 = vsel %vm10020_vm10, %v3687_v60, %v9063_v33  ;;  %v4406_v63 = vrot.slane %v4392_v56, %v7296_v12  ;;  %v4966_v41 = vsel %vm809_vm3, %v9163_v7, -inf  ;;  %v4548_v53 = vcombine.high %v4503_v39, %v4535_v58 }
 0x67a   : > { %4842 = vadd.xlane.f32.xlu1 %v4841_v9  ;;  %v3789_v11 = vsel %vm2229_vm9, %v3788_v54, %v3784_v40  ;;  %4839 = vadd.xlane.f32.xlu0 %v4838_v28  ;;  %v4850_v42 = vsel %vm809_vm3, %v4547_v61, 0.0  ;;  %v4969_v54 = vsel %vm809_vm3, %v9153_v46, -inf  ;;  %v4542_v49 = vrot.slane %v4528_v48, %v7296_v12 }
 0x67b   : > { %v9202_v38 = vpop.xlane.xlu1 %3346  ;;  %v9208_v33 = vsel %vm2166_vm7, %v3789_v11, %v9093_v43  ;;  %v9210_v18 = vpop.xlane.xlu0 %3507  ;;  %v4367_v43 = vrot.slane %v4359_v62, %v7296_v12  ;;  %v4413_v9 = vcombine.low %v4374_v36, %v4406_v63  ;;  %v4856_v28 = vsel %vm809_vm3, %v4548_v53, 0.0 }
 0x67c   : > { %v4510_v11 = vrot.slane %v4496_v27, %v7296_v12  ;;  %v4414_v26 = vcombine.high %v4374_v36, %v4406_v63  ;;  %v4978_v25 = vsel %vm809_vm3, %v4547_v61, -inf  ;;  %v4984_v61 = vsel %vm809_vm3, %v4548_v53, -inf }
 0x67d   : > { %v4411_v20 = vcombine.low %v4367_v43, %v4399_v4  ;;  %v4412_v32 = vcombine.high %v4367_v43, %v4399_v4  ;;  %v4859_v29 = vsel %vm809_vm3, %v4413_v9, 0.0  ;;  %v4987_v56 = vsel %vm809_vm3, %v4413_v9, -inf }
 0x67e   : > { %4952 = vmax.xlane.f32.xlu1 %v4951_v15  ;;  %4845 = vadd.xlane.f32.xlu0 %v4844_v47  ;;  %v4549_v46 = vcombine.low %v4510_v11, %v4542_v49  ;;  %v4865_v13 = vsel %vm809_vm3, %v4414_v26, 0.0  ;;  %v3421_v2 = vmul.f32 0.125, %v9202_v38  ;;  %v4993_v63 = vsel %vm809_vm3, %v4414_v26, -inf }
 0x67f   : > { %v9219_v24 = vpop.xlane.xlu1 %3394  ;;  %v9222_v31 = vpop.xlane.xlu0 %3349  ;;  %v4847_v17 = vsel %vm809_vm3, %v4411_v20, 0.0  ;;  %v4853_v10 = vsel %vm809_vm3, %v4412_v32, 0.0  ;;  %v4975_v51 = vsel %vm809_vm3, %v4411_v20, -inf  ;;  %v4981_v20 = vsel %vm809_vm3, %v4412_v32, -inf }
 0x680   : > { %v4862_v47 = vsel %vm809_vm3, %v4549_v46, 0.0  ;;  %v3856_v53 = vrot.slane %v9173_v0, %v10017_v44  ;;  %v3437_v36 = vmul.f32 0.125, %v9219_v24  ;;  %v3619_v27 = vrot.slane %v3421_v2, %v10014_v45 }
 0x681   : > { %vm10029_vm10 = vcmask 130048  }
 0x682   : > { %4958 = vmax.xlane.f32.xlu1 %v4957_v23  ;;  %4955 = vmax.xlane.f32.xlu0 %v4954_v1  ;;  %v4550_v23 = vcombine.high %v4510_v11, %v4542_v49 }
 0x683   : > { %v9229_v21 = vpop.xlane.xlu1 %3462  ;;  %v9231_v30 = vpop.xlane.xlu0 %3397 }
 0x684   : > { %v4868_v39 = vsel %vm809_vm3, %v4550_v23, 0.0  ;;  %v4996_v49 = vsel %vm809_vm3, %v4550_v23, -inf  ;;  %v3793_v24 = vrot.slane %v9229_v21, %v10017_v44 }
 0x686   : > { %4848 = vadd.xlane.f32.xlu1 %v4847_v17  ;;  %4961 = vmax.xlane.f32.xlu0 %v4960_v19 }
 0x687   : > { %v9237_v6 = vpop.xlane.xlu1 %3510  ;;  %v9239_v34 = vpop.xlane.xlu0 %3465 }
 0x68a   : > { %4964 = vmax.xlane.f32.xlu1 %v4963_v59  ;;  %4851 = vadd.xlane.f32.xlu0 %v4850_v42  ;;  %v3422_v59 = vmul.f32 0.125, %v9222_v31  ;;  %v4990_v31 = vsel %vm809_vm3, %v4549_v46, -inf  ;;  %vm10021_vm3 = vcmask 1045509  }
 0x68b   : > { %v9248_v57 = vpop.xlane.xlu1 %3352  ;;  %v9250_v37 = vpop.xlane.xlu0 %3513  ;;  %vm10024_vm13 = vmmov %vm10021_vm3 }
 0x68c   : > { %v3623_v48 = vrot.slane %v3422_v59, %v10015_v50 }
 0x68e   : > { %4854 = vadd.xlane.f32.xlu1 %v4853_v10  ;;  %4967 = vmax.xlane.f32.xlu0 %v4966_v41  ;;  %v3860_v10 = vrot.slane %v9210_v18, %v10018_v5  ;;  %v3438_v41 = vmul.f32 0.125, %v9231_v30  ;;  %v3797_v18 = vrot.slane %v9239_v34, %v10018_v5  ;;  %v3624_v0 = vsel %vm2027_vm5, %v3623_v48, %v3619_v27 }
 0x68f   : > { %v9257_v40 = vpop.xlane.xlu1 %3400  ;;  %v3356_v60 = vpop.xlane.xlu0 %3355  ;;  %v3865_v34 = vrot.slane %v9237_v6, %v10017_v44  ;;  %v3719_v6 = vsel %vm10021_vm3, %v3624_v0, %v9159_v35 }
 0x690   : > { %v3861_v30 = vsel %vm2229_vm9, %v3860_v10, %v3856_v53  ;;  %v3695_v11 = vrot.slane %v3438_v41, %v10015_v50 }
 0x692   : > { %4970 = vmax.xlane.f32.xlu1 %v4969_v54  ;;  %4857 = vadd.xlane.f32.xlu0 %v4856_v28  ;;  %v3869_v54 = vrot.slane %v9250_v37, %v10018_v5  ;;  %v3424_v28 = vmul.f32 0.125, %v3356_v60  ;;  %v3423_v37 = vmul.f32 0.125, %v9248_v57  ;;  %v3798_v60 = vsel %vm2229_vm9, %v3797_v18, %v3793_v24 }
 0x693   : > { %v9264_v62 = vpop.xlane.xlu1 %3468  ;;  %v9266_v7 = vpop.xlane.xlu0 %3403 }
 0x694   : > { %v3870_v46 = vsel %vm2229_vm9, %v3869_v54, %v3865_v34  ;;  %v3632_v57 = vrot.slane %v3424_v28, %v10015_v50  ;;  %v3802_v23 = vrot.slane %v9264_v62, %v10017_v44 }
 0x696   : > { %4860 = vadd.xlane.f32.xlu1 %v4859_v29  ;;  %4973 = vmax.xlane.f32.xlu0 %v4972_v22  ;;  %v3691_v29 = vrot.slane %v3437_v36, %v10014_v45 }
 0x697   : > { %v9272_v15 = vpop.xlane.xlu1 %3516  ;;  %v9274_v4 = vpop.xlane.xlu0 %3471 }
 0x69a   : > { %4976 = vmax.xlane.f32.xlu1 %v4975_v51  ;;  %4863 = vadd.xlane.f32.xlu0 %v4862_v47  ;;  %v3806_v51 = vrot.slane %v9274_v4, %v10018_v5  ;;  %v3915_v47 = vsel %vm2166_vm7, %v3861_v30, %v9126_v55  ;;  %v3628_v55 = vrot.slane %v3423_v37, %v10014_v45 }
 0x69b   : > { %v3359_v12 = vpop.xlane.xlu1 %3358  ;;  %v9278_v43 = vpop.xlane.xlu0 %3519 }
 0x69c   : > { %v3425_v4 = vmul.f32 0.125, %v3359_v12  ;;  %v3878_v59 = vrot.slane %v9278_v43, %v10018_v5 }
 0x69e   : > { %4866 = vadd.xlane.f32.xlu1 %v4865_v13  ;;  %4979 = vmax.xlane.f32.xlu0 %v4978_v25  ;;  %v3439_v13 = vmul.f32 0.125, %v9257_v40  ;;  %v3696_v25 = vsel %vm2027_vm5, %v3695_v11, %v3691_v29  ;;  %v3637_v43 = vrot.slane %v3425_v4, %v10014_v45 }
 0x69f   : > { %v9282_v1 = vpop.xlane.xlu1 %3406  ;;  %v3362_v58 = vpop.xlane.xlu0 %3361 }
 0x6a0   : > { %v3426_v26 = vmul.f32 0.125, %v3362_v58  ;;  %v3909_v58 = vsel %vm2168_vm8, %v3798_v60, %v9208_v33  ;;  %v3633_v33 = vsel %vm2027_vm5, %v3632_v57, %v3628_v55  ;;  %v3726_v57 = vsel %vm10021_vm3, %v3696_v25, %v9193_v16 }
 0x6a2   : > { %4982 = vmax.xlane.f32.xlu1 %v4981_v20  ;;  %4869 = vadd.xlane.f32.xlu0 %v4868_v39  ;;  %v3440_v20 = vmul.f32 0.125, %v9266_v7  ;;  %v3916_v39 = vsel %vm2168_vm8, %v3870_v46, %v3915_v47  ;;  %v3641_v62 = vrot.slane %v3426_v26, %v10015_v50 }
 0x6a3   : > { %v9286_v17 = vpop.xlane.xlu1 %3474  ;;  %v3410_v19 = vpop.xlane.xlu0 %3409 }
 0x6a4   : > { %v3811_v2 = vrot.slane %v9286_v17, %v10017_v44  ;;  %v3442_v10 = vmul.f32 0.125, %v3410_v19  ;;  %v3642_v27 = vsel %vm2027_vm5, %v3641_v62, %v3637_v43 }
 0x6a6   : > { %4988 = vmax.xlane.f32.xlu1 %v4987_v56  ;;  %4985 = vmax.xlane.f32.xlu0 %v4984_v61  ;;  %v3807_v56 = vsel %vm2229_vm9, %v3806_v51, %v3802_v23  ;;  %v3700_v61 = vrot.slane %v3439_v13, %v10014_v45 }
 0x6a7   : > { %v9291_v42 = vpop.xlane.xlu1 %3522  ;;  %v3478_v32 = vpop.xlane.xlu0 %3477  ;;  %v3910_v41 = vsel %vm10022_vm11, %v3807_v56, %v3909_v58  ;;  %vm10030_vm11 = vmmov %vm10021_vm3 }
 0x6a8   : > { %v3815_v35 = vrot.slane %v3478_v32, %v10018_v5  ;;  %v3704_v32 = vrot.slane %v3440_v20, %v10015_v50 }
 0x6aa   : > { %4994 = vmax.xlane.f32.xlu1 %v4993_v63  ;;  %4991 = vmax.xlane.f32.xlu0 %v4990_v31  ;;  %v3874_v63 = vrot.slane %v9272_v15, %v10017_v44  ;;  %v3441_v31 = vmul.f32 0.125, %v9282_v1  ;;  %v3816_v53 = vsel %vm2229_vm9, %v3815_v35, %v3811_v2  ;;  %v3883_v1 = vrot.slane %v9291_v42, %v10017_v44 }
 0x6ab   : > { %v3481_v38 = vpop.xlane.xlu1 %3480  ;;  %v9308_v9 = vpop.xlane.xlu0 %3525  ;;  %v3911_v0 = vsel %vm10024_vm13, %v3816_v53, %v3910_v41  ;;  %vm10031_vm13 = vmmov %vm10023_vm12 }
 0x6ac   : > { %v3820_v48 = vrot.slane %v3481_v38, %v10017_v44  ;;  %v3887_v36 = vrot.slane %v9308_v9, %v10018_v5  ;;  %v3879_v19 = vsel %vm2229_vm9, %v3878_v59, %v3874_v63  ;;  %v3713_v38 = vrot.slane %v3442_v10, %v10015_v50 }
 0x6ad   : > { %v3720_v9 = vsel %vm10023_vm12, %v3633_v33, %v3719_v6  ;;  %v3709_v11 = vrot.slane %v3441_v31, %v10014_v45  ;;  %v3917_v60 = vsel %vm10026_vm1, %v3879_v19, %v3916_v39  ;;  %vm10033_vm1 = vmmov %vm10028_vm0 }
 0x6ae   : > { %4997 = vmax.xlane.f32.xlu0 %v4996_v49  ;;  %v3705_v49 = vsel %vm2027_vm5, %v3704_v32, %v3700_v61  ;;  %v3888_v34 = vsel %vm2229_vm9, %v3887_v36, %v3883_v1  ;;  %v3721_v46 = vsel %vm10027_vm2, %v3642_v27, %v3720_v9  ;;  %vm10034_vm2 = vcmask 1042432  }
 0x6af   : > { %v3529_v22 = vpop.xlane.xlu1 %3528  ;;  %v3484_v21 = vpop.xlane.xlu0 %3483  ;;  %v3918_v23 = vsel %vm10030_vm11, %v3888_v34, %v3917_v60  ;;  %v3727_v4 = vsel %vm10023_vm12, %v3705_v49, %v3726_v57  ;;  %vm10037_vm3 = vmmov %vm10034_vm2  ;;  %vm10039_vm12 = vcmask 1046528  }
 0x6b0   : > { %v3824_v7 = vrot.slane %v3484_v21, %v10018_v5  ;;  %v3892_v24 = vrot.slane %v3529_v22, %v10017_v44  ;;  %v3714_v22 = vsel %vm2027_vm5, %v3713_v38, %v3709_v11  ;;  %vm10038_vm11 = vmmov %vm10034_vm2 }
 0x6b2   : > { %v3825_v15 = vsel %vm2229_vm9, %v3824_v7, %v3820_v48 }
 0x6b3   : > { %v3487_v40 = vpop.xlane.xlu1 %3486  ;;  %v3532_v12 = vpop.xlane.xlu0 %3531  ;;  %v3912_v29 = vsel %vm10025_vm14, %v3825_v15, %v3911_v0  ;;  %vm10032_vm14 = vmmov %vm10028_vm0 }
 0x6b4   : > { %v3896_v18 = vrot.slane %v3532_v12, %v10018_v5  ;;  %v3829_v30 = vrot.slane %v3487_v40, %v10017_v44  ;;  %v3728_v40 = vsel %vm10032_vm14, %v3714_v22, %v3727_v4  ;;  %vm10041_vm14 = vcmask 1045504  }
 0x6b6   : > { %v3897_v51 = vsel %vm2229_vm9, %v3896_v18, %v3892_v24 }
 0x6b7   : > { %v3535_v17 = vpop.xlane.xlu1 %3534  ;;  %v3490_v54 = vpop.xlane.xlu0 %3489  ;;  %v3919_v58 = vsel %vm10031_vm13, %v3897_v51, %v3918_v23  ;;  %vm10040_vm13 = vcmask 1044480  }
 0x6b8   : > { %v3833_v28 = vrot.slane %v3490_v54, %v10018_v5  ;;  %v3901_v47 = vrot.slane %v3535_v17, %v10017_v44 }
 0x6ba   : > { %v3834_v42 = vsel %vm2229_vm9, %v3833_v28, %v3829_v30 }
 0x6bb   : > { %v4873_v37 = vpop.xlane.xlu1 %4872  ;;  %v3913_v26 = vsel %vm10028_vm0, %v3834_v42, %v3912_v29  ;;  %v3538_v21 = vpop.xlane.xlu0 %3537  ;;  %vm10035_vm0 = vmmov %vm10029_vm10 }
 0x6bc   : > { %v3923_v6 = vsel %vm10029_vm10, %v3721_v46, %v3913_v26  ;;  %v3905_v13 = vrot.slane %v3538_v21, %v10018_v5  ;;  %v4935_v55 = vmul.f32 0.125, %v4873_v37  ;;  %vm10036_vm10 = vmmov %vm10034_vm2 }
 0x6bd   : > { %v3927_v20 = vrot.slane %v3923_v6, 5 }
 0x6be   : > { %v3906_v39 = vsel %vm2229_vm9, %v3905_v13, %v3901_v47  ;;  %v5154_v61 = vrot.slane %v4935_v55, %v10014_v45 }
 0x6bf   : > { %v4879_v35 = vpop.xlane.xlu1 %4878  ;;  %v3920_v56 = vsel %vm10033_vm1, %v3906_v39, %v3919_v58  ;;  %v4876_v59 = vpop.xlane.xlu0 %4875  ;;  %v9392_v62 = vsel %vm10034_vm2, 0.0, %v3927_v20  ;;  %vm10042_vm1 = vmmov %vm10039_vm12 }
 0x6c0   : > { %v3924_v16 = vsel %vm10035_vm0, %v3728_v40, %v3920_v56  ;;  %v4936_v25 = vmul.f32 0.125, %v4876_v59  ;;  %v4937_v12 = vmul.f32 0.125, %v4879_v35  ;;  %v3977_v43 = vrot.slane %v9392_v62, 5  ;;  %vm10043_vm2 = vmmov %vm10041_vm14 }
 0x6c1   : > { %v3928_v7 = vrot.slane %v3924_v16, 5  ;;  %v3937_v48 = vrot.slane %v9392_v62, 1  ;;  %v3959_v28 = vrot.slane %v9392_v62, 3  ;;  %v3948_v9 = vrot.slane %v9392_v62, 2  ;;  %vm10044_vm0 = vmmov %vm10037_vm3 }
 0x6c2   : > { %v5158_v33 = vrot.slane %v4936_v25, %v10015_v50  ;;  %v5163_v19 = vrot.slane %v4937_v12, %v10014_v45  ;;  %v3988_v47 = vrot.slane %v9392_v62, 6 }
 0x6c3   : > { %v4885_v2 = vpop.xlane.xlu1 %4884  ;;  %v9398_v10 = vsel %vm10036_vm10, %v3927_v20, %v3928_v7  ;;  %v4882_v63 = vpop.xlane.xlu0 %4881  ;;  %v9406_v17 = vsel %vm10037_vm3, %v3928_v7, 0.0  ;;  %vm10045_vm10 = vmmov %vm10040_vm13  ;;  %vm10046_vm3 = vcmask 1041408  }
 0x6c4   : > { %v4939_v32 = vmul.f32 0.125, %v4885_v2  ;;  %v5159_v41 = vsel %vm2027_vm5, %v5158_v33, %v5154_v61  ;;  %v4938_v31 = vmul.f32 0.125, %v4882_v63  ;;  %v3978_v53 = vrot.slane %v9398_v10, 5 }
 0x6c5   : > { %v3938_v36 = vrot.slane %v9398_v10, 1  ;;  %v3960_v27 = vrot.slane %v9398_v10, 3  ;;  %v3949_v1 = vrot.slane %v9398_v10, 2  ;;  %v3980_v11 = vrot.slane %v9406_v17, 5 }
 0x6c6   : > { %v5167_v15 = vrot.slane %v4938_v31, %v10015_v50  ;;  %v3979_v54 = vsel %vm10038_vm11, %v3977_v43, %v3978_v53  ;;  %v5172_v49 = vrot.slane %v4939_v32, %v10014_v45  ;;  %v3989_v37 = vrot.slane %v9398_v10, 6  ;;  %vm10047_vm11 = vmmov %vm10046_vm3 }
 0x6c7   : > { %v4891_v18 = vpop.xlane.xlu1 %4890  ;;  %v3939_v38 = vsel %vm10039_vm12, %v3937_v48, %v3938_v36  ;;  %3982 = vrot.lane.b32.xlu0 %v3979_v54, %s9998_s2  ;;  %v4888_v30 = vpop.xlane.xlu0 %4887  ;;  %v3961_v42 = vsel %vm10040_vm13, %v3959_v28, %v3960_v27  ;;  %v3950_v51 = vsel %vm10041_vm14, %v3948_v9, %v3949_v1  ;;  %v3940_v26 = vrot.slane %v9406_v17, 1 }
 0x6c8   : > { %3942 = vrot.lane.b32.xlu1 %v3939_v38, %s9998_s2  ;;  %v5168_v0 = vsel %vm2027_vm5, %v5167_v15, %v5163_v19  ;;  %v4940_v24 = vmul.f32 0.125, %v4888_v30  ;;  %v4941_v29 = vmul.f32 0.125, %v4891_v18  ;;  %v3951_v21 = vrot.slane %v9406_v17, 2 }
 0x6c9   : > { %v5230_v34 = vsel %vm2164_vm6, %v5168_v0, %v5159_v41  ;;  %v3962_v6 = vrot.slane %v9406_v17, 3  ;;  %v9434_v23 = vsel %vm10042_vm1, %v3938_v36, %v3940_v26  ;;  %v3981_v58 = vsel %vm10044_vm0, %v3978_v53, %v3980_v11 }
 0x6ca   : > { %v5176_v60 = vrot.slane %v4940_v24, %v10015_v50  ;;  %v9437_v20 = vsel %vm10043_vm2, %v3949_v1, %v3951_v21  ;;  %v5181_v39 = vrot.slane %v4941_v29, %v10014_v45  ;;  %v3990_v56 = vsel %vm10046_vm3, %v3988_v47, %v3989_v37 }
 0x6cb   : > { %v5001_v46 = vpop.xlane.xlu1 %5000  ;;  %3964 = vrot.lane.b32.xlu0 %v3961_v42, %s9973_s10  ;;  %v4894_v22 = vpop.xlane.xlu0 %4893  ;;  %v9442_v55 = vsel %vm10045_vm10, %v3960_v27, %v3962_v6  ;;  %v3991_v59 = vrot.slane %v9406_v17, 6  ;;  %vm10048_vm12 = vcmask 1044484   ;;  %vm10049_vm13 = vcmask 1045509  }
 0x6cc   : > { %3953 = vrot.lane.b32.xlu1 %v3950_v51, %s9972_s30  ;;  %v5177_v13 = vsel %vm2027_vm5, %v5176_v60, %v5172_v49  ;;  %v4942_v57 = vmul.f32 0.125, %v4894_v22  ;;  %v5346_v25 = vrot.slane %v5001_v46, %v10017_v44  ;;  %vm10050_vm14 = vcmask 1046534   ;;  %vm10051_vm1 = vmmov %vm10048_vm12 }
 0x6cd   : > { %v5231_v4 = vsel %vm2166_vm7, %v5177_v13, %v5230_v34  ;;  %v3992_v32 = vsel %vm10047_vm11, %v3989_v37, %v3991_v59  ;;  %vm10052_vm2 = vcmask 1047559   ;;  %vm10053_vm0 = vmmov %vm10049_vm13  ;;  %vm10056_vm11 = vcmask 130048  }
 0x6ce   : > { %v5185_v35 = vrot.slane %v4942_v57, %v10015_v50  ;;  %vm10054_vm10 = vmmov %vm10050_vm14 }
 0x6cf   : > { %v5007_v40 = vpop.xlane.xlu1 %5006  ;;  %3984 = vrot.lane.b32.xlu0 %v3981_v58, %s9998_s2  ;;  %v5004_v16 = vpop.xlane.xlu0 %5003  ;;  %vm10055_vm3 = vmmov %vm10052_vm2 }
 0x6d0   : > { %3993 = vrot.lane.b32.xlu1 %v3990_v56, %s9972_s30  ;;  %v5186_v7 = vsel %vm2027_vm5, %v5185_v35, %v5181_v39  ;;  %v5350_v12 = vrot.slane %v5004_v16, %v10018_v5  ;;  %v5355_v43 = vrot.slane %v5007_v40, %v10017_v44 }
 0x6d1   : > { %v5232_v61 = vsel %vm2168_vm8, %v5186_v7, %v5231_v4 }
 0x6d2   : > { %v5351_v33 = vsel %vm2229_vm9, %v5350_v12, %v5346_v25 }
 0x6d3   : > { %v4897_v2 = vpop.xlane.xlu1 %4896  ;;  %3995 = vrot.lane.b32.xlu0 %v3992_v32, %s9972_s30  ;;  %v5010_v63 = vpop.xlane.xlu0 %5009 }
 0x6d4   : > { %v5359_v48 = vrot.slane %v5010_v63, %v10018_v5  ;;  %v4943_v41 = vmul.f32 0.125, %v4897_v2 }
 0x6d6   : > { %v5360_v31 = vsel %vm2229_vm9, %v5359_v48, %v5355_v43  ;;  %v5190_v15 = vrot.slane %v4943_v41, %v10014_v45 }
 0x6d7   : > { %v5013_v53 = vpop.xlane.xlu1 %5012  ;;  %v5422_v36 = vsel %vm2164_vm6, %v5360_v31, %v5351_v33  ;;  %v4900_v19 = vpop.xlane.xlu0 %4899 }
 0x6d8   : > { %v4944_v27 = vmul.f32 0.125, %v4900_v19  ;;  %v5364_v1 = vrot.slane %v5013_v53, %v10017_v44 }
 0x6da   : > { %v5194_v18 = vrot.slane %v4944_v27, %v10015_v50 }
 0x6db   : > { %v4903_v54 = vpop.xlane.xlu1 %4902  ;;  %v5016_v38 = vpop.xlane.xlu0 %5015 }
 0x6dc   : > { %v5195_v30 = vsel %vm2027_vm5, %v5194_v18, %v5190_v15  ;;  %v5368_v28 = vrot.slane %v5016_v38, %v10018_v5  ;;  %v4945_v49 = vmul.f32 0.125, %v4903_v54 }
 0x6dd   : > { %v5233_v9 = vsel %vm10048_vm12, %v5195_v30, %v5232_v61  ;;  %vm10057_vm12 = vmmov %vm10051_vm1 }
 0x6de   : > { %v5369_v0 = vsel %vm2229_vm9, %v5368_v28, %v5364_v1  ;;  %v5199_v42 = vrot.slane %v4945_v49, %v10014_v45 }
 0x6df   : > { %v5019_v24 = vpop.xlane.xlu1 %5018  ;;  %v5423_v11 = vsel %vm2166_vm7, %v5369_v0, %v5422_v36  ;;  %v4906_v34 = vpop.xlane.xlu0 %4905 }
 0x6e0   : > { %v4946_v29 = vmul.f32 0.125, %v4906_v34  ;;  %v5373_v51 = vrot.slane %v5019_v24, %v10017_v44 }
 0x6e2   : > { %v5203_v37 = vrot.slane %v4946_v29, %v10015_v50 }
 0x6e3   : > { %v4909_v60 = vpop.xlane.xlu1 %4908  ;;  %v5022_v46 = vpop.xlane.xlu0 %5021 }
 0x6e4   : > { %v5204_v26 = vsel %vm2027_vm5, %v5203_v37, %v5199_v42  ;;  %v5377_v21 = vrot.slane %v5022_v46, %v10018_v5  ;;  %v4947_v47 = vmul.f32 0.125, %v4909_v60 }
 0x6e5   : > { %v5234_v22 = vsel %vm10049_vm13, %v5204_v26, %v5233_v9  ;;  %vm10060_vm13 = vmmov %vm10053_vm0 }
 0x6e6   : > { %v5378_v6 = vsel %vm2229_vm9, %v5377_v21, %v5373_v51  ;;  %v5208_v39 = vrot.slane %v4947_v47, %v10014_v45 }
 0x6e7   : > { %v5025_v13 = vpop.xlane.xlu1 %5024  ;;  %v5424_v57 = vsel %vm2168_vm8, %v5378_v6, %v5423_v11  ;;  %v4912_v4 = vpop.xlane.xlu0 %4911 }
 0x6e8   : > { %v4948_v58 = vmul.f32 0.125, %v4912_v4  ;;  %v5382_v59 = vrot.slane %v5025_v13, %v10017_v44 }
 0x6ea   : > { %v5212_v35 = vrot.slane %v4948_v58, %v10015_v50 }
 0x6eb   : > { %v4915_v40 = vpop.xlane.xlu1 %4914  ;;  %v5028_v56 = vpop.xlane.xlu0 %5027 }
 0x6ec   : > { %v5213_v16 = vsel %vm2027_vm5, %v5212_v35, %v5208_v39  ;;  %v5386_v25 = vrot.slane %v5028_v56, %v10018_v5  ;;  %v4949_v12 = vmul.f32 0.125, %v4915_v40 }
 0x6ed   : > { %v5235_v7 = vsel %vm10050_vm14, %v5213_v16, %v5234_v22 }
 0x6ee   : > { %v5387_v61 = vsel %vm2229_vm9, %v5386_v25, %v5382_v59  ;;  %v5217_v43 = vrot.slane %v4949_v12, %v10014_v45 }
 0x6ef   : > { %v5031_v33 = vpop.xlane.xlu1 %5030  ;;  %v5425_v2 = vsel %vm10051_vm1, %v5387_v61, %v5424_v57  ;;  %v4918_v32 = vpop.xlane.xlu0 %4917 }
 0x6f0   : > { %v4950_v63 = vmul.f32 0.125, %v4918_v32  ;;  %v5391_v53 = vrot.slane %v5031_v33, %v10017_v44 }
 0x6f2   : > { %v5221_v48 = vrot.slane %v4950_v63, %v10015_v50 }
 0x6f3   : > { %v5037_v41 = vpop.xlane.xlu1 %5036  ;;  %v5034_v31 = vpop.xlane.xlu0 %5033 }
 0x6f4   : > { %v5222_v36 = vsel %vm2027_vm5, %v5221_v48, %v5217_v43  ;;  %v5395_v19 = vrot.slane %v5034_v31, %v10018_v5  ;;  %v5400_v1 = vrot.slane %v5037_v41, %v10017_v44 }
 0x6f5   : > { %v5236_v27 = vsel %vm10052_vm2, %v5222_v36, %v5235_v7 }
 0x6f6   : > { %v5396_v15 = vsel %vm2229_vm9, %v5395_v19, %v5391_v53 }
 0x6f7   : > { %v5043_v18 = vpop.xlane.xlu1 %5042  ;;  %v5426_v54 = vsel %vm10053_vm0, %v5396_v15, %v5425_v2  ;;  %v5040_v38 = vpop.xlane.xlu0 %5039 }
 0x6f8   : > { %v5404_v30 = vrot.slane %v5040_v38, %v10018_v5  ;;  %v5409_v24 = vrot.slane %v5043_v18, %v10017_v44 }
 0x6fa   : > { %v5405_v28 = vsel %vm2229_vm9, %v5404_v30, %v5400_v1 }
 0x6fb   : > { %v4825_v9 = vpop.xlane.xlu1 %4824  ;;  %v5427_v49 = vsel %vm10054_vm10, %v5405_v28, %v5426_v54  ;;  %v5046_v0 = vpop.xlane.xlu0 %5045 }
 0x6fc   : > { %v5413_v11 = vrot.slane %v5046_v0, %v10018_v5  ;;  %v4919_v48 = vmul.f32 0.125, %v4825_v9 }
 0x6fe   : > { %v5414_v34 = vsel %vm2229_vm9, %v5413_v11, %v5409_v24  ;;  %v5082_v38 = vrot.slane %v4919_v48, %v10014_v45 }
 0x6ff   : > { %v4831_v29 = vpop.xlane.xlu1 %4830  ;;  %v5428_v42 = vsel %vm10055_vm3, %v5414_v34, %v5427_v49  ;;  %v4828_v37 = vpop.xlane.xlu0 %4827  ;;  %vm10069_vm3 = vcmask 1042432  }
 0x700   : > { %v9502_v60 = vsel %vm10056_vm11, %v5236_v27, %v5428_v42  ;;  %v4921_v33 = vmul.f32 0.125, %v4831_v29  ;;  %v4920_v2 = vmul.f32 0.125, %v4828_v37 }
 0x702   : > { %v5091_v19 = vrot.slane %v4921_v33, %v10014_v45  ;;  %v5086_v27 = vrot.slane %v4920_v2, %v10015_v50 }
 0x703   : > { %v4837_v46 = vpop.xlane.xlu1 %4836  ;;  %v4834_v51 = vpop.xlane.xlu0 %4833 }
 0x704   : > { %v4922_v7 = vmul.f32 0.125, %v4834_v51  ;;  %v4923_v43 = vmul.f32 0.125, %v4837_v46  ;;  %v5087_v0 = vsel %vm2027_vm5, %v5086_v27, %v5082_v38 }
 0x706   : > { %v5095_v41 = vrot.slane %v4922_v7, %v10015_v50  ;;  %v5100_v54 = vrot.slane %v4923_v43, %v10014_v45 }
 0x707   : > { %v4843_v26 = vpop.xlane.xlu1 %4842  ;;  %v4840_v21 = vpop.xlane.xlu0 %4839 }
 0x708   : > { %v4924_v12 = vmul.f32 0.125, %v4840_v21  ;;  %v4925_v31 = vmul.f32 0.125, %v4843_v26  ;;  %v5096_v1 = vsel %vm2027_vm5, %v5095_v41, %v5091_v19 }
 0x709   : > { %v5223_v29 = vsel %vm2164_vm6, %v5096_v1, %v5087_v0 }
 0x70a   : > { %v5104_v53 = vrot.slane %v4924_v12, %v10015_v50  ;;  %v5109_v30 = vrot.slane %v4925_v31, %v10014_v45 }
 0x70b   : > { %v4953_v22 = vpop.xlane.xlu1 %4952  ;;  %v4846_v47 = vpop.xlane.xlu0 %4845 }
 0x70c   : > { %v4926_v32 = vmul.f32 0.125, %v4846_v47  ;;  %v5105_v9 = vsel %vm2027_vm5, %v5104_v53, %v5100_v54  ;;  %v5274_v26 = vrot.slane %v4953_v22, %v10017_v44 }
 0x70d   : > { %v5224_v46 = vsel %vm2166_vm7, %v5105_v9, %v5223_v29 }
 0x70e   : > { %v5113_v15 = vrot.slane %v4926_v32, %v10015_v50 }
 0x70f   : > { %v4959_v6 = vpop.xlane.xlu1 %4958  ;;  %v4956_v13 = vpop.xlane.xlu0 %4955 }
 0x710   : > { %v5114_v24 = vsel %vm2027_vm5, %v5113_v15, %v5109_v30  ;;  %v5278_v42 = vrot.slane %v4956_v13, %v10018_v5  ;;  %v5283_v47 = vrot.slane %v4959_v6, %v10017_v44 }
 0x711   : > { %v5225_v21 = vsel %vm2168_vm8, %v5114_v24, %v5224_v46 }
 0x712   : > { %v5279_v2 = vsel %vm2229_vm9, %v5278_v42, %v5274_v26 }
 0x713   : > { %v4849_v57 = vpop.xlane.xlu1 %4848  ;;  %v4962_v4 = vpop.xlane.xlu0 %4961 }
 0x714   : > { %v4927_v11 = vmul.f32 0.125, %v4849_v57  ;;  %v5287_v37 = vrot.slane %v4962_v4, %v10018_v5 }
 0x716   : > { %v5118_v57 = vrot.slane %v4927_v11, %v10014_v45  ;;  %v5288_v32 = vsel %vm2229_vm9, %v5287_v37, %v5283_v47 }
 0x717   : > { %v9504_v58 = vpop.xlane.xlu1 %4964  ;;  %v4852_v39 = vpop.xlane.xlu0 %4851  ;;  %v5415_v54 = vsel %vm2164_vm6, %v5288_v32, %v5279_v2  ;;  %vm10058_vm6 = vmmov %vm10051_vm1  ;;  %v5436_v32 = vrot.slane %v9502_v60, 5 }
 0x718   : > { %v4928_v28 = vmul.f32 0.125, %v4852_v39  ;;  %v5292_v6 = vrot.slane %v9504_v58, %v10017_v44  ;;  %vm10063_vm1 = vmmov %vm10052_vm2 }
 0x719   : > { %vm10065_vm2 = vmmov %vm10056_vm11 }
 0x71a   : > { %v5122_v51 = vrot.slane %v4928_v28, %v10015_v50  ;;  %vm10070_vm11 = vmmov %vm10069_vm3 }
 0x71b   : > { %v4855_v35 = vpop.xlane.xlu1 %4854  ;;  %v9506_v40 = vpop.xlane.xlu0 %4967 }
 0x71c   : > { %v4929_v12 = vmul.f32 0.125, %v4855_v35  ;;  %v5296_v13 = vrot.slane %v9506_v40, %v10018_v5 }
 0x71e   : > { %v5297_v19 = vsel %vm2229_vm9, %v5296_v13, %v5292_v6 }
 0x71f   : > { %v9508_v56 = vpop.xlane.xlu1 %4970  ;;  %v4858_v59 = vpop.xlane.xlu0 %4857 }
 0x720   : > { %v4930_v39 = vmul.f32 0.125, %v4858_v59  ;;  %v5123_v59 = vsel %vm2027_vm5, %v5122_v51, %v5118_v57  ;;  %v5301_v40 = vrot.slane %v9508_v56, %v10017_v44 }
 0x723   : > { %v4861_v16 = vpop.xlane.xlu1 %4860  ;;  %v9510_v25 = vpop.xlane.xlu0 %4973 }
 0x724   : > { %v5305_v22 = vrot.slane %v9510_v25, %v10018_v5  ;;  %v4931_v48 = vmul.f32 0.125, %v4861_v16  ;;  %v5127_v25 = vrot.slane %v4929_v12, %v10014_v45 }
 0x726   : > { %v5306_v15 = vsel %vm2229_vm9, %v5305_v22, %v5301_v40  ;;  %v5136_v38 = vrot.slane %v4931_v48, %v10014_v45 }
 0x727   : > { %v9512_v61 = vpop.xlane.xlu1 %4976  ;;  %v4864_v63 = vpop.xlane.xlu0 %4863 }
 0x728   : > { %v4932_v33 = vmul.f32 0.125, %v4864_v63  ;;  %v5131_v63 = vrot.slane %v4930_v39, %v10015_v50  ;;  %v5310_v58 = vrot.slane %v9512_v61, %v10017_v44  ;;  %v5416_v61 = vsel %vm2166_vm7, %v5297_v19, %v5415_v54  ;;  %vm10059_vm7 = vmmov %vm10053_vm0 }
 0x729   : > { %v5417_v24 = vsel %vm2168_vm8, %v5306_v15, %v5416_v61  ;;  %vm10061_vm8 = vmmov %vm10054_vm10  ;;  %vm10067_vm0 = vcmask 261120   ;;  %v3973_v54 = vrot.slane %v9406_v17, 4  ;;  %v5521_v61 = vld [vmem:[%s9844_s8 + $0x20] sm:$0xff]  ;;  %v10074_v17 = vmov 0.0|0.0  }
 0x72a   : > { %v5140_v16 = vrot.slane %v4932_v33, %v10015_v50  ;;  %v5132_v28 = vsel %vm2027_vm5, %v5131_v63, %v5127_v25  ;;  %vm10062_vm14 = vmmov %vm10061_vm8  ;;  %v5517_v33 = vld [vmem:[%s9844_s8] sm:$0xff] }
 0x72b   : > { %v4867_v36 = vpop.xlane.xlu1 %4866  ;;  %v4980_v18 = vpop.xlane.xlu0 %4979  ;;  %vm10068_vm10 = vmmov %vm10067_vm0 }
 0x72c   : > { %v5314_v35 = vrot.slane %v4980_v18, %v10018_v5  ;;  %v4933_v41 = vmul.f32 0.125, %v4867_v36  ;;  %v5141_v11 = vsel %vm2027_vm5, %v5140_v16, %v5136_v38 }
 0x72e   : > { %v5315_v1 = vsel %vm2229_vm9, %v5314_v35, %v5310_v58  ;;  %v5145_v9 = vrot.slane %v4933_v41, %v10014_v45 }
 0x72f   : > { %v4983_v49 = vpop.xlane.xlu1 %4982  ;;  %v4870_v34 = vpop.xlane.xlu0 %4869  ;;  %v5418_v42 = vsel %vm10058_vm6, %v5315_v1, %v5417_v24  ;;  %vm10072_vm6 = vmmov %vm10069_vm3 }
 0x730   : > { %v4934_v43 = vmul.f32 0.125, %v4870_v34  ;;  %v5319_v56 = vrot.slane %v4983_v49, %v10017_v44 }
 0x732   : > { %v5149_v18 = vrot.slane %v4934_v43, %v10015_v50  ;;  %v5226_v50 = vsel %vm10057_vm12, %v5123_v59, %v5225_v21  ;;  %v3971_v21 = vrot.slane %v9398_v10, 4  ;;  %vm10071_vm12 = vmmov %vm10069_vm3 }
 0x733   : > { %v4989_v7 = vpop.xlane.xlu1 %4988  ;;  %v4986_v4 = vpop.xlane.xlu0 %4985  ;;  %v5227_v51 = vsel %vm10059_vm7, %v5132_v28, %v5226_v50  ;;  %vm10073_vm7 = vcmask 1046528   ;;  %v5522_v28 = vld [vmem:[%s9844_s8 + $0x28] sm:$0xff] }
 0x734   : > { %v5323_v31 = vrot.slane %v4986_v4, %v10018_v5  ;;  %v5328_v30 = vrot.slane %v4989_v7, %v10017_v44  ;;  %v5150_v37 = vsel %vm2027_vm5, %v5149_v18, %v5145_v9  ;;  %v5228_v47 = vsel %vm10061_vm8, %v5141_v11, %v5227_v51  ;;  %vm10064_vm5 = vmmov %vm10063_vm1  ;;  %v5518_v4 = vld [vmem:[%s9844_s8 + $0x8] sm:$0xff] }
 0x735   : > { %v5229_v12 = vsel %vm10063_vm1, %v5150_v37, %v5228_v47  ;;  %v6471_v35 = vpack.c.bf16 %v5518_v4, %v5517_v33  ;;  %vm10078_vm1 = vmmov %vm10067_vm0  ;;  %v5523_v37 = vld [vmem:[%s9844_s8 + $0x30] sm:$0xff]  ;;  %v5528_v4 = vld [vmem:[%s9844_s8 + $0x58] sm:$0xff] }
 0x736   : > { %v5324_v49 = vsel %vm2229_vm9, %v5323_v31, %v5319_v56 }
 0x737   : > { %v4995_v53 = vpop.xlane.xlu1 %4994  ;;  %v4992_v27 = vpop.xlane.xlu0 %4991  ;;  %v5419_v26 = vsel %vm10060_vm13, %v5324_v49, %v5418_v42  ;;  %vm10075_vm13 = vcmask 1045504  }
 0x738   : > { %v5332_v36 = vrot.slane %v4992_v27, %v10018_v5  ;;  %v5337_v46 = vrot.slane %v4995_v53, %v10017_v44  ;;  %v3970_v44 = vrot.slane %v9392_v62, 4  ;;  %v5519_v53 = vld [vmem:[%s9844_s8 + $0x10] sm:$0xff]  ;;  %v9615_v27 = vsel %vm10071_vm12, %v5436_v32, 0.0 }
 0x739   : > { %v5448_v49 = vrot.slane %v9615_v27, 1 }
 0x73a   : > { %v5333_v34 = vsel %vm2229_vm9, %v5332_v36, %v5328_v30 }
 0x73b   : > { %v3943_v0 = vpop.permute.xlu1 %3942  ;;  %v4998_v29 = vpop.xlane.xlu0 %4997  ;;  %v5420_v39 = vsel %vm10062_vm14, %v5333_v34, %v5419_v26  ;;  %vm10077_vm14 = vmmov %vm10073_vm7  ;;  %v5459_v26 = vrot.slane %v9615_v27, 2 }
 0x73c   : > { %v5341_v45 = vrot.slane %v4998_v29, %v10018_v5  ;;  %v3999_v6 = vsel %vm10067_vm0, %v9392_v62, %v3943_v0  ;;  %v5520_v62 = vld [vmem:[%s9844_s8 + $0x18] sm:$0xff]  ;;  %v6477_v29 = vpack.c.bf16 %v5522_v28, %v5521_v61  ;;  %vm10082_vm0 = vcmask 1041408   ;;  %v5542_v61 = vld [vmem:[%s9844_s8 + $0xc8] sm:$0xff] }
 0x73d   : > { %v6474_v38 = vpack.c.bf16 %v5520_v62, %v5519_v53  ;;  %v5533_v62 = vld [vmem:[%s9844_s8 + $0x80] sm:$0xff] }
 0x73e   : > { %v5342_v7 = vsel %vm2229_vm9, %v5341_v45, %v5337_v46  ;;  %vm10066_vm9 = vcmask 1043456   ;;  %v5524_v46 = vld [vmem:[%s9844_s8 + $0x38] sm:$0xff] }
 0x73f   : > { %v3954_v57 = vpop.permute.xlu1 %3953  ;;  %v5421_v13 = vsel %vm10064_vm5, %v5342_v7, %v5420_v39  ;;  %v3983_v5 = vpop.permute.xlu0 %3982  ;;  %v3972_v43 = vsel %vm10066_vm9, %v3970_v44, %v3971_v21  ;;  %vm10076_vm8 = vmmov %vm10066_vm9  ;;  %vm10079_vm5 = vcmask 1044480   ;;  %v6480_v39 = vpack.c.bf16 %v5524_v46, %v5523_v37  ;;  %v5526_v7 = vld [vmem:[%s9844_s8 + $0x48] sm:$0xff] }
 0x740   : > { %v5431_v2 = vsel %vm10065_vm2, %v5229_v12, %v5421_v13  ;;  %v4005_v59 = vsel %vm10068_vm10, %v3972_v43, %v3983_v5  ;;  %v4001_v41 = vsel %vm1101_vm15, %v3999_v6, %v3954_v57  ;;  %v3974_v11 = vsel %vm10076_vm8, %v3971_v21, %v3973_v54  ;;  %vm10080_vm2 = vmmov %vm10075_vm13  ;;  %v5529_v43 = vld [vmem:[%s9844_s8 + $0x60] sm:$0xff]  ;;  %v5530_v6 = vld [vmem:[%s9844_s8 + $0x68] sm:$0xff] }
 0x741   : > { %v5435_v22 = vrot.slane %v5431_v2, 5  ;;  %v5470_v12 = vrot.slane %v9615_v27, 3  ;;  %vm10081_vm9 = vmmov %vm10079_vm5  ;;  %v5539_v54 = vld [vmem:[%s9844_s8 + $0xb0] sm:$0xff] }
 0x742   : > { %vm10083_vm10 = vmmov %vm10069_vm3 }
 0x743   : > { %v3994_v48 = vpop.permute.xlu1 %3993  ;;  %v9596_v40 = vsel %vm10069_vm3, %v5435_v22, %v5436_v32  ;;  %v9599_v63 = vsel %vm10070_vm11, 0.0, %v5435_v22  ;;  %v3965_v31 = vpop.permute.xlu0 %3964  ;;  %v5488_v22 = vrot.slane %v9615_v27, 5  ;;  %vm10084_vm3 = vmmov %vm10082_vm0 }
 0x744   : > { %v4007_v60 = vsel %vm1101_vm15, %v4005_v59, %v3994_v48  ;;  %v4003_v25 = vsel %vm1109_vm4, %v4001_v41, %v3965_v31  ;;  %v5485_v19 = vrot.slane %v9599_v63, 5  ;;  %v5486_v58 = vrot.slane %v9596_v40, 5  ;;  %v5531_v41 = vld [vmem:[%s9844_s8 + $0x70] sm:$0xff]  ;;  %vm10085_vm11 = vmmov %vm10078_vm1 }
 0x745   : > { %6064 = vmatprep.mubr.msk.f32.mxu0 %vm1109_vm4, %v4007_v60  ;;  %v5445_v16 = vrot.slane %v9599_v63, 1  ;;  %v5446_v15 = vrot.slane %v9596_v40, 1  ;;  %v5456_v56 = vrot.slane %v9599_v63, 2  ;;  %v5457_v18 = vrot.slane %v9596_v40, 2  ;;  %v5532_v60 = vld [vmem:[%s9844_s8 + $0x78] sm:$0xff]  ;;  %vm10086_vm12 = vmmov %vm10076_vm8 }
 0x746   : > { %4080 = vmatmul.mubr.f32.vlgmr.msra.gmra.mrb[10].mxu0 %v4003_v25  ;;  %v5487_v36 = vsel %vm10072_vm6, %v5485_v19, %v5486_v58  ;;  %v5467_v50 = vrot.slane %v9599_v63, 3  ;;  %v5468_v24 = vrot.slane %v9596_v40, 3  ;;  %v5496_v13 = vrot.slane %v9599_v63, 6  ;;  %v5534_v25 = vld [vmem:[%s9844_s8 + $0x88] sm:$0xff]  ;;  %vm10087_vm6 = vmmov %vm10078_vm1 }
 0x747   : > { %6472 = vmatpush1.bf16.msra.mxu0 %v6471_v35  ;;  %5490 = vrot.lane.b32.xlu0 %v5487_v36, %s9998_s2  ;;  %v3985_v1 = vpop.permute.xlu0 %3984  ;;  %v5447_v30 = vsel %vm10073_vm7, %v5445_v16, %v5446_v15  ;;  %v5458_v0 = vsel %vm10075_vm13, %v5456_v56, %v5457_v18  ;;  %v5449_v34 = vsel %vm10077_vm14, %v5446_v15, %v5448_v49  ;;  %v5497_v44 = vrot.slane %v9596_v40, 6  ;;  %v5536_v16 = vld [vmem:[%s9844_s8 + $0x98] sm:$0xff]  ;;  %v5537_v56 = vld [vmem:[%s9844_s8 + $0xa0] sm:$0xff]  ;;  %vm10088_vm7 = vmmov %vm10078_vm1 }
 0x748   : > { %v6664_v9 = vpack.i.bf16 %v5447_v30, %v9434_v23  ;;  %6473 = vmatprep.subr.bf16.mxu0 %v10074_v17  ;;  %v4006_v23 = vsel %vm10078_vm1, %v3974_v11, %v3985_v1  ;;  %v6669_v51 = vpack.i.bf16 %v5458_v0, %v9437_v20  ;;  %v5469_v21 = vsel %vm10079_vm5, %v5467_v50, %v5468_v24  ;;  %v5525_v20 = vld [vmem:[%s9844_s8 + $0x40] sm:$0xff]  ;;  %v5544_v49 = vld [vmem:[%s9844_s8 + $0xd8] sm:$0xff]  ;;  %vm10089_vm13 = vmmov %vm10076_vm8 }
 0x749   : > { %v5460_v47 = vsel %vm10080_vm2, %v5457_v18, %v5459_v26  ;;  %v6674_v57 = vpack.i.bf16 %v5469_v21, %v9442_v55  ;;  %v5471_v5 = vsel %vm10081_vm9, %v5468_v24, %v5470_v12  ;;  %v6483_v33 = vpack.c.bf16 %v5526_v7, %v5525_v20  ;;  %v5527_v55 = vld [vmem:[%s9844_s8 + $0x50] sm:$0xff]  ;;  %v5538_v18 = vld [vmem:[%s9844_s8 + $0xa8] sm:$0xff]  ;;  %v5541_v30 = vld [vmem:[%s9844_s8 + $0xc0] sm:$0xff] }
 0x74a   : > { %6665 = vrot.lane.b32.xlu1 %v6664_v9, %s9998_s2  ;;  %v5498_v2 = vsel %vm10082_vm0, %v5496_v13, %v5497_v44  ;;  %v6486_v32 = vpack.c.bf16 %v5528_v4, %v5527_v55  ;;  %v5489_v59 = vsel %vm10083_vm10, %v5486_v58, %v5488_v22  ;;  %v6489_v48 = vpack.c.bf16 %v5530_v6, %v5529_v43  ;;  %v5535_v58 = vld [vmem:[%s9844_s8 + $0x90] sm:$0xff]  ;;  %vm10090_vm8 = vmmov %vm10078_vm1 }
 0x74b   : > { %6475 = vmatpush1.bf16.msra.mxu0 %v6474_v38  ;;  %5452 = vrot.lane.b32.xlu0 %v5449_v34, %s9998_s2  ;;  %v3996_v42 = vpop.permute.xlu0 %3995  ;;  %v5499_v35 = vrot.slane %v9615_v27, 6  ;;  %v6492_v53 = vpack.c.bf16 %v5532_v60, %v5531_v41  ;;  %v6495_v19 = vpack.c.bf16 %v5534_v25, %v5533_v62  ;;  %v6498_v15 = vpack.c.bf16 %v5536_v16, %v5535_v58  ;;  %v5540_v38 = vld [vmem:[%s9844_s8 + $0xb8] sm:$0xff]  ;;  %v5543_v9 = vld [vmem:[%s9844_s8 + $0xd0] sm:$0xff]  ;;  %vm10091_vm14 = vmmov %vm10078_vm1 }
 0x74c   : > { %6476 = vmatprep.subr.bf16.mxu0 %v10074_v17  ;;  %v4008_v45 = vsel %vm1101_vm15, %v4006_v23, %v3996_v42  ;;  %v6501_v36 = vpack.c.bf16 %v5538_v18, %v5537_v56  ;;  %v6504_v1 = vpack.c.bf16 %v5540_v38, %v5539_v54  ;;  %v6507_v28 = vpack.c.bf16 %v5542_v61, %v5541_v30  ;;  %v5767_v30 = vld [vmem:[#allocation2 + $0x88] sm:$0xff] }
 0x74d   : > { %6065 = vmatprep.mubr.msk.f32.mxu0 %vm1109_vm4, %v4008_v45  ;;  %v5500_v31 = vsel %vm10084_vm3, %v5497_v44, %v5499_v35  ;;  %v6510_v0 = vpack.c.bf16 %v5544_v49, %v5543_v9  ;;  %v5478_v23 = vrot.slane %v9599_v63, 4  ;;  %v5479_v42 = vrot.slane %v9596_v40, 4 }
 0x74e   : > { %6670 = vrot.lane.b32.xlu1 %v6669_v51, %s9972_s30  ;;  %v5481_v55 = vrot.slane %v9615_v27, 4  ;;  %vm10092_vm1 = vcmask 130048   ;;  %vm5725_vm2 = vcmask 1040384   ;;  %vm10097_vm0 = vcmask 1046528  }
 0x74f   : > { %6478 = vmatpush1.bf16.msra.mxu0 %v6477_v29  ;;  %5463 = vrot.lane.b32.xlu0 %v5460_v47, %s9972_s30  ;;  %v5480_v47 = vsel %vm10086_vm12, %v5478_v23, %v5479_v42  ;;  %vm10096_vm5 = vmmov %vm10092_vm1  ;;  %vm10099_vm3 = vcmask 1045504  }
 0x750   : > { %6479 = vmatprep.subr.bf16.mxu0 %v10074_v17  ;;  %vm6077_vm9 = vmneg %vm5725_vm2 }
 0x751   : > { %vm10098_vm10 = vmmov %vm10097_vm0 }
 0x752   : > { %6675 = vrot.lane.b32.xlu1 %v6674_v57, %s9973_s10 }
 0x753   : > { %6481 = vmatpush1.bf16.msra.mxu0 %v6480_v39  ;;  %5474 = vrot.lane.b32.xlu0 %v5471_v5, %s9973_s10  ;;  %s9792_s10 = scalar_lea.hbm %s9848_s12, %s6084_s23 }
 0x754   : > { %6482 = vmatprep.subr.bf16.mxu0 %v10074_v17 }
 0x756   : > { %5501 = vrot.lane.b32.xlu1 %v5498_v2, %s9972_s30  ;;  %v5482_v2 = vsel %vm10089_vm13, %v5479_v42, %v5481_v55 }
 0x757   : > { %6484 = vmatpush1.bf16.msra.mxu0 %v6483_v33 }
 0x758   : > { %6485 = vmatprep.subr.bf16.mxu0 %v10074_v17 }
 0x75a   : > { %5492 = vrot.lane.b32.xlu1 %v5489_v59, %s9998_s2  ;;  %s421_s2 = scalar_lea.vmem [#allocation5], %s6051_s20 }
 0x75b   : > { %6487 = vmatpush1.bf16.msra.mxu0 %v6486_v32  ;;  %s5971_s29 = sshll.u32 %s421_s2, 4  ;;  %s9787_s29 = int_to_ptr.vmem [resolvable:$true] %s5971_s29 }
 0x75c   : > { %6488 = vmatprep.subr.bf16.mxu0 %v10074_v17  ;;  %s6735_s25 = scalar_lea.vmem %s9787_s29, 256  ;;  %p6742_p2 = scmp.lt.s32.totalorder %s9787_s29, %s6740_s17 }
 0x75d   : > { %p6736_p6 = scmp.ne.s32.totalorder %s9787_s29, %s6735_s25  ;;  %p6743_p3 = scmp.lt.s32.totalorder %s6741_s15, %s6735_s25 }
 0x75e   : > { %5503 = vrot.lane.b32.xlu1 %v5500_v31, %s9972_s30  ;;  %s9794_s30 = scalar_lea.sflag [#allocation4], %s419_s18 }
 0x75f   : > { %6490 = vmatpush1.bf16.msra.mxu0 %v6489_v48  ;;  %p6737_p10 = pnand %p6736_p6, %p10101_p9  ;;  %p6744_p4 = por %p6743_p3, %p6742_p2 }
 0x760   : > { %6491 = vmatprep.subr.bf16.mxu0 %v10074_v17 }
 0x761   : > { %p6738_p12 = pneg %p6737_p10 }
 0x763   : > { %6493 = vmatpush1.bf16.msra.mxu0 %v6492_v53  ;;  %p6745_p7 = pnand %p6744_p4, %p6738_p12 }
 0x764   : > { %6494 = vmatprep.subr.bf16.mxu0 %v10074_v17 }
 0x767   : > { %6496 = vmatpush1.bf16.msra.mxu0 %v6495_v19 }
 0x768   : > { %6497 = vmatprep.subr.bf16.mxu0 %v10074_v17 }
 0x76b   : > { %6499 = vmatpush1.bf16.msra.mxu0 %v6498_v15 }
 0x76c   : > { %6500 = vmatprep.subr.bf16.mxu0 %v10074_v17 }
 0x76f   : > { %6502 = vmatpush1.bf16.msra.mxu0 %v6501_v36 }
 0x770   : > { %6503 = vmatprep.subr.bf16.mxu0 %v10074_v17 }
 0x773   : > { %6505 = vmatpush1.bf16.msra.mxu0 %v6504_v1  ;;  %v5766_v1 = vld [vmem:[#allocation2 + $0x80] sm:$0xff] }
 0x774   : > { %6506 = vmatprep.subr.bf16.mxu0 %v10074_v17  ;;  %v6516_v9 = vpack.c.bf16 %v5767_v30, %v5766_v1 }
 0x777   : > { %6508 = vmatpush1.bf16.msra.mxu0 %v6507_v28 }
 0x778   : > { %6509 = vmatprep.subr.bf16.mxu0 %v10074_v17 }
 0x77b   : > { %6511 = vmatpush1.bf16.msra.mxu0 %v6510_v0  ;;  %v10094_v0 = vld [vmem:[#allocation27_spill] sm:$0xff] }
 0x7b9   : > { %v5491_v24 = vpop.permute.xlu0 %5490 }
 0x7ba   : > { %v5513_v7 = vsel %vm10087_vm6, %v5480_v47, %v5491_v24  ;;  %v5750_v24 = vld [vmem:[#allocation2] sm:$0xff] }
 0x7bb   : > { %v5754_v47 = vld [vmem:[#allocation2 + $0x20] sm:$0xff] }
 0x7bc   : > { %v6666_v50 = vpop.permute.xlu1 %6665 }
 0x7bd   : > { %v6667_v34 = vunpack.i.l.bf16 %v6666_v50  ;;  %v5453_v37 = vpop.permute.xlu0 %5452  ;;  %v6668_v45 = vunpack.i.h.bf16 %v6666_v50 }
 0x7be   : > { %v5508_v32 = vsel %vm10090_vm8, %v9596_v40, %v5453_v37  ;;  %v5752_v37 = vld [vmem:[#allocation2 + $0x10] sm:$0xff] }
 0x7bf   : > { %v4000_v26 = vsel %vm10085_vm11, %v9398_v10, %v6667_v34  ;;  %v5507_v12 = vsel %vm10088_vm7, %v9599_v63, %v6668_v45  ;;  %v5768_v34 = vld [vmem:[#allocation2 + $0x90] sm:$0xff]  ;;  %vm10100_vm11 = vmmov %vm10099_vm3 }
 0x7c0   : > { %v6671_v11 = vpop.permute.xlu1 %6670 }
 0x7c1   : > { %v6672_v29 = vunpack.i.l.bf16 %v6671_v11  ;;  %v6673_v21 = vunpack.i.h.bf16 %v6671_v11  ;;  %v5464_v13 = vpop.permute.xlu0 %5463  ;;  %v5751_v11 = vld [vmem:[#allocation2 + $0x8] sm:$0xff] }
 0x7c2   : > { %v5510_v43 = vsel %vm1101_vm15, %v5508_v32, %v5464_v13  ;;  %v6518_v23 = vpack.c.bf16 %v5751_v11, %v5750_v24 }
 0x7c3   : > { %v4002_v17 = vsel %vm1101_vm15, %v4000_v26, %v6672_v29  ;;  %v5509_v10 = vsel %vm1101_vm15, %v5507_v12, %v6673_v21  ;;  %v5769_v29 = vld [vmem:[#allocation2 + $0x98] sm:$0xff]  ;;  %v5771_v26 = vld [vmem:[#allocation2 + $0xa8] sm:$0xff]  ;;  %v5756_v12 = vld [vmem:[#allocation2 + $0x30] sm:$0xff] }
 0x7c4   : > { %v6676_v46 = vpop.permute.xlu1 %6675  ;;  %v6520_v42 = vpack.c.bf16 %v5769_v29, %v5768_v34  ;;  %v5784_v34 = vld [vmem:[#allocation2 + $0x110] sm:$0xff]  ;;  %v5785_v29 = vld [vmem:[#allocation2 + $0x118] sm:$0xff] }
 0x7c5   : > { %v6677_v51 = vunpack.i.l.bf16 %v6676_v46  ;;  %v6678_v39 = vunpack.i.h.bf16 %v6676_v46  ;;  %v5475_v4 = vpop.permute.xlu0 %5474  ;;  %v5753_v46 = vld [vmem:[#allocation2 + $0x18] sm:$0xff] }
 0x7c6   : > { %v5512_v59 = vsel %vm1109_vm4, %v5510_v43, %v5475_v4  ;;  %v6522_v21 = vpack.c.bf16 %v5753_v46, %v5752_v37  ;;  %v5758_v4 = vld [vmem:[#allocation2 + $0x40] sm:$0xff]  ;;  %v5760_v43 = vld [vmem:[#allocation2 + $0x50] sm:$0xff] }
 0x7c7   : > { %v4004_v20 = vsel %vm1109_vm4, %v4002_v17, %v6677_v51  ;;  %v5511_v5 = vsel %vm1109_vm4, %v5509_v10, %v6678_v39  ;;  %v5770_v51 = vld [vmem:[#allocation2 + $0xa0] sm:$0xff]  ;;  %v5755_v39 = vld [vmem:[#allocation2 + $0x28] sm:$0xff] }
 0x7c8   : > { %v5502_v57 = vpop.permute.xlu1 %5501  ;;  %4085 = vmatmul.mubr.f32.gmra.mrb[12].mxu0 %v4004_v20  ;;  %v6524_v17 = vpack.c.bf16 %v5771_v26, %v5770_v51  ;;  %v6526_v20 = vpack.c.bf16 %v5755_v39, %v5754_v47  ;;  %v5774_v10 = vld [vmem:[#allocation2 + $0xc0] sm:$0xff]  ;;  %v5787_v39 = vld [vmem:[#allocation2 + $0x128] sm:$0xff] }
 0x7c9   : > { %v5515_v44 = vsel %vm1101_vm15, %v5513_v7, %v5502_v57  ;;  %v5772_v7 = vld [vmem:[#allocation2 + $0xb0] sm:$0xff]  ;;  %v5773_v57 = vld [vmem:[#allocation2 + $0xb8] sm:$0xff]  ;;  %v5786_v47 = vld [vmem:[#allocation2 + $0x120] sm:$0xff] }
 0x7ca   : > { %6070 = vmatprep.mubr.msk.f32.mxu0 %vm1109_vm4, %v5515_v44  ;;  %v6528_v13 = vpack.c.bf16 %v5773_v57, %v5772_v7  ;;  %v5757_v44 = vld [vmem:[#allocation2 + $0x38] sm:$0xff]  ;;  %v5788_v7 = vld [vmem:[#allocation2 + $0x130] sm:$0xff] }
 0x7cb   : > { %v5789_v57 = vld [vmem:[#allocation2 + $0x138] sm:$0xff] }
 0x7cc   : > { %v5493_v33 = vpop.permute.xlu1 %5492  ;;  %5616 = vmatmul.mubr.f32.vlgmr.msra.gmra.mrb[14].mxu0 %v5511_v5  ;;  %v5775_v5 = vld [vmem:[#allocation2 + $0xc8] sm:$0xff] }
 0x7cd   : > { %v5514_v63 = vsel %vm10091_vm14, %v5482_v2, %v5493_v33  ;;  %v6530_v33 = vpack.c.bf16 %v5757_v44, %v5756_v12  ;;  %v6532_v55 = vpack.c.bf16 %v5775_v5, %v5774_v10  ;;  %v5759_v2 = vld [vmem:[#allocation2 + $0x48] sm:$0xff]  ;;  %v6560_v12 = vpack.c.bf16 %v5789_v57, %v5788_v7  ;;  %v5792_v5 = vld [vmem:[#allocation2 + $0x150] sm:$0xff] }
 0x7ce   : > { %v6534_v32 = vpack.c.bf16 %v5759_v2, %v5758_v4  ;;  %v5791_v44 = vld [vmem:[#allocation2 + $0x148] sm:$0xff]  ;;  %v5794_v4 = vld [vmem:[#allocation2 + $0x160] sm:$0xff] }
 0x7cf   : > { %v5795_v2 = vld [vmem:[#allocation2 + $0x168] sm:$0xff] }
 0x7d0   : > { %v5504_v22 = vpop.permute.xlu1 %5503 }
 0x7d1   : > { %v5516_v6 = vsel %vm1101_vm15, %v5514_v63, %v5504_v22  ;;  %vm10095_vm15 = vmmov %vm10092_vm1  ;;  %v5776_v63 = vld [vmem:[#allocation2 + $0xd0] sm:$0xff]  ;;  %v5777_v22 = vld [vmem:[#allocation2 + $0xd8] sm:$0xff] }
 0x7d2   : > { %6071 = vmatprep.mubr.msk.f32.mxu0 %vm1109_vm4, %v5516_v6  ;;  %vm10093_vm4 = vmmov %vm10092_vm1  ;;  %v6536_v6 = vpack.c.bf16 %v5777_v22, %v5776_v63  ;;  %v5796_v63 = vld [vmem:[#allocation2 + $0x170] sm:$0xff]  ;;  %v5797_v22 = vld [vmem:[#allocation2 + $0x178] sm:$0xff] }
 0x7d3   : > { %5621 = vmatmul.mubr.f32.gmra.mrb[16].mxu0 %v5512_v59  ;;  %v5761_v59 = vld [vmem:[#allocation2 + $0x58] sm:$0xff] }
 0x819   : > { %v4081_v48 = vpop.f32.mrb[10].mxu0 }
 0x81a   : > { %v6066_v27 = vmul.f32 -1.442695, %v4081_v48  ;;  %v4083_v35 = vpop.f32.mrb[11].mxu0  ;;  %v5778_v48 = vld [vmem:[#allocation2 + $0xe0] sm:$0xff] }
 0x81b   : > { %v6538_v35 = vpack.c.bf16 %v5761_v59, %v5760_v43  ;;  %v6576_v43 = vpack.c.bf16 %v5797_v22, %v5796_v63 }
 0x81c   : > { %6691 = vpow2.f32 %v6066_v27  ;;  %v5779_v27 = vld [vmem:[#allocation2 + $0xe8] sm:$0xff] }
 0x826   : > { %v6692_v41 = vpop.eup %6691 }
 0x827   : > { %v4096_v60 = vadd.f32 1.0, %v6692_v41  ;;  %v6540_v41 = vpack.c.bf16 %v5779_v27, %v5778_v48 }
 0x829   : > { %6693 = vrcp.f32 %v4096_v60  ;;  %v5762_v60 = vld [vmem:[#allocation2 + $0x60] sm:$0xff] }
 0x833   : > { %v6694_v40 = vpop.eup %6693 }
 0x834   : > { %6269 = vmatprep.mubr.msk.f32.mxu1 %vm10092_vm1, %v6694_v40  ;;  %v5763_v40 = vld [vmem:[#allocation2 + $0x68] sm:$0xff] }
 0x89b   : > { %v4086_v31 = vpop.f32.mrb[12].mxu0 }
 0x89c   : > { %v6067_v53 = vmul.f32 -1.442695, %v4086_v31  ;;  %v4088_v62 = vpop.f32.mrb[13].mxu0  ;;  %v5780_v31 = vld [vmem:[#allocation2 + $0xf0] sm:$0xff] }
 0x89d   : > { %v6542_v62 = vpack.c.bf16 %v5763_v40, %v5762_v60  ;;  %v6076_v60 = vld [vmem:[%s9847_s11] ss:$0 sm:$0xff] }
 0x89e   : > { %6695 = vpow2.f32 %v6067_v53  ;;  %v5781_v53 = vld [vmem:[#allocation2 + $0xf8] sm:$0xff] }
 0x89f   : > { %v5617_v25 = vpop.f32.mrb[14].mxu0 }
 0x8a0   : > { %v6072_v19 = vmul.f32 -1.442695, %v5617_v25  ;;  %v5619_v58 = vpop.f32.mrb[15].mxu0  ;;  %v6544_v25 = vpack.c.bf16 %v5781_v53, %v5780_v31 }
 0x8a1   : > { %v5765_v58 = vld [vmem:[#allocation2 + $0x78] sm:$0xff] }
 0x8a2   : > { %6697 = vpow2.f32 %v6072_v19  ;;  %v5764_v19 = vld [vmem:[#allocation2 + $0x70] sm:$0xff] }
 0x8a6   : > { %v5622_v16 = vpop.f32.mrb[16].mxu0 }
 0x8a7   : > { %v6073_v15 = vmul.f32 -1.442695, %v5622_v16  ;;  %v5624_v56 = vpop.f32.mrb[17].mxu0  ;;  %v5782_v16 = vld [vmem:[#allocation2 + $0x100] sm:$0xff] }
 0x8a8   : > { %v6696_v18 = vpop.eup %6695  ;;  %v6546_v56 = vpack.c.bf16 %v5765_v58, %v5764_v19 }
 0x8a9   : > { %v4097_v36 = vadd.f32 1.0, %v6696_v18  ;;  %6699 = vpow2.f32 %v6073_v15  ;;  %v5783_v15 = vld [vmem:[#allocation2 + $0x108] sm:$0xff] }
 0x8aa   : > { %v6548_v18 = vpack.c.bf16 %v5783_v15, %v5782_v16 }
 0x8ab   : > { %6701 = vrcp.f32 %v4097_v36 }
 0x8ac   : > { %v6698_v54 = vpop.eup %6697 }
 0x8ad   : > { %v5632_v38 = vadd.f32 1.0, %v6698_v54 }
 0x8af   : > { %6703 = vrcp.f32 %v5632_v38 }
 0x8b3   : > { %v6700_v61 = vpop.eup %6699 }
 0x8b4   : > { %v5633_v28 = vadd.f32 1.0, %v6700_v61 }
 0x8b5   : > { %v6702_v49 = vpop.eup %6701 }
 0x8b6   : > { %6705 = vrcp.f32 %v5633_v28  ;;  %6270 = vmatmul.mubr.msk.f32.vlgmr.msra.gmra.mrb[6].mxu1 %vm10093_vm4, %v6702_v49 }
 0x8b7   : > { %6515 = vmatpush3.bf16.msra.mxu1 %v10094_v0 }
 0x8b8   : > { %6517 = vmatprep.subr.bf16.mxu1 %v6516_v9 }
 0x8b9   : > { %v6704_v50 = vpop.eup %6703 }
 0x8ba   : > { %6276 = vmatprep.mubr.msk.f32.mxu1 %vm10095_vm15, %v6704_v50 }
 0x8c0   : > { %v6706_v45 = vpop.eup %6705 }
 0x8c1   : > { %6277 = vmatmul.mubr.msk.f32.vlgmr.msra.gmra.mrb[8].mxu1 %vm10096_vm5, %v6706_v45 }
 0x8c2   : > { %6519 = vmatpush3.bf16.msra.mxu1 %v6518_v23 }
 0x8c3   : > { %6521 = vmatprep.subr.bf16.mxu1 %v6520_v42 }
 0x8c6   : > { %6523 = vmatpush3.bf16.msra.mxu1 %v6522_v21 }
 0x8c7   : > { %6525 = vmatprep.subr.bf16.mxu1 %v6524_v17 }
 0x8ca   : > { %6527 = vmatpush3.bf16.msra.mxu1 %v6526_v20  ;;  %v6556_v20 = vpack.c.bf16 %v5787_v39, %v5786_v47 }
 0x8cb   : > { %6529 = vmatprep.subr.bf16.mxu1 %v6528_v13  ;;  %v5790_v13 = vld [vmem:[#allocation2 + $0x140] sm:$0xff] }
 0x8cc   : > { %v6564_v10 = vpack.c.bf16 %v5791_v44, %v5790_v13 }
 0x8ce   : > { %6531 = vmatpush3.bf16.msra.mxu1 %v6530_v33  ;;  %v5793_v33 = vld [vmem:[#allocation2 + $0x158] sm:$0xff] }
 0x8cf   : > { %6533 = vmatprep.subr.bf16.mxu1 %v6532_v55  ;;  %v6568_v55 = vpack.c.bf16 %v5793_v33, %v5792_v5 }
 0x8d2   : > { %6535 = vmatpush3.bf16.msra.mxu1 %v6534_v32  ;;  %v6572_v32 = vpack.c.bf16 %v5795_v2, %v5794_v4 }
 0x8d3   : > { %6537 = vmatprep.subr.bf16.mxu1 %v6536_v6 }
 0x8d6   : > { %6539 = vmatpush3.bf16.msra.mxu1 %v6538_v35 }
 0x8d7   : > { %6541 = vmatprep.subr.bf16.mxu1 %v6540_v41 }
 0x8da   : > { %6543 = vmatpush3.bf16.msra.mxu1 %v6542_v62 }
 0x8db   : > { %6545 = vmatprep.subr.bf16.mxu1 %v6544_v25 }
 0x8de   : > { %6547 = vmatpush3.bf16.msra.mxu1 %v6546_v56 }
 0x8df   : > { %6549 = vmatprep.subr.bf16.mxu1 %v6548_v18 }
 0x989   : > { %v6271_v36 = vpop.f32.mrb[6].mxu1 }
 0x98a   : > { %v4174_v54 = vpop.f32.mrb[7].mxu1  ;;  %v4184_v1 = vmul.f32 %v6271_v36, %v8186_v3 }
 0x98b   : > { %v4183_v28 = vmul.f32 %v4174_v54, %v8184_v8  ;;  %v6552_v8 = vpack.c.bf16 %v5785_v29, %v5784_v34 }
 0x994   : > { %v6278_v38 = vpop.f32.mrb[8].mxu1 }
 0x995   : > { %v5720_v30 = vmul.f32 %v6278_v38, %v10013_v14  ;;  %v5710_v61 = vpop.f32.mrb[9].mxu1 }
 0x996   : > { %v5719_v9 = vmul.f32 %v5710_v61, %v10016_v52 }
 0x997   : > { %v5722_v49 = vadd.f32 %v5720_v30, %v4184_v1 }
 0x998   : > { %v5721_v0 = vadd.f32 %v5719_v9, %v4183_v28 }
 0x999   : > { %v5727_v50 = vrot.slane %v5722_v49, 7 }
 0x99a   : > { %v5726_v24 = vrot.slane %v5721_v0, 7 }
 0x99b   : > { %v5733_v11 = vsel %vm5725_vm2, %v5727_v50, 0.0 }
 0x99c   : > { %v5739_v23 = vrot.slane %v5733_v11, 1  ;;  %v5746_v42 = vrot.slane %v5733_v11, 2  ;;  %v5728_v37 = vsel %vm5725_vm2, %v5726_v24, %v5727_v50  ;;  %v5732_v46 = vsel %vm5725_vm2, 0.0, %v5726_v24 }
 0x99d   : > { %v5736_v3 = vrot.slane %v5732_v46, 1  ;;  %v5737_v45 = vrot.slane %v5728_v37, 1  ;;  %v5743_v14 = vrot.slane %v5732_v46, 2  ;;  %v5744_v51 = vrot.slane %v5728_v37, 2 }
 0x99f   : > { %v5738_v52 = vsel %vm10097_vm0, %v5736_v3, %v5737_v45  ;;  %v5740_v26 = vsel %vm10098_vm10, %v5737_v45, %v5739_v23  ;;  %v5745_v21 = vsel %vm10099_vm3, %v5743_v14, %v5744_v51  ;;  %v5747_v17 = vsel %vm10100_vm11, %v5744_v51, %v5746_v42 }
 0x9a0   : > { %5869 = vmatprep.mubr.f32.mxu1 %v5738_v52 }
 0x9a1   : > { %6078 = vmatmul.mubr.msk.f32.vlgmr.msra.gmra.mrb[10].mxu1 %vm6077_vm9, %v5726_v24 }
 0x9a2   : > { %6551 = vmatpush3.bf16.msra.mxu1 %v6548_v18  ;;  %5874 = vmatprep.mubr.f32.mxu1 %v5740_v26 }
 0x9a3   : > { %6553 = vmatprep.subr.bf16.mxu1 %v6552_v8 }
 0x9a5   : > { %5875 = vmatmul.mubr.f32.gmra.mrb[12].mxu1 %v5728_v37 }
 0x9a6   : > { %6555 = vmatpush3.bf16.msra.mxu1 %v6552_v8  ;;  %6311 = vmatprep.mubr.f32.mxu1 %v5745_v21 }
 0x9a7   : > { %6557 = vmatprep.subr.bf16.mxu1 %v6556_v20 }
 0x9aa   : > { %6559 = vmatpush3.bf16.msra.mxu1 %v6556_v20 }
 0x9ab   : > { %6561 = vmatprep.subr.bf16.mxu1 %v6560_v12 }
 0x9ae   : > { %6563 = vmatpush3.bf16.msra.mxu1 %v6560_v12 }
 0x9af   : > { %6565 = vmatprep.subr.bf16.mxu1 %v6564_v10 }
 0x9b2   : > { %6567 = vmatpush3.bf16.msra.mxu1 %v6564_v10 }
 0x9b3   : > { %6569 = vmatprep.subr.bf16.mxu1 %v6568_v55 }
 0x9b6   : > { %6571 = vmatpush3.bf16.msra.mxu1 %v6568_v55 }
 0x9b7   : > { %6573 = vmatprep.subr.bf16.mxu1 %v6572_v32 }
 0x9ba   : > { %6575 = vmatpush3.bf16.msra.mxu1 %v6572_v32 }
 0x9bb   : > { %6577 = vmatprep.subr.bf16.mxu1 %v6576_v43 }
 0x9be   : > { %6579 = vmatpush3.bf16.msra.mxu1 %v6576_v43 }
 0x9c1   : > { %6312 = vmatmul.mubr.f32.vlgmr.msra.gmra.mrb[14].mxu1 %v5747_v17 }
 0xa74   : > { %v6189_v6 = vpop.f32.mrb[10].mxu1 }
 0xa75   : > { %v6190_v59 = vpop.f32.mrb[11].mxu1 }
 0xa76   : > { %v6191_v48 = vadd.f32 %v6190_v59, %v6189_v6 }
 0xa78   : > { %v6192_v27 = vpop.f32.mrb[12].mxu1  ;;  %v5872_v53 = vadd.f32 %v6191_v48, %v6076_v60 }
 0xa79   : > { %v6193_v35 = vpop.f32.mrb[13].mxu1 }
 0xa7a   : > { %v6194_v41 = vadd.f32 %v6193_v35, %v6192_v27 }
 0xa7c   : > { %v5877_v40 = vadd.f32 %v6194_v41, %v6076_v60 }
 0xa94   : > { %v6313_v31 = vpop.f32.mrb[14].mxu1 }
 0xa95   : > { %v5952_v62 = vadd.f32 %v6313_v31, %v5877_v40  ;;  %v5946_v25 = vpop.f32.mrb[15].mxu1 }
 0xa96   : > { %v5947_v19 = vadd.f32 %v5946_v25, %v5872_v53 }
 0xa97   : > { %5956 = vst [vmem:[%s421_s2 + $0x8] sm:$0xff] %v5952_v62 }
 0xa98   : > { %5955 = vst [vmem:[%s421_s2] sm:$0xff] %v5947_v19 }
 0xa99   : > { %6748 = shalt.err (!%p6745_p7)
}
 0xa9a   : > { %s6749_s18 = scalar_lea.hbm %s9792_s10, 256  ;;  %s6753_s26 = scalar_lea.hbm %s9848_s12, 512 }
 0xa9b   : > { %p6750_p8 = scmp.ne.s32.totalorder %s9792_s10, %s6749_s18  ;;  %p6754_p1 = scmp.lt.u32.totalorder %s9792_s10, %s9848_s12 }
 0xa9c   : > { %p6755_p0 = scmp.lt.u32.totalorder %s6753_s26, %s6749_s18  ;;  %p6757_p6 = scmp.lt.u32.totalorder %s6749_s18, %s9792_s10 }
 0xa9d   : > { %p6751_p11 = pnand %p6750_p8, %p10101_p9 }
 0xa9e   : > { %p6756_p5 = por %p6755_p0, %p6754_p1 }
 0xa9f   : > { %p6752_p13 = pneg %p6751_p11 }
 0xaa0   : > { %p6758_p10 = por %p6757_p6, %p6756_p5 }
 0xaa2   : > { %p6759_p12 = pnand %p6758_p10, %p6752_p13 }
 0xaa4   : > { %6762 = shalt.err (!%p6759_p12)
}
 0xaa5   : > { %s6827_s0 = smov 128  }
 0xaa6   : > { %6585 = dma.vmem_to_hbm [thread:$0]  (%p10101_p9), %s9787_s29, 256, %s9792_s10, %s9794_s30, %s6827_s0, %s6827_s0, %s9976_s19  }
 0xaa7 PF: > { %p6597_p2 = scmp.ge.s32.totalorder %s6801_s24, 2  ;;  %s5986_s1 = sand.u32 1, %s6789_s21  }
 0xaa8   : > { %p10102_p3 = scmp.ne.s32.totalorder %s9941_s14, 0  ;;  %s5987_s25 = scalar_lea.sflag [#allocation4], %s5986_s1 }
 0xaaa   : > { %p6592_p4 = pnand %p6597_p2, %p10102_p3 }
 0xaac   : > { %6784 = dma.done.wait (!%p6592_p4), %s5987_s25, 256  }
 0xaad   : > { %6786 = vsyncadd (!%p6592_p4), %s5987_s25, 4294967040  ;;  %s10103_s16 = sld [smem:[#allocation8_spill]]  ;;  %s10104_s23 = sld [smem:[#allocation9_spill]] }
 0xaae   : > { %p23_p7 = scmp.ge.s32.totalorder %s6918_s27, 4   ;;  %s10105_s21 = smov %s6793_s22 }
 0xaaf   : > { %s10107_s24 = smov %s6918_s27 }
 0xab0   :  { %25 = sbr.rel (!%p23_p7) target bundleno = 9 (0x9), region = 108 }
 0xab3   : > { %s10106_s22 = smov %s10103_s16 }
 0xab7   :  { %5992 = vsyncpa [#allocation3], 1 }
 0xab8   :  { %5994 = vsyncpa [#allocation3 + $0x1], 1 }
 0xab9   :  { %5995 = vsyncpa [#allocation4], 1 }
 0xaba   :  { %5997 = vsyncpa [#allocation4 + $0x1], 1 }

</bundles_post_ra>
